<compile_context>
chip_gen: v6e
topology: v6e:2x2x1
jax: 0.10.0
libtpu: 0.0.40
codegen_flags: <defaults>
</compile_context>

<pallas_src>
import numpy as np

import jax
import jax.numpy as jnp
from jax.experimental import pallas as pl
from jax.experimental.pallas import tpu as pltpu


# --------------------------------------------------------------------------- helpers
def _padded_bytes(shape, dtype):
    """Bytes `shape` occupies in VMEM after (8, 128) tiling of the trailing two dims."""
    s = list(shape)
    s[-1] = -(-s[-1] // 128) * 128
    if len(s) >= 2:
        s[-2] = -(-s[-2] // 8) * 8
    n = 1
    for d in s:
        n *= int(d)
    return n * np.dtype(dtype).itemsize


def _pick_batch_block(N, in_img_bytes, out_img_bytes, budget=8 << 20):
    """Largest divisor of N that keeps >=2 grid steps (megacore) and fits the budget."""
    best = 1
    for b in range(1, N + 1):
        if N % b:
            continue
        if N >= 2 and N // b < 2:
            continue
        if 2 * b * max(in_img_bytes, out_img_bytes) > budget:
            continue
        best = b
    return best


# --------------------------------------------------------------------------- kernel
def _make_basic_block_kernel(*, stride, Cin, P, Ho, Wo, B, has_proj, compute_dtype):
    """Fused BasicBlock: conv1+BN1+ReLU -> conv2+BN2 -> +shortcut -> ReLU.

    Per grid step the kernel processes B images.  Refs:
      x_ref  : stride 1: (B, Hp, Wp, Cin) zero-padded NHWC
               stride 2: (B, Hp/2, 2, Wp/2, 2*Cin) polyphase-in-channels view of the
                         padded NHWC input (x_ref[b,q,ph,u,pw*Cin+c] = x_pad[2q+ph,2u+pw,c])
      w1_ref : (9*Cin, P)  conv1 weights, tap-major rows (w1.reshape(9*Cin, P))
      w2_ref : (9*P, P)    conv2 weights, tap-major rows
      s*/b*  : (1, P)      folded BN affines (row-broadcast against (M, P))
      ws/ss/bs             projection-shortcut weight + folded BN (only if has_proj)
      o_ref  : (B*M, P)    output rows (row-major, P on lanes)
      h1p_ref: (Ho+2, Wo+2, P) VMEM scratch: halo'd conv1 output (conv2's padded input)
    """
    K = 3
    M = Ho * Wo
    Hp1, Wp1 = Ho + 2, Wo + 2

    def kernel(*refs):
        x_ref, w1_ref, s1_ref, b1_ref, w2_ref, s2_ref, b2_ref = refs[:7]
        idx = 7
        if has_proj:
            ws_ref, ss_ref, bs_ref = refs[idx:idx + 3]
            idx += 3
        o_ref = refs[idx]
        h1p_ref = refs[idx + 1]

        cdt = compute_dtype

        # Zero ONLY the halo border of the intermediate (O((Ho+Wo)*P) per step).  The
        # interior is fully overwritten for every image and the border is never written
        # anywhere else -- keep it that way.  (Per-step, not program_id==0-gated, so it
        # stays correct when the "parallel" batch axis is split across TensorCores.)
        zrow = jnp.zeros((1, Wp1, P), cdt)
        zcol = jnp.zeros((Hp1, 1, P), cdt)
        h1p_ref[0:1, :, :] = zrow
        h1p_ref[Hp1 - 1:Hp1, :, :] = zrow
        h1p_ref[:, 0:1, :] = zcol
        h1p_ref[:, Wp1 - 1:Wp1, :] = zcol

        def conv1_acc(b):
            """conv1(x_b) as tap-accumulated matmuls -> (M, P) f32."""
            acc = jnp.zeros((M, P), jnp.float32)
            if stride == 1:
                for kh in range(K):
                    for kw in range(K):
                        t = kh * K + kw
                        v = x_ref[b, kh:kh + Ho, kw:kw + Wo, :]
                        v = v.reshape(M, Cin).astype(cdt)
                        acc = acc + jnp.dot(v, w1_ref[t * Cin:(t + 1) * Cin, :],
                                            preferred_element_type=jnp.float32)
            else:  # stride == 2: polyphase-in-channels input
                for kh in range(K):
                    q0, ph = kh // 2, kh % 2
                    r0 = kh * K * Cin
                    # taps kw=0,1 share the same u-slice -> one matmul of depth 2*Cin
                    v = x_ref[b, q0:q0 + Ho, ph, 0:Wo, :]
                    v = v.reshape(M, 2 * Cin).astype(cdt)
                    acc = acc + jnp.dot(v, w1_ref[r0:r0 + 2 * Cin, :],
                                        preferred_element_type=jnp.float32)
                    # tap kw=2: next u-slice, low channel half (lane offset 0 -> cheap)
                    v = x_ref[b, q0:q0 + Ho, ph, 1:1 + Wo, 0:Cin]
                    v = v.reshape(M, Cin).astype(cdt)
                    acc = acc + jnp.dot(v, w1_ref[r0 + 2 * Cin:r0 + 3 * Cin, :],
                                        preferred_element_type=jnp.float32)
            return acc

        def shortcut(b):
            """Shortcut term in f32: identity (plain add) or 1x1-conv projection + BN."""
            if stride == 1:
                xc = x_ref[b, 1:1 + Ho, 1:1 + Wo, :].reshape(M, Cin)
            else:  # original x[2i, 2j] == x_pad[2i+1, 2j+1]
                xc = x_ref[b, 0:Ho, 1, 0:Wo, Cin:2 * Cin].reshape(M, Cin)
            if not has_proj:
                # Identity: no MXU work, full-precision input even on the bf16 path.
                return xc.astype(jnp.float32)
            sc = jnp.dot(xc.astype(cdt), ws_ref[...],
                         preferred_element_type=jnp.float32)
            return sc * ss_ref[...] + bs_ref[...]

        # TODO(synk): switch this static unroll to lax.fori_loop if batch_block grows.
        for b in range(B):
            # conv1 + BN1 + ReLU (f32 epilogue); keep the intermediate in VMEM w/ halo.
            h1 = jnp.maximum(conv1_acc(b) * s1_ref[...] + b1_ref[...], 0.0)
            h1p_ref[1:1 + Ho, 1:1 + Wo, :] = h1.reshape(Ho, Wo, P).astype(cdt)

            # conv2: 9 tap-accumulated matmuls over shifted views of the VMEM h1.
            acc2 = jnp.zeros((M, P), jnp.float32)
            for kh in range(K):
                for kw in range(K):
                    t = kh * K + kw
                    v = h1p_ref[kh:kh + Ho, kw:kw + Wo, :].reshape(M, P)
                    acc2 = acc2 + jnp.dot(v, w2_ref[t * P:(t + 1) * P, :],
                                          preferred_element_type=jnp.float32)

            out = acc2 * s2_ref[...] + b2_ref[...] + shortcut(b)
            o_ref[b * M:(b + 1) * M, :] = jnp.maximum(out, 0.0).astype(o_ref.dtype)

    return kernel


# --------------------------------------------------------------------------- wrapper
def basic_block_forward(x_nchw, params, *, compute_dtype=jnp.float32, batch_block=None):
    """out = relu(bn2(conv2(relu(bn1(conv1(x))))) + shortcut(x)); NCHW in/out.

    Whole BasicBlock is one fused pallas_call.  compute_dtype=jnp.bfloat16 runs the
    matmuls MXU-native in bf16 (cast in-kernel; f32 accumulation and f32 epilogue).
    """
    # NCHW -> NHWC only to match the PyTorch interface; an NHWC pipeline skips this.
    x = jnp.transpose(x_nchw, (0, 2, 3, 1))
    N, H, W, Cin = x.shape
    stride = int(params["stride"])
    assert stride in (1, 2), "TODO(synk): general stride needs strided in-kernel loads"
    K, pad = 3, 1
    P = params["w1"].shape[-1]
    Ho = (H + 2 * pad - K) // stride + 1
    Wo = (W + 2 * pad - K) // stride + 1
    M = Ho * Wo
    has_proj = "ws" in params
    if not has_proj:
        assert Cin == P and stride == 1

    # Spatial zero-pad (one cheap pass).  For stride 2, round Hp/Wp up to even so the
    # polyphase-in-channels reshape below is a pure, copy-free reshape (no transpose,
    # no dtype pre-pass over the input).
    Hp, Wp = H + 2 * pad, W + 2 * pad
    if stride == 2:
        Hp += Hp % 2
        Wp += Wp % 2
    xpad = jnp.pad(x, ((0, 0), (pad, Hp - H - pad), (pad, Wp - W - pad), (0, 0)))

    if stride == 2:
        Hp2, Wp2 = Hp // 2, Wp // 2
        img_blk = (1, Hp2, 2, Wp2, 2 * Cin)
    else:
        img_blk = (1, Hp, Wp, Cin)

    # Batch blocking: fold B images into the matmul M dimension per grid step.
    if batch_block is None:
        B = _pick_batch_block(N, _padded_bytes(img_blk, xpad.dtype),
                              _padded_bytes((M, P), jnp.float32))
    else:
        B = int(batch_block)
    assert N % B == 0

    if stride == 2:
        # x_k[n, q, ph, u, pw*Cin + c] == x_pad[n, 2q+ph, 2u+pw, c]   (copy-free reshape)
        x_k = xpad.reshape(N, Hp2, 2, Wp2, 2 * Cin)
        x_spec = pl.BlockSpec((B,) + img_blk[1:], lambda n: (n, 0, 0, 0, 0))
    else:
        x_k = xpad
        x_spec = pl.BlockSpec((B,) + img_blk[1:], lambda n: (n, 0, 0, 0))

    # Weights (tap-major rows) and folded-BN affines; weights are tiny, cast once.
    w1k = params["w1"].reshape(K * K * Cin, P).astype(compute_dtype)
    w2k = params["w2"].reshape(K * K * P, P).astype(compute_dtype)
    s1, b1 = params["bn1"]
    s2, b2 = params["bn2"]
    args = [x_k, w1k, s1.reshape(1, P), b1.reshape(1, P),
            w2k, s2.reshape(1, P), b2.reshape(1, P)]
    vec_spec = pl.BlockSpec((1, P), lambda n: (0, 0))
    in_specs = [x_spec,
                pl.BlockSpec((K * K * Cin, P), lambda n: (0, 0)),
                vec_spec, vec_spec,
                pl.BlockSpec((K * K * P, P), lambda n: (0, 0)),
                vec_spec, vec_spec]
    if has_proj:
        ss, bs = params["bns"]
        args += [params["ws"].reshape(Cin, P).astype(compute_dtype),
                 ss.reshape(1, P), bs.reshape(1, P)]
        in_specs += [pl.BlockSpec((Cin, P), lambda n: (0, 0)), vec_spec, vec_spec]

    # Explicit VMEM budget: double-buffered input/output blocks + weights + scratch.
    vmem_est = (2 * B * _padded_bytes(img_blk, xpad.dtype)
                + 2 * _padded_bytes((B * M, P), jnp.float32)
                + _padded_bytes((K * K * Cin, P), compute_dtype)
                + _padded_bytes((K * K * P, P), compute_dtype)
                + _padded_bytes((Ho + 2, Wo + 2, P), compute_dtype)
                + (2 << 20))
    vmem_limit = int(min(max(vmem_est, 16 << 20), 64 << 20))

    kernel = _make_basic_block_kernel(
        stride=stride, Cin=Cin, P=P, Ho=Ho, Wo=Wo, B=B,
        has_proj=has_proj, compute_dtype=compute_dtype)

    out = pl.pallas_call(
        kernel,
        out_shape=jax.ShapeDtypeStruct((N * M, P), jnp.float32),
        grid=(N // B,),
        in_specs=in_specs,
        out_specs=pl.BlockSpec((B * M, P), lambda n: (n, 0)),
        scratch_shapes=[pltpu.VMEM((Ho + 2, Wo + 2, P), compute_dtype)],
        compiler_params=pltpu.CompilerParams(
            dimension_semantics=("parallel",),         # batch blocks across TCs (v7x)
            vmem_limit_bytes=vmem_limit),
    )(*args)

    # (N*Ho*Wo, P) row-major; back to NCHW only to match the PyTorch interface.
    return out.reshape(N, Ho, Wo, P).transpose(0, 3, 1, 2)


# --------------------------------------------------------------------------- params
def fold_bn(gamma, beta, mean, var, eps=1e-5):
    scale = gamma / jnp.sqrt(var + eps)
    return scale, beta - mean * scale


def init_basic_block(key, in_planes, planes, stride):
    ks = jax.random.split(key, 6)

    def bn_params(k):
        k1, k2, k3, k4 = jax.random.split(k, 4)
        gamma = jax.random.uniform(k1, (planes,), jnp.float32, 0.5, 1.5)
        beta = 0.1 * jax.random.normal(k2, (planes,), jnp.float32)
        mean = 0.1 * jax.random.normal(k3, (planes,), jnp.float32)
        var = jax.random.uniform(k4, (planes,), jnp.float32, 0.5, 1.5)
        return fold_bn(gamma, beta, mean, var)

    params = {
        "w1": 0.2 * jax.random.normal(ks[0], (3, 3, in_planes, planes), jnp.float32),
        "w2": 0.2 * jax.random.normal(ks[1], (3, 3, planes, planes), jnp.float32),
        "bn1": bn_params(ks[2]),
        "bn2": bn_params(ks[3]),
        "stride": stride,
    }
    if stride != 1 or in_planes != planes:    # expansion == 1
        params["ws"] = 0.2 * jax.random.normal(
            ks[4], (1, 1, in_planes, planes), jnp.float32)
        params["bns"] = bn_params(ks[5])
    return params


def basic_block_reference(x_nchw, params):
    """Pure-JAX reference (lax conv) for correctness checking."""
    x = jnp.transpose(x_nchw, (0, 2, 3, 1))
    stride = params["stride"]
    dn = ("NHWC", "HWIO", "NHWC")

    def conv(v, w, s, pad):
        return jax.lax.conv_general_dilated(
            v, w, (s, s), ((pad, pad), (pad, pad)), dimension_numbers=dn)

    s1, b1 = params["bn1"]
    s2, b2 = params["bn2"]
    out = jax.nn.relu(conv(x, params["w1"], stride, 1) * s1 + b1)
    out = conv(out, params["w2"], 1, 1) * s2 + b2
    if "ws" in params:
        ss, bs = params["bns"]
        sc = conv(x, params["ws"], stride, 0) * ss + bs
    else:
        sc = x
    out = jax.nn.relu(out + sc)
    return jnp.transpose(out, (0, 3, 1, 2))


# --------------------------------------------------------------------------- main
if __name__ == "__main__":
    key = jax.random.PRNGKey(0)
    kx, ka, kb = jax.random.split(key, 3)
    x = jax.random.normal(kx, (2, 4, 16, 16), jnp.float32)   # NCHW, like PyTorch

    # Block A: identity shortcut (stride=1, in_planes == planes).
    pa = init_basic_block(ka, in_planes=4, planes=4, stride=1)
    ra = basic_block_reference(x, pa)
    ya = jax.block_until_ready(basic_block_forward(x, pa))            # batch_block=1
    assert ya.shape == (2, 4, 16, 16)
    assert jnp.allclose(ya, ra, atol=1e-4, rtol=1e-4), float(jnp.max(jnp.abs(ya - ra)))
    ya2 = jax.block_until_ready(basic_block_forward(x, pa, batch_block=2))  # batched M
    assert jnp.allclose(ya2, ra, atol=1e-4, rtol=1e-4), float(jnp.max(jnp.abs(ya2 - ra)))

    # Block B: projection shortcut (stride=2, 4 -> 8 channels).
    pb = init_basic_block(kb, in_planes=4, planes=8, stride=2)
    rb = basic_block_reference(x, pb)
    yb = jax.block_until_ready(basic_block_forward(x, pb))
    assert yb.shape == (2, 8, 8, 8)
    assert jnp.allclose(yb, rb, atol=1e-4, rtol=1e-4), float(jnp.max(jnp.abs(yb - rb)))

    # bf16 matmul path (MXU-native); loose check vs the f32 reference.
    yb16 = jax.block_until_ready(
        basic_block_forward(x, pb, compute_dtype=jnp.bfloat16))
    assert yb16.shape == (2, 8, 8, 8)
    assert float(jnp.max(jnp.abs(yb16 - rb))) < 0.25

    print("KERNEL_OK")
</pallas_src>

<mosaic_0001>
module attributes {stable_mosaic.version = 11 : i64} {
  func.func @kernel(%arg0: i32, %arg1: memref<1x18x18x4xf32, #tpu.memory_space<vmem>>, %arg2: memref<36x4xf32, #tpu.memory_space<vmem>>, %arg3: memref<1x4xf32, #tpu.memory_space<vmem>>, %arg4: memref<1x4xf32, #tpu.memory_space<vmem>>, %arg5: memref<36x4xf32, #tpu.memory_space<vmem>>, %arg6: memref<1x4xf32, #tpu.memory_space<vmem>>, %arg7: memref<1x4xf32, #tpu.memory_space<vmem>>, %arg8: memref<256x4xf32, #tpu.memory_space<vmem>>, %arg9: memref<18x18x4xf32, #tpu.memory_space<vmem>>) attributes {dimension_semantics = [#tpu.dimension_semantics<parallel>], iteration_bounds = array<i64: 2>, scalar_prefetch = 0 : i64, scratch_operands = 1 : i64, tpu.core_type = #tpu.core_type<tc>, window_params = [{transform_indices = @transform_0, window_bounds = array<i64: 1, 18, 18, 4>}, {pipeline_mode = #tpu.pipeline_mode<synchronous>, transform_indices = @transform_1, window_bounds = array<i64: 36, 4>}, {pipeline_mode = #tpu.pipeline_mode<synchronous>, transform_indices = @transform_2, window_bounds = array<i64: 1, 4>}, {pipeline_mode = #tpu.pipeline_mode<synchronous>, transform_indices = @transform_3, window_bounds = array<i64: 1, 4>}, {pipeline_mode = #tpu.pipeline_mode<synchronous>, transform_indices = @transform_4, window_bounds = array<i64: 36, 4>}, {pipeline_mode = #tpu.pipeline_mode<synchronous>, transform_indices = @transform_5, window_bounds = array<i64: 1, 4>}, {pipeline_mode = #tpu.pipeline_mode<synchronous>, transform_indices = @transform_6, window_bounds = array<i64: 1, 4>}, {transform_indices = @transform_7, window_bounds = array<i64: 256, 4>}]} {
    %cst = arith.constant 0.000000e+00 : f32
    %0 = vector.broadcast %cst : f32 to vector<1x18x4xf32>
    %cst_0 = arith.constant 0.000000e+00 : f32
    %1 = vector.broadcast %cst_0 : f32 to vector<18x1x4xf32>
    %c0 = arith.constant 0 : index
    %c0_1 = arith.constant 0 : index
    %c0_2 = arith.constant 0 : index
    %2 = vector.load %arg9[%c0, %c0_1, %c0_2] : memref<18x18x4xf32, #tpu.memory_space<vmem>>, vector<1x18x4xf32>
    tpu.vector_store %arg9[%c0, %c0_1, %c0_2], %0 {strides = array<i32>} : memref<18x18x4xf32, #tpu.memory_space<vmem>>, vector<1x18x4xf32>,
    %c17 = arith.constant 17 : index
    %c0_3 = arith.constant 0 : index
    %c0_4 = arith.constant 0 : index
    %3 = vector.load %arg9[%c17, %c0_3, %c0_4] : memref<18x18x4xf32, #tpu.memory_space<vmem>>, vector<1x18x4xf32>
    tpu.vector_store %arg9[%c17, %c0_3, %c0_4], %0 {strides = array<i32>} : memref<18x18x4xf32, #tpu.memory_space<vmem>>, vector<1x18x4xf32>,
    %c0_5 = arith.constant 0 : index
    %c0_6 = arith.constant 0 : index
    %c0_7 = arith.constant 0 : index
    %4 = vector.load %arg9[%c0_5, %c0_6, %c0_7] : memref<18x18x4xf32, #tpu.memory_space<vmem>>, vector<18x1x4xf32>
    tpu.vector_store %arg9[%c0_5, %c0_6, %c0_7], %1 {strides = array<i32>} : memref<18x18x4xf32, #tpu.memory_space<vmem>>, vector<18x1x4xf32>,
    %c0_8 = arith.constant 0 : index
    %c17_9 = arith.constant 17 : index
    %c0_10 = arith.constant 0 : index
    %5 = vector.load %arg9[%c0_8, %c17_9, %c0_10] : memref<18x18x4xf32, #tpu.memory_space<vmem>>, vector<18x1x4xf32>
    tpu.vector_store %arg9[%c0_8, %c17_9, %c0_10], %1 {strides = array<i32>} : memref<18x18x4xf32, #tpu.memory_space<vmem>>, vector<18x1x4xf32>,
    %cst_11 = arith.constant 0.000000e+00 : f32
    %6 = vector.broadcast %cst_11 : f32 to vector<256x4xf32>
    %c0_12 = arith.constant 0 : index
    %c0_13 = arith.constant 0 : index
    %c0_14 = arith.constant 0 : index
    %c0_15 = arith.constant 0 : index
    %7 = vector.load %arg1[%c0_12, %c0_13, %c0_14, %c0_15] : memref<1x18x18x4xf32, #tpu.memory_space<vmem>>, vector<1x16x16x4xf32>
    %8 = vector.shape_cast %7 : vector<1x16x16x4xf32> to vector<16x16x4xf32>
    %9 = vector.shape_cast %8 : vector<16x16x4xf32> to vector<256x4xf32>
    %c0_16 = arith.constant 0 : index
    %c0_17 = arith.constant 0 : index
    %10 = vector.load %arg2[%c0_16, %c0_17] : memref<36x4xf32, #tpu.memory_space<vmem>>, vector<4x4xf32>
    %cst_18 = arith.constant dense<0.000000e+00> : vector<256x4xf32>
    %11 = tpu.matmul %9, %10, %cst_18 {dimension_numbers = #tpu.dot_dimension_numbers<[1], [0], [0], [1], [0, 0, 1, 1], [], []>} : vector<256x4xf32>, vector<4x4xf32>, vector<256x4xf32> -> vector<256x4xf32>
    %12 = arith.addf %6, %11 : vector<256x4xf32>
    %c0_19 = arith.constant 0 : index
    %c0_20 = arith.constant 0 : index
    %c1 = arith.constant 1 : index
    %c0_21 = arith.constant 0 : index
    %13 = vector.load %arg1[%c0_19, %c0_20, %c1, %c0_21] : memref<1x18x18x4xf32, #tpu.memory_space<vmem>>, vector<1x16x16x4xf32>
    %14 = vector.shape_cast %13 : vector<1x16x16x4xf32> to vector<16x16x4xf32>
    %15 = vector.shape_cast %14 : vector<16x16x4xf32> to vector<256x4xf32>
    %c4 = arith.constant 4 : index
    %c0_22 = arith.constant 0 : index
    %16 = vector.load %arg2[%c4, %c0_22] : memref<36x4xf32, #tpu.memory_space<vmem>>, vector<4x4xf32>
    %cst_23 = arith.constant dense<0.000000e+00> : vector<256x4xf32>
    %17 = tpu.matmul %15, %16, %cst_23 {dimension_numbers = #tpu.dot_dimension_numbers<[1], [0], [0], [1], [0, 0, 1, 1], [], []>} : vector<256x4xf32>, vector<4x4xf32>, vector<256x4xf32> -> vector<256x4xf32>
    %18 = arith.addf %12, %17 : vector<256x4xf32>
    %c0_24 = arith.constant 0 : index
    %c0_25 = arith.constant 0 : index
    %c2 = arith.constant 2 : index
    %c0_26 = arith.constant 0 : index
    %19 = vector.load %arg1[%c0_24, %c0_25, %c2, %c0_26] : memref<1x18x18x4xf32, #tpu.memory_space<vmem>>, vector<1x16x16x4xf32>
    %20 = vector.shape_cast %19 : vector<1x16x16x4xf32> to vector<16x16x4xf32>
    %21 = vector.shape_cast %20 : vector<16x16x4xf32> to vector<256x4xf32>
    %c8 = arith.constant 8 : index
    %c0_27 = arith.constant 0 : index
    %22 = vector.load %arg2[%c8, %c0_27] : memref<36x4xf32, #tpu.memory_space<vmem>>, vector<4x4xf32>
    %cst_28 = arith.constant dense<0.000000e+00> : vector<256x4xf32>
    %23 = tpu.matmul %21, %22, %cst_28 {dimension_numbers = #tpu.dot_dimension_numbers<[1], [0], [0], [1], [0, 0, 1, 1], [], []>} : vector<256x4xf32>, vector<4x4xf32>, vector<256x4xf32> -> vector<256x4xf32>
    %24 = arith.addf %18, %23 : vector<256x4xf32>
    %c0_29 = arith.constant 0 : index
    %c1_30 = arith.constant 1 : index
    %c0_31 = arith.constant 0 : index
    %c0_32 = arith.constant 0 : index
    %25 = vector.load %arg1[%c0_29, %c1_30, %c0_31, %c0_32] : memref<1x18x18x4xf32, #tpu.memory_space<vmem>>, vector<1x16x16x4xf32>
    %26 = vector.shape_cast %25 : vector<1x16x16x4xf32> to vector<16x16x4xf32>
    %27 = vector.shape_cast %26 : vector<16x16x4xf32> to vector<256x4xf32>
    %c12 = arith.constant 12 : index
    %c0_33 = arith.constant 0 : index
    %28 = vector.load %arg2[%c12, %c0_33] : memref<36x4xf32, #tpu.memory_space<vmem>>, vector<4x4xf32>
    %cst_34 = arith.constant dense<0.000000e+00> : vector<256x4xf32>
    %29 = tpu.matmul %27, %28, %cst_34 {dimension_numbers = #tpu.dot_dimension_numbers<[1], [0], [0], [1], [0, 0, 1, 1], [], []>} : vector<256x4xf32>, vector<4x4xf32>, vector<256x4xf32> -> vector<256x4xf32>
    %30 = arith.addf %24, %29 : vector<256x4xf32>
    %c0_35 = arith.constant 0 : index
    %c1_36 = arith.constant 1 : index
    %c1_37 = arith.constant 1 : index
    %c0_38 = arith.constant 0 : index
    %31 = vector.load %arg1[%c0_35, %c1_36, %c1_37, %c0_38] : memref<1x18x18x4xf32, #tpu.memory_space<vmem>>, vector<1x16x16x4xf32>
    %32 = vector.shape_cast %31 : vector<1x16x16x4xf32> to vector<16x16x4xf32>
    %33 = vector.shape_cast %32 : vector<16x16x4xf32> to vector<256x4xf32>
    %c16 = arith.constant 16 : index
    %c0_39 = arith.constant 0 : index
    %34 = vector.load %arg2[%c16, %c0_39] : memref<36x4xf32, #tpu.memory_space<vmem>>, vector<4x4xf32>
    %cst_40 = arith.constant dense<0.000000e+00> : vector<256x4xf32>
    %35 = tpu.matmul %33, %34, %cst_40 {dimension_numbers = #tpu.dot_dimension_numbers<[1], [0], [0], [1], [0, 0, 1, 1], [], []>} : vector<256x4xf32>, vector<4x4xf32>, vector<256x4xf32> -> vector<256x4xf32>
    %36 = arith.addf %30, %35 : vector<256x4xf32>
    %c0_41 = arith.constant 0 : index
    %c1_42 = arith.constant 1 : index
    %c2_43 = arith.constant 2 : index
    %c0_44 = arith.constant 0 : index
    %37 = vector.load %arg1[%c0_41, %c1_42, %c2_43, %c0_44] : memref<1x18x18x4xf32, #tpu.memory_space<vmem>>, vector<1x16x16x4xf32>
    %38 = vector.shape_cast %37 : vector<1x16x16x4xf32> to vector<16x16x4xf32>
    %39 = vector.shape_cast %38 : vector<16x16x4xf32> to vector<256x4xf32>
    %c20 = arith.constant 20 : index
    %c0_45 = arith.constant 0 : index
    %40 = vector.load %arg2[%c20, %c0_45] : memref<36x4xf32, #tpu.memory_space<vmem>>, vector<4x4xf32>
    %cst_46 = arith.constant dense<0.000000e+00> : vector<256x4xf32>
    %41 = tpu.matmul %39, %40, %cst_46 {dimension_numbers = #tpu.dot_dimension_numbers<[1], [0], [0], [1], [0, 0, 1, 1], [], []>} : vector<256x4xf32>, vector<4x4xf32>, vector<256x4xf32> -> vector<256x4xf32>
    %42 = arith.addf %36, %41 : vector<256x4xf32>
    %c0_47 = arith.constant 0 : index
    %c2_48 = arith.constant 2 : index
    %c0_49 = arith.constant 0 : index
    %c0_50 = arith.constant 0 : index
    %43 = vector.load %arg1[%c0_47, %c2_48, %c0_49, %c0_50] : memref<1x18x18x4xf32, #tpu.memory_space<vmem>>, vector<1x16x16x4xf32>
    %44 = vector.shape_cast %43 : vector<1x16x16x4xf32> to vector<16x16x4xf32>
    %45 = vector.shape_cast %44 : vector<16x16x4xf32> to vector<256x4xf32>
    %c24 = arith.constant 24 : index
    %c0_51 = arith.constant 0 : index
    %46 = vector.load %arg2[%c24, %c0_51] : memref<36x4xf32, #tpu.memory_space<vmem>>, vector<4x4xf32>
    %cst_52 = arith.constant dense<0.000000e+00> : vector<256x4xf32>
    %47 = tpu.matmul %45, %46, %cst_52 {dimension_numbers = #tpu.dot_dimension_numbers<[1], [0], [0], [1], [0, 0, 1, 1], [], []>} : vector<256x4xf32>, vector<4x4xf32>, vector<256x4xf32> -> vector<256x4xf32>
    %48 = arith.addf %42, %47 : vector<256x4xf32>
    %c0_53 = arith.constant 0 : index
    %c2_54 = arith.constant 2 : index
    %c1_55 = arith.constant 1 : index
    %c0_56 = arith.constant 0 : index
    %49 = vector.load %arg1[%c0_53, %c2_54, %c1_55, %c0_56] : memref<1x18x18x4xf32, #tpu.memory_space<vmem>>, vector<1x16x16x4xf32>
    %50 = vector.shape_cast %49 : vector<1x16x16x4xf32> to vector<16x16x4xf32>
    %51 = vector.shape_cast %50 : vector<16x16x4xf32> to vector<256x4xf32>
    %c28 = arith.constant 28 : index
    %c0_57 = arith.constant 0 : index
    %52 = vector.load %arg2[%c28, %c0_57] : memref<36x4xf32, #tpu.memory_space<vmem>>, vector<4x4xf32>
    %cst_58 = arith.constant dense<0.000000e+00> : vector<256x4xf32>
    %53 = tpu.matmul %51, %52, %cst_58 {dimension_numbers = #tpu.dot_dimension_numbers<[1], [0], [0], [1], [0, 0, 1, 1], [], []>} : vector<256x4xf32>, vector<4x4xf32>, vector<256x4xf32> -> vector<256x4xf32>
    %54 = arith.addf %48, %53 : vector<256x4xf32>
    %c0_59 = arith.constant 0 : index
    %c2_60 = arith.constant 2 : index
    %c2_61 = arith.constant 2 : index
    %c0_62 = arith.constant 0 : index
    %55 = vector.load %arg1[%c0_59, %c2_60, %c2_61, %c0_62] : memref<1x18x18x4xf32, #tpu.memory_space<vmem>>, vector<1x16x16x4xf32>
    %56 = vector.shape_cast %55 : vector<1x16x16x4xf32> to vector<16x16x4xf32>
    %57 = vector.shape_cast %56 : vector<16x16x4xf32> to vector<256x4xf32>
    %c32 = arith.constant 32 : index
    %c0_63 = arith.constant 0 : index
    %58 = vector.load %arg2[%c32, %c0_63] : memref<36x4xf32, #tpu.memory_space<vmem>>, vector<4x4xf32>
    %cst_64 = arith.constant dense<0.000000e+00> : vector<256x4xf32>
    %59 = tpu.matmul %57, %58, %cst_64 {dimension_numbers = #tpu.dot_dimension_numbers<[1], [0], [0], [1], [0, 0, 1, 1], [], []>} : vector<256x4xf32>, vector<4x4xf32>, vector<256x4xf32> -> vector<256x4xf32>
    %60 = arith.addf %54, %59 : vector<256x4xf32>
    %c0_65 = arith.constant 0 : index
    %c0_66 = arith.constant 0 : index
    %61 = vector.load %arg3[%c0_65, %c0_66] : memref<1x4xf32, #tpu.memory_space<vmem>>, vector<1x4xf32>
    %62 = vector.broadcast %61 : vector<1x4xf32> to vector<256x4xf32>
    %63 = arith.mulf %60, %62 : vector<256x4xf32>
    %c0_67 = arith.constant 0 : index
    %c0_68 = arith.constant 0 : index
    %64 = vector.load %arg4[%c0_67, %c0_68] : memref<1x4xf32, #tpu.memory_space<vmem>>, vector<1x4xf32>
    %65 = vector.broadcast %64 : vector<1x4xf32> to vector<256x4xf32>
    %66 = arith.addf %63, %65 : vector<256x4xf32>
    %cst_69 = arith.constant 0.000000e+00 : f32
    %67 = vector.broadcast %cst_69 : f32 to vector<256x4xf32>
    %68 = arith.maximumf %66, %67 : vector<256x4xf32>
    %69 = vector.shape_cast %68 : vector<256x4xf32> to vector<16x16x4xf32>
    %c1_70 = arith.constant 1 : index
    %c1_71 = arith.constant 1 : index
    %c0_72 = arith.constant 0 : index
    %70 = vector.load %arg9[%c1_70, %c1_71, %c0_72] : memref<18x18x4xf32, #tpu.memory_space<vmem>>, vector<16x16x4xf32>
    tpu.vector_store %arg9[%c1_70, %c1_71, %c0_72], %69 {strides = array<i32>} : memref<18x18x4xf32, #tpu.memory_space<vmem>>, vector<16x16x4xf32>,
    %cst_73 = arith.constant 0.000000e+00 : f32
    %71 = vector.broadcast %cst_73 : f32 to vector<256x4xf32>
    %c0_74 = arith.constant 0 : index
    %c0_75 = arith.constant 0 : index
    %c0_76 = arith.constant 0 : index
    %72 = vector.load %arg9[%c0_74, %c0_75, %c0_76] : memref<18x18x4xf32, #tpu.memory_space<vmem>>, vector<16x16x4xf32>
    %73 = vector.shape_cast %72 : vector<16x16x4xf32> to vector<256x4xf32>
    %c0_77 = arith.constant 0 : index
    %c0_78 = arith.constant 0 : index
    %74 = vector.load %arg5[%c0_77, %c0_78] : memref<36x4xf32, #tpu.memory_space<vmem>>, vector<4x4xf32>
    %cst_79 = arith.constant dense<0.000000e+00> : vector<256x4xf32>
    %75 = tpu.matmul %73, %74, %cst_79 {dimension_numbers = #tpu.dot_dimension_numbers<[1], [0], [0], [1], [0, 0, 1, 1], [], []>} : vector<256x4xf32>, vector<4x4xf32>, vector<256x4xf32> -> vector<256x4xf32>
    %76 = arith.addf %71, %75 : vector<256x4xf32>
    %c0_80 = arith.constant 0 : index
    %c1_81 = arith.constant 1 : index
    %c0_82 = arith.constant 0 : index
    %77 = vector.load %arg9[%c0_80, %c1_81, %c0_82] : memref<18x18x4xf32, #tpu.memory_space<vmem>>, vector<16x16x4xf32>
    %78 = vector.shape_cast %77 : vector<16x16x4xf32> to vector<256x4xf32>
    %c4_83 = arith.constant 4 : index
    %c0_84 = arith.constant 0 : index
    %79 = vector.load %arg5[%c4_83, %c0_84] : memref<36x4xf32, #tpu.memory_space<vmem>>, vector<4x4xf32>
    %cst_85 = arith.constant dense<0.000000e+00> : vector<256x4xf32>
    %80 = tpu.matmul %78, %79, %cst_85 {dimension_numbers = #tpu.dot_dimension_numbers<[1], [0], [0], [1], [0, 0, 1, 1], [], []>} : vector<256x4xf32>, vector<4x4xf32>, vector<256x4xf32> -> vector<256x4xf32>
    %81 = arith.addf %76, %80 : vector<256x4xf32>
    %c0_86 = arith.constant 0 : index
    %c2_87 = arith.constant 2 : index
    %c0_88 = arith.constant 0 : index
    %82 = vector.load %arg9[%c0_86, %c2_87, %c0_88] : memref<18x18x4xf32, #tpu.memory_space<vmem>>, vector<16x16x4xf32>
    %83 = vector.shape_cast %82 : vector<16x16x4xf32> to vector<256x4xf32>
    %c8_89 = arith.constant 8 : index
    %c0_90 = arith.constant 0 : index
    %84 = vector.load %arg5[%c8_89, %c0_90] : memref<36x4xf32, #tpu.memory_space<vmem>>, vector<4x4xf32>
    %cst_91 = arith.constant dense<0.000000e+00> : vector<256x4xf32>
    %85 = tpu.matmul %83, %84, %cst_91 {dimension_numbers = #tpu.dot_dimension_numbers<[1], [0], [0], [1], [0, 0, 1, 1], [], []>} : vector<256x4xf32>, vector<4x4xf32>, vector<256x4xf32> -> vector<256x4xf32>
    %86 = arith.addf %81, %85 : vector<256x4xf32>
    %c1_92 = arith.constant 1 : index
    %c0_93 = arith.constant 0 : index
    %c0_94 = arith.constant 0 : index
    %87 = vector.load %arg9[%c1_92, %c0_93, %c0_94] : memref<18x18x4xf32, #tpu.memory_space<vmem>>, vector<16x16x4xf32>
    %88 = vector.shape_cast %87 : vector<16x16x4xf32> to vector<256x4xf32>
    %c12_95 = arith.constant 12 : index
    %c0_96 = arith.constant 0 : index
    %89 = vector.load %arg5[%c12_95, %c0_96] : memref<36x4xf32, #tpu.memory_space<vmem>>, vector<4x4xf32>
    %cst_97 = arith.constant dense<0.000000e+00> : vector<256x4xf32>
    %90 = tpu.matmul %88, %89, %cst_97 {dimension_numbers = #tpu.dot_dimension_numbers<[1], [0], [0], [1], [0, 0, 1, 1], [], []>} : vector<256x4xf32>, vector<4x4xf32>, vector<256x4xf32> -> vector<256x4xf32>
    %91 = arith.addf %86, %90 : vector<256x4xf32>
    %c1_98 = arith.constant 1 : index
    %c1_99 = arith.constant 1 : index
    %c0_100 = arith.constant 0 : index
    %92 = vector.load %arg9[%c1_98, %c1_99, %c0_100] : memref<18x18x4xf32, #tpu.memory_space<vmem>>, vector<16x16x4xf32>
    %93 = vector.shape_cast %92 : vector<16x16x4xf32> to vector<256x4xf32>
    %c16_101 = arith.constant 16 : index
    %c0_102 = arith.constant 0 : index
    %94 = vector.load %arg5[%c16_101, %c0_102] : memref<36x4xf32, #tpu.memory_space<vmem>>, vector<4x4xf32>
    %cst_103 = arith.constant dense<0.000000e+00> : vector<256x4xf32>
    %95 = tpu.matmul %93, %94, %cst_103 {dimension_numbers = #tpu.dot_dimension_numbers<[1], [0], [0], [1], [0, 0, 1, 1], [], []>} : vector<256x4xf32>, vector<4x4xf32>, vector<256x4xf32> -> vector<256x4xf32>
    %96 = arith.addf %91, %95 : vector<256x4xf32>
    %c1_104 = arith.constant 1 : index
    %c2_105 = arith.constant 2 : index
    %c0_106 = arith.constant 0 : index
    %97 = vector.load %arg9[%c1_104, %c2_105, %c0_106] : memref<18x18x4xf32, #tpu.memory_space<vmem>>, vector<16x16x4xf32>
    %98 = vector.shape_cast %97 : vector<16x16x4xf32> to vector<256x4xf32>
    %c20_107 = arith.constant 20 : index
    %c0_108 = arith.constant 0 : index
    %99 = vector.load %arg5[%c20_107, %c0_108] : memref<36x4xf32, #tpu.memory_space<vmem>>, vector<4x4xf32>
    %cst_109 = arith.constant dense<0.000000e+00> : vector<256x4xf32>
    %100 = tpu.matmul %98, %99, %cst_109 {dimension_numbers = #tpu.dot_dimension_numbers<[1], [0], [0], [1], [0, 0, 1, 1], [], []>} : vector<256x4xf32>, vector<4x4xf32>, vector<256x4xf32> -> vector<256x4xf32>
    %101 = arith.addf %96, %100 : vector<256x4xf32>
    %c2_110 = arith.constant 2 : index
    %c0_111 = arith.constant 0 : index
    %c0_112 = arith.constant 0 : index
    %102 = vector.load %arg9[%c2_110, %c0_111, %c0_112] : memref<18x18x4xf32, #tpu.memory_space<vmem>>, vector<16x16x4xf32>
    %103 = vector.shape_cast %102 : vector<16x16x4xf32> to vector<256x4xf32>
    %c24_113 = arith.constant 24 : index
    %c0_114 = arith.constant 0 : index
    %104 = vector.load %arg5[%c24_113, %c0_114] : memref<36x4xf32, #tpu.memory_space<vmem>>, vector<4x4xf32>
    %cst_115 = arith.constant dense<0.000000e+00> : vector<256x4xf32>
    %105 = tpu.matmul %103, %104, %cst_115 {dimension_numbers = #tpu.dot_dimension_numbers<[1], [0], [0], [1], [0, 0, 1, 1], [], []>} : vector<256x4xf32>, vector<4x4xf32>, vector<256x4xf32> -> vector<256x4xf32>
    %106 = arith.addf %101, %105 : vector<256x4xf32>
    %c2_116 = arith.constant 2 : index
    %c1_117 = arith.constant 1 : index
    %c0_118 = arith.constant 0 : index
    %107 = vector.load %arg9[%c2_116, %c1_117, %c0_118] : memref<18x18x4xf32, #tpu.memory_space<vmem>>, vector<16x16x4xf32>
    %108 = vector.shape_cast %107 : vector<16x16x4xf32> to vector<256x4xf32>
    %c28_119 = arith.constant 28 : index
    %c0_120 = arith.constant 0 : index
    %109 = vector.load %arg5[%c28_119, %c0_120] : memref<36x4xf32, #tpu.memory_space<vmem>>, vector<4x4xf32>
    %cst_121 = arith.constant dense<0.000000e+00> : vector<256x4xf32>
    %110 = tpu.matmul %108, %109, %cst_121 {dimension_numbers = #tpu.dot_dimension_numbers<[1], [0], [0], [1], [0, 0, 1, 1], [], []>} : vector<256x4xf32>, vector<4x4xf32>, vector<256x4xf32> -> vector<256x4xf32>
    %111 = arith.addf %106, %110 : vector<256x4xf32>
    %c2_122 = arith.constant 2 : index
    %c2_123 = arith.constant 2 : index
    %c0_124 = arith.constant 0 : index
    %112 = vector.load %arg9[%c2_122, %c2_123, %c0_124] : memref<18x18x4xf32, #tpu.memory_space<vmem>>, vector<16x16x4xf32>
    %113 = vector.shape_cast %112 : vector<16x16x4xf32> to vector<256x4xf32>
    %c32_125 = arith.constant 32 : index
    %c0_126 = arith.constant 0 : index
    %114 = vector.load %arg5[%c32_125, %c0_126] : memref<36x4xf32, #tpu.memory_space<vmem>>, vector<4x4xf32>
    %cst_127 = arith.constant dense<0.000000e+00> : vector<256x4xf32>
    %115 = tpu.matmul %113, %114, %cst_127 {dimension_numbers = #tpu.dot_dimension_numbers<[1], [0], [0], [1], [0, 0, 1, 1], [], []>} : vector<256x4xf32>, vector<4x4xf32>, vector<256x4xf32> -> vector<256x4xf32>
    %116 = arith.addf %111, %115 : vector<256x4xf32>
    %c0_128 = arith.constant 0 : index
    %c0_129 = arith.constant 0 : index
    %117 = vector.load %arg6[%c0_128, %c0_129] : memref<1x4xf32, #tpu.memory_space<vmem>>, vector<1x4xf32>
    %118 = vector.broadcast %117 : vector<1x4xf32> to vector<256x4xf32>
    %119 = arith.mulf %116, %118 : vector<256x4xf32>
    %c0_130 = arith.constant 0 : index
    %c0_131 = arith.constant 0 : index
    %120 = vector.load %arg7[%c0_130, %c0_131] : memref<1x4xf32, #tpu.memory_space<vmem>>, vector<1x4xf32>
    %121 = vector.broadcast %120 : vector<1x4xf32> to vector<256x4xf32>
    %122 = arith.addf %119, %121 : vector<256x4xf32>
    %c0_132 = arith.constant 0 : index
    %c1_133 = arith.constant 1 : index
    %c1_134 = arith.constant 1 : index
    %c0_135 = arith.constant 0 : index
    %123 = vector.load %arg1[%c0_132, %c1_133, %c1_134, %c0_135] : memref<1x18x18x4xf32, #tpu.memory_space<vmem>>, vector<1x16x16x4xf32>
    %124 = vector.shape_cast %123 : vector<1x16x16x4xf32> to vector<16x16x4xf32>
    %125 = vector.shape_cast %124 : vector<16x16x4xf32> to vector<256x4xf32>
    %126 = arith.addf %122, %125 : vector<256x4xf32>
    %cst_136 = arith.constant 0.000000e+00 : f32
    %127 = vector.broadcast %cst_136 : f32 to vector<256x4xf32>
    %128 = arith.maximumf %126, %127 : vector<256x4xf32>
    %c0_137 = arith.constant 0 : index
    %c0_138 = arith.constant 0 : index
    %129 = vector.load %arg8[%c0_137, %c0_138] : memref<256x4xf32, #tpu.memory_space<vmem>>, vector<256x4xf32>
    tpu.vector_store %arg8[%c0_137, %c0_138], %128 {strides = array<i32>} : memref<256x4xf32, #tpu.memory_space<vmem>>, vector<256x4xf32>,
    return
  }
  func.func @transform_0(%arg0: i32) -> (i32, i32, i32, i32) {
    %c0_i32 = arith.constant 0 : i32
    %c0_i32_0 = arith.constant 0 : i32
    %c0_i32_1 = arith.constant 0 : i32
    %c0_i32_2 = arith.constant 0 : i32
    return %arg0, %c0_i32, %c0_i32_0, %c0_i32_1 : i32, i32, i32, i32
  }
  func.func @transform_1(%arg0: i32) -> (i32, i32) {
    %c0_i32 = arith.constant 0 : i32
    %c0_i32_0 = arith.constant 0 : i32
    %c0_i32_1 = arith.constant 0 : i32
    return %c0_i32, %c0_i32_0 : i32, i32
  }
  func.func @transform_2(%arg0: i32) -> (i32, i32) {
    %c0_i32 = arith.constant 0 : i32
    %c0_i32_0 = arith.constant 0 : i32
    %c0_i32_1 = arith.constant 0 : i32
    return %c0_i32, %c0_i32_0 : i32, i32
  }
  func.func @transform_3(%arg0: i32) -> (i32, i32) {
    %c0_i32 = arith.constant 0 : i32
    %c0_i32_0 = arith.constant 0 : i32
    %c0_i32_1 = arith.constant 0 : i32
    return %c0_i32, %c0_i32_0 : i32, i32
  }
  func.func @transform_4(%arg0: i32) -> (i32, i32) {
    %c0_i32 = arith.constant 0 : i32
    %c0_i32_0 = arith.constant 0 : i32
    %c0_i32_1 = arith.constant 0 : i32
    return %c0_i32, %c0_i32_0 : i32, i32
  }
  func.func @transform_5(%arg0: i32) -> (i32, i32) {
    %c0_i32 = arith.constant 0 : i32
    %c0_i32_0 = arith.constant 0 : i32
    %c0_i32_1 = arith.constant 0 : i32
    return %c0_i32, %c0_i32_0 : i32, i32
  }
  func.func @transform_6(%arg0: i32) -> (i32, i32) {
    %c0_i32 = arith.constant 0 : i32
    %c0_i32_0 = arith.constant 0 : i32
    %c0_i32_1 = arith.constant 0 : i32
    return %c0_i32, %c0_i32_0 : i32, i32
  }
  func.func @transform_7(%arg0: i32) -> (i32, i32) {
    %c0_i32 = arith.constant 0 : i32
    %c0_i32_0 = arith.constant 0 : i32
    return %arg0, %c0_i32 : i32, i32
  }
}

</mosaic_0001>

<bundles_post_ra>
// kernel: tpu_custom_call.1
= control target key start
LH: loop header
LB: loop body
LE: loop exit
PB: predicated region body
PF: predicated region fallthrough
CT: control target
= control target key end

     0   :  { %s9995_s24 = smov 0   ;;  %s13302_s0 = inlined_call_operand.vmem [shape: f32[2,18,18,4], index: 0, kind: input, shape index: {}]   ;;  %s13303_s1 = inlined_call_operand.vmem [shape: f32[36,4], index: 1, kind: input, shape index: {}]   ;;  %s13304_s2 = inlined_call_operand.vmem [shape: f32[1,4], index: 2, kind: input, shape index: {}]   ;;  %s13305_s3 = inlined_call_operand.vmem [shape: f32[1,4], index: 3, kind: input, shape index: {}]   ;;  %s13306_s4 = inlined_call_operand.vmem [shape: f32[36,4], index: 4, kind: input, shape index: {}]   ;;  %s13307_s5 = inlined_call_operand.vmem [shape: f32[1,4], index: 5, kind: input, shape index: {}]   ;;  %s13308_s6 = inlined_call_operand.vmem [shape: f32[1,4], index: 6, kind: input, shape index: {}]   ;;  %s13309_s7 = inlined_call_operand.vmem [shape: f32[512,4], index: 7, kind: output, shape index: {}]  }
   0x1 LB: > { %s10001_s25 = sadd.s32 4294967295, %s9952_s24   ;;  %p7613_p0 = scmp.ge.s32.totalorder %s9952_s24, 1  ;;  %s9952_s24 = sphi %s9995_s24, %s17_s24  }
   0x2   : > { %p237_p1 = scmp.lt.s32.totalorder %s9952_s24, 3 }
   0x4   : > { %p238_p2 = pnand %p7613_p0, %p237_p1 }
   0x6   : > { %241 = sbr.rel (%p238_p2) target bundleno = 1016 (0x3f8), region = 48 }
   0xb   : > { %v391_v0 = vld [vmem:[%s13303_s1 + $0x4] sm:$0xf]  ;;  %vm488_vm0 = vcmask 1043456   ;;  %v358_v1 = vld [vmem:[%s13303_s1] sm:$0xf]  ;;  %p269_p3 = scmp.lt.s32.totalorder %s10001_s25, 1 }
   0xc   : > { %9035 = vmatprep.subr.msk.mxu0 %vm488_vm0, %v391_v0  ;;  %9085 = vmatprep.subr.msk.mxu1 %vm488_vm0, %v358_v1  ;;  %v1073_v2 = vld [vmem:[%s13303_s1 + $0x8] sm:$0xf]  ;;  %v1463_v3 = vld [vmem:[%s13303_s1 + $0xc] sm:$0xf]  ;;  %vm280_vm1 = vcmask 31744   ;;  %vm289_vm2 = vcmask 24576  }
   0xd   : > { %9036 = vmatpush3.msk.msra.mxu0 %vm488_vm0, %v391_v0  ;;  %s270_s11 = scalar_select %p269_p3, %s10001_s25, 1  ;;  %9086 = vmatpush3.msk.msra.mxu1 %vm488_vm0, %v358_v1  ;;  %v10047_v10 = vld [vmem:[%s13303_s1 + $0x10] sm:$0xf]  ;;  %v10052_v11 = vld [vmem:[%s13303_s1 + $0x14] sm:$0xf]  ;;  %vm283_vm3 = vcmask 25600  }
   0xe   : > { %9135 = vmatprep.subr.msk.mxu0 %vm488_vm0, %v1073_v2  ;;  %9185 = vmatprep.subr.msk.mxu1 %vm488_vm0, %v1463_v3  ;;  %s7615_s9 = sshll.u32 %s10001_s25, 5 }
   0xf   : > { %s9935_s12 = smul.u32 432, %s270_s11  ;;  %p275_p4 = scmp.lt.s32.totalorder %s7615_s9, 63 }
  0x11   : > { %s10028_s15 = scalar_lea.vmem %s13302_s0, %s9935_s12  ;;  %s13803_s9 = smov (!%p275_p4, %s7615_s9), 63 }
  0x12   : > { %v359_v4 = vld [vmem:[%s10028_s15 + $0x1] sm:$0xff]  ;;  %v360_v6 = vld [vmem:[%s10028_s15 + $0x9] sm:$0xff]  ;;  %v10037_v8 = vld [vmem:[%s10028_s15 + $0x19] sm:$0xff]  ;;  %s7616_s13 = sshll.u32 %s13803_s9, 3 }
  0x13   : > { %v326_v5 = vld [vmem:[%s10028_s15] sm:$0xff]  ;;  %9037 = vmatprep.mubr.msk.f32.mxu0 %vm280_vm1, %v359_v4  ;;  %v327_v7 = vld [vmem:[%s10028_s15 + $0x8] sm:$0xff]  ;;  %v10040_v9 = vld [vmem:[%s10028_s15 + $0x18] sm:$0xff]  ;;  %s13037_s17 = scalar_lea.vmem %s13309_s7, %s7616_s13 }
  0x14   : > { %9087 = vmatprep.mubr.msk.f32.mxu1 %vm280_vm1, %v326_v5  ;;  %9038 = vmatmul.mubr.msk.f32.vlgmr.msra.gmra.mxu0 %vm280_vm1, %v360_v6  ;;  %v10058_v12 = vld [vmem:[%s10028_s15 + $0x21] sm:$0xff]  ;;  %v10066_v14 = vld [vmem:[%s10028_s15 + $0x31] sm:$0xff]  ;;  %v10085_v16 = vld [vmem:[%s10028_s15 + $0x39] sm:$0xff] }
  0x15   : > { %9088 = vmatmul.mubr.msk.f32.vlgmr.msra.gmra.mxu1 %vm280_vm1, %v327_v7  ;;  %9136 = vmatpush3.msk.msra.mxu0 %vm488_vm0, %v1073_v2  ;;  %v10061_v13 = vld [vmem:[%s10028_s15 + $0x20] sm:$0xff]  ;;  %v10069_v15 = vld [vmem:[%s10028_s15 + $0x30] sm:$0xff]  ;;  %v10088_v17 = vld [vmem:[%s10028_s15 + $0x38] sm:$0xff] }
  0x16   : > { %9040 = vmatprep.mubr.msk.f32.mxu0 %vm280_vm1, %v10037_v8  ;;  %9090 = vmatprep.mubr.msk.f32.mxu1 %vm280_vm1, %v10040_v9  ;;  %13374 = vst [vmem:[#allocation3_spill] sm:$0xff] %v10069_v15  ;;  %13375 = vst [vmem:[#allocation4_spill] sm:$0xff] %v10088_v17  ;;  %v10091_v18 = vld [vmem:[%s10028_s15 + $0x49] sm:$0xff]  ;;  %v10105_v20 = vld [vmem:[%s10028_s15 + $0x51] sm:$0xff] }
  0x17   : > { %9186 = vmatpush3.msk.msra.mxu1 %vm488_vm0, %v1463_v3  ;;  %9235 = vmatprep.subr.msk.mxu0 %vm488_vm0, %v10047_v10  ;;  %v10094_v19 = vld [vmem:[%s10028_s15 + $0x48] sm:$0xff]  ;;  %v10108_v21 = vld [vmem:[%s10028_s15 + $0x50] sm:$0xff]  ;;  %v10114_v23 = vld [vmem:[%s10028_s15 + $0x60] sm:$0xff] }
  0x18   : > { %9285 = vmatprep.subr.msk.mxu1 %vm488_vm0, %v10052_v11  ;;  %9041 = vmatmul.mubr.msk.f32.gmra.mxu0 %vm280_vm1, %v10058_v12  ;;  %13376 = vst [vmem:[#allocation5_spill] sm:$0xff] %v10094_v19  ;;  %13377 = vst [vmem:[#allocation6_spill] sm:$0xff] %v10108_v21  ;;  %v10111_v22 = vld [vmem:[%s10028_s15 + $0x61] sm:$0xff]  ;;  %v10125_v24 = vld [vmem:[%s10028_s15 + $0x69] sm:$0xff] }
  0x19   : > { %9091 = vmatmul.mubr.msk.f32.gmra.mxu1 %vm280_vm1, %v10061_v13  ;;  %9043 = vmatprep.mubr.msk.f32.mxu0 %vm280_vm1, %v10066_v14  ;;  %13378 = vst [vmem:[#allocation7_spill] sm:$0xff] %v10114_v23  ;;  %v10128_v25 = vld [vmem:[%s10028_s15 + $0x68] sm:$0xff]  ;;  %v10131_v26 = vld [vmem:[%s10028_s15 + $0x79] sm:$0xff]  ;;  %v10151_v30 = vld [vmem:[%s10028_s15 + $0x91] sm:$0xff] }
  0x1a   : > { %9093 = vmatprep.mubr.msk.f32.mxu1 %vm280_vm1, %v10069_v15  ;;  %13379 = vst [vmem:[#allocation8_spill] sm:$0xff] %v10128_v25  ;;  %v10134_v27 = vld [vmem:[%s10028_s15 + $0x78] sm:$0xff]  ;;  %v10145_v28 = vld [vmem:[%s10028_s15 + $0x81] sm:$0xff]  ;;  %v10154_v31 = vld [vmem:[%s10028_s15 + $0x90] sm:$0xff] }
  0x1b   : > { %13380 = vst [vmem:[#allocation9_spill] sm:$0xff] %v10134_v27  ;;  %v10148_v29 = vld [vmem:[%s10028_s15 + $0x80] sm:$0xff]  ;;  %13382 = vst [vmem:[#allocation11_spill] sm:$0xff] %v10154_v31  ;;  %v10168_v33 = vld [vmem:[%s10028_s15 + $0x98] sm:$0xff] }
  0x1c   : > { %9044 = vmatmul.mubr.msk.f32.gmra.mxu0 %vm280_vm1, %v10085_v16  ;;  %13381 = vst [vmem:[#allocation10_spill] sm:$0xff] %v10148_v29  ;;  %v10165_v32 = vld [vmem:[%s10028_s15 + $0x99] sm:$0xff]  ;;  %13383 = vst [vmem:[#allocation12_spill] sm:$0xff] %v10168_v33  ;;  %v10171_v34 = vld [vmem:[%s10028_s15 + $0xa9] sm:$0xff] }
  0x1d   : > { %9094 = vmatmul.mubr.msk.f32.gmra.mxu1 %vm280_vm1, %v10088_v17  ;;  %9046 = vmatprep.mubr.msk.f32.mxu0 %vm280_vm1, %v10091_v18  ;;  %v10174_v35 = vld [vmem:[%s10028_s15 + $0xa8] sm:$0xff]  ;;  %v10185_v36 = vld [vmem:[%s10028_s15 + $0xb1] sm:$0xff]  ;;  %v10194_v39 = vld [vmem:[%s10028_s15 + $0xc0] sm:$0xff] }
  0x1e   : > { %9096 = vmatprep.mubr.msk.f32.mxu1 %vm280_vm1, %v10094_v19  ;;  %13384 = vst [vmem:[#allocation13_spill] sm:$0xff] %v10174_v35  ;;  %v10188_v37 = vld [vmem:[%s10028_s15 + $0xb0] sm:$0xff]  ;;  %v10191_v38 = vld [vmem:[%s10028_s15 + $0xc1] sm:$0xff]  ;;  %13386 = vst [vmem:[#allocation15_spill] sm:$0xff] %v10194_v39 }
  0x1f   : > { %13385 = vst [vmem:[#allocation14_spill] sm:$0xff] %v10188_v37  ;;  %v10205_v40 = vld [vmem:[%s10028_s15 + $0xc9] sm:$0xff]  ;;  %v10211_v42 = vld [vmem:[%s10028_s15 + $0xd9] sm:$0xff]  ;;  %v10225_v44 = vld [vmem:[%s10028_s15 + $0xe1] sm:$0xff] }
  0x20   : > { %9047 = vmatmul.mubr.msk.f32.gmra.mxu0 %vm280_vm1, %v10105_v20  ;;  %v10208_v41 = vld [vmem:[%s10028_s15 + $0xc8] sm:$0xff]  ;;  %v10214_v43 = vld [vmem:[%s10028_s15 + $0xd8] sm:$0xff]  ;;  %v10228_v45 = vld [vmem:[%s10028_s15 + $0xe0] sm:$0xff] }
  0x21   : > { %9097 = vmatmul.mubr.msk.f32.gmra.mxu1 %vm280_vm1, %v10108_v21  ;;  %9049 = vmatprep.mubr.msk.f32.mxu0 %vm280_vm1, %v10111_v22  ;;  %13387 = vst [vmem:[#allocation16_spill] sm:$0xff] %v10208_v41  ;;  %13388 = vst [vmem:[#allocation17_spill] sm:$0xff] %v10214_v43  ;;  %v10231_v46 = vld [vmem:[%s10028_s15 + $0xf1] sm:$0xff]  ;;  %v10245_v48 = vld [vmem:[%s10028_s15 + $0xf9] sm:$0xff] }
  0x22   : > { %9099 = vmatprep.mubr.msk.f32.mxu1 %vm280_vm1, %v10114_v23  ;;  %13389 = vst [vmem:[#allocation18_spill] sm:$0xff] %v10228_v45  ;;  %v10234_v47 = vld [vmem:[%s10028_s15 + $0xf0] sm:$0xff]  ;;  %v10248_v49 = vld [vmem:[%s10028_s15 + $0xf8] sm:$0xff]  ;;  %v10254_v51 = vld [vmem:[%s10028_s15 + $0x108] sm:$0xff] }
  0x23   : > { %13390 = vst [vmem:[#allocation19_spill] sm:$0xff] %v10234_v47  ;;  %13391 = vst [vmem:[#allocation20_spill] sm:$0xff] %v10248_v49  ;;  %v10251_v50 = vld [vmem:[%s10028_s15 + $0x109] sm:$0xff]  ;;  %v10265_v52 = vld [vmem:[%s10028_s15 + $0x111] sm:$0xff] }
  0x24   : > { %9050 = vmatmul.mubr.msk.f32.gmra.mxu0 %vm280_vm1, %v10125_v24  ;;  %13392 = vst [vmem:[#allocation21_spill] sm:$0xff] %v10254_v51  ;;  %v10268_v53 = vld [vmem:[%s10028_s15 + $0x110] sm:$0xff]  ;;  %v10271_v54 = vld [vmem:[%s10028_s15 + $0x121] sm:$0xff]  ;;  %v10291_v58 = vld [vmem:[%s10028_s15 + $0x139] sm:$0xff] }
  0x25   : > { %9100 = vmatmul.mubr.msk.f32.gmra.mxu1 %vm280_vm1, %v10128_v25  ;;  %9052 = vmatprep.mubr.msk.f32.mxu0 %vm280_vm1, %v10131_v26  ;;  %13393 = vst [vmem:[#allocation22_spill] sm:$0xff] %v10268_v53  ;;  %v10274_v55 = vld [vmem:[%s10028_s15 + $0x120] sm:$0xff]  ;;  %v10285_v56 = vld [vmem:[%s10028_s15 + $0x129] sm:$0xff]  ;;  %v10294_v59 = vld [vmem:[%s10028_s15 + $0x138] sm:$0xff] }
  0x26   : > { %9102 = vmatprep.mubr.msk.f32.mxu1 %vm280_vm1, %v10134_v27  ;;  %13394 = vst [vmem:[#allocation23_spill] sm:$0xff] %v10274_v55  ;;  %v10288_v57 = vld [vmem:[%s10028_s15 + $0x128] sm:$0xff]  ;;  %13396 = vst [vmem:[#allocation25_spill] sm:$0xff] %v10294_v59  ;;  %v10308_v61 = vld [vmem:[%s10028_s15 + $0x140] sm:$0xff] }
  0x27   : > { %13395 = vst [vmem:[#allocation24_spill] sm:$0xff] %v10288_v57  ;;  %v10305_v60 = vld [vmem:[%s10028_s15 + $0x141] sm:$0xff]  ;;  %13397 = vst [vmem:[#allocation26_spill] sm:$0xff] %v10308_v61  ;;  %v10311_v62 = vld [vmem:[%s10028_s15 + $0x151] sm:$0xff] }
  0x28   : > { %9053 = vmatmul.mubr.msk.f32.gmra.mxu0 %vm280_vm1, %v10145_v28  ;;  %v10314_v63 = vld [vmem:[%s10028_s15 + $0x150] sm:$0xff]  ;;  %v10325_v0 = vld [vmem:[%s10028_s15 + $0x159] sm:$0xff]  ;;  %v10334_v3 = vld [vmem:[%s10028_s15 + $0x168] sm:$0xff] }
  0x29   : > { %9103 = vmatmul.mubr.msk.f32.gmra.mxu1 %vm280_vm1, %v10148_v29  ;;  %9055 = vmatprep.mubr.msk.f32.mxu0 %vm280_vm1, %v10151_v30  ;;  %13398 = vst [vmem:[#allocation27_spill] sm:$0xff] %v10314_v63  ;;  %v10328_v1 = vld [vmem:[%s10028_s15 + $0x158] sm:$0xff]  ;;  %v10331_v2 = vld [vmem:[%s10028_s15 + $0x169] sm:$0xff] }
  0x2a   : > { %9105 = vmatprep.mubr.msk.f32.mxu1 %vm280_vm1, %v10154_v31  ;;  %13399 = vst [vmem:[#allocation28_spill] sm:$0xff] %v10328_v1  ;;  %13400 = vst [vmem:[#allocation29_spill] sm:$0xff] %v10331_v2  ;;  %v10345_v4 = vld [vmem:[%s10028_s15 + $0x171] sm:$0xff]  ;;  %v1041_v6 = vld [vmem:[%s10028_s15 + $0x2] sm:$0xff] }
  0x2b   : > { %13401 = vst [vmem:[#allocation30_spill] sm:$0xff] %v10345_v4  ;;  %v10348_v5 = vld [vmem:[%s10028_s15 + $0x170] sm:$0xff] }
  0x2c   : > { %9056 = vmatmul.mubr.msk.f32.gmra.mxu0 %vm280_vm1, %v10165_v32  ;;  %v1042_v7 = vld [vmem:[%s10028_s15 + $0xa] sm:$0xff] }
  0x2d   : > { %9106 = vmatmul.mubr.msk.f32.gmra.mxu1 %vm280_vm1, %v10168_v33  ;;  %9058 = vmatprep.mubr.msk.f32.mxu0 %vm280_vm1, %v10171_v34 }
  0x2e   : > { %9108 = vmatprep.mubr.msk.f32.mxu1 %vm280_vm1, %v10174_v35 }
  0x30   : > { %9059 = vmatmul.mubr.msk.f32.gmra.mxu0 %vm280_vm1, %v10185_v36 }
  0x31   : > { %9109 = vmatmul.mubr.msk.f32.gmra.mxu1 %vm280_vm1, %v10188_v37  ;;  %9061 = vmatprep.mubr.msk.f32.mxu0 %vm280_vm1, %v10191_v38 }
  0x32   : > { %9111 = vmatprep.mubr.msk.f32.mxu1 %vm280_vm1, %v10194_v39 }
  0x34   : > { %9062 = vmatmul.mubr.msk.f32.gmra.mxu0 %vm280_vm1, %v10205_v40 }
  0x35   : > { %9112 = vmatmul.mubr.msk.f32.gmra.mxu1 %vm280_vm1, %v10208_v41  ;;  %9064 = vmatprep.mubr.msk.f32.mxu0 %vm280_vm1, %v10211_v42 }
  0x36   : > { %9114 = vmatprep.mubr.msk.f32.mxu1 %vm280_vm1, %v10214_v43 }
  0x38   : > { %9065 = vmatmul.mubr.msk.f32.gmra.mxu0 %vm280_vm1, %v10225_v44 }
  0x39   : > { %9115 = vmatmul.mubr.msk.f32.gmra.mxu1 %vm280_vm1, %v10228_v45  ;;  %9067 = vmatprep.mubr.msk.f32.mxu0 %vm280_vm1, %v10231_v46 }
  0x3a   : > { %9117 = vmatprep.mubr.msk.f32.mxu1 %vm280_vm1, %v10234_v47 }
  0x3c   : > { %9068 = vmatmul.mubr.msk.f32.gmra.mxu0 %vm280_vm1, %v10245_v48 }
  0x3d   : > { %9118 = vmatmul.mubr.msk.f32.gmra.mxu1 %vm280_vm1, %v10248_v49  ;;  %9070 = vmatprep.mubr.msk.f32.mxu0 %vm280_vm1, %v10251_v50 }
  0x3e   : > { %9120 = vmatprep.mubr.msk.f32.mxu1 %vm280_vm1, %v10254_v51 }
  0x40   : > { %9071 = vmatmul.mubr.msk.f32.gmra.mxu0 %vm280_vm1, %v10265_v52 }
  0x41   : > { %9121 = vmatmul.mubr.msk.f32.gmra.mxu1 %vm280_vm1, %v10268_v53  ;;  %9073 = vmatprep.mubr.msk.f32.mxu0 %vm280_vm1, %v10271_v54 }
  0x42   : > { %9123 = vmatprep.mubr.msk.f32.mxu1 %vm280_vm1, %v10274_v55 }
  0x44   : > { %9074 = vmatmul.mubr.msk.f32.gmra.mxu0 %vm280_vm1, %v10285_v56 }
  0x45   : > { %9124 = vmatmul.mubr.msk.f32.gmra.mxu1 %vm280_vm1, %v10288_v57  ;;  %9076 = vmatprep.mubr.msk.f32.mxu0 %vm280_vm1, %v10291_v58 }
  0x46   : > { %9126 = vmatprep.mubr.msk.f32.mxu1 %vm280_vm1, %v10294_v59 }
  0x48   : > { %9077 = vmatmul.mubr.msk.f32.gmra.mxu0 %vm280_vm1, %v10305_v60 }
  0x49   : > { %9127 = vmatmul.mubr.msk.f32.gmra.mxu1 %vm280_vm1, %v10308_v61  ;;  %9079 = vmatprep.mubr.msk.f32.mxu0 %vm280_vm1, %v10311_v62 }
  0x4a   : > { %9129 = vmatprep.mubr.msk.f32.mxu1 %vm280_vm1, %v10314_v63 }
  0x4c   : > { %9080 = vmatmul.mubr.msk.f32.gmra.mxu0 %vm280_vm1, %v10325_v0 }
  0x4d   : > { %9130 = vmatmul.mubr.msk.f32.gmra.mxu1 %vm280_vm1, %v10328_v1  ;;  %9082 = vmatprep.mubr.msk.f32.mxu0 %vm280_vm1, %v10331_v2  ;;  %v10360_v2 = vld [vmem:[%s10028_s15 + $0x1a] sm:$0xff] }
  0x4e   : > { %9132 = vmatprep.mubr.msk.f32.mxu1 %vm280_vm1, %v10334_v3 }
  0x50   : > { %9083 = vmatmul.mubr.msk.f32.gmra.mxu0 %vm280_vm1, %v10345_v4  ;;  %v10368_v4 = vld [vmem:[%s13303_s1 + $0x18] sm:$0xf] }
  0x51   : > { %9133 = vmatmul.mubr.msk.f32.gmra.mxu1 %vm280_vm1, %v10348_v5  ;;  %9137 = vmatprep.mubr.msk.f32.mxu0 %vm280_vm1, %v1041_v6  ;;  %v10373_v6 = vld [vmem:[%s13303_s1 + $0x1c] sm:$0xf] }
  0x52   : > { %9187 = vmatprep.mubr.msk.f32.mxu1 %vm280_vm1, %v10040_v9  ;;  %v10380_v9 = vld [vmem:[%s10028_s15 + $0x22] sm:$0xff] }
  0x54   : > { %9138 = vmatmul.mubr.msk.f32.vlgmr.msra.gmra.mxu0 %vm280_vm1, %v1042_v7  ;;  %v10414_v7 = vld [vmem:[%s10028_s15 + $0x52] sm:$0xff] }
  0x55   : > { %9188 = vmatmul.mubr.msk.f32.vlgmr.msra.gmra.mxu1 %vm280_vm1, %v10061_v13  ;;  %9236 = vmatpush3.msk.msra.mxu0 %vm488_vm0, %v10047_v10  ;;  %v10385_v13 = vld [vmem:[%s10028_s15 + $0x32] sm:$0xff]  ;;  %v10400_v10 = vld [vmem:[%s10028_s15 + $0x3a] sm:$0xff] }
  0x56   : > { %9140 = vmatprep.mubr.msk.f32.mxu0 %vm280_vm1, %v10360_v2  ;;  %9190 = vmatprep.mubr.msk.f32.mxu1 %vm280_vm1, %v10069_v15  ;;  %v10576_v15 = vld [vmem:[%s10028_s15 + $0x180] sm:$0xff] }
  0x57   : > { %9286 = vmatpush3.msk.msra.mxu1 %vm488_vm0, %v10052_v11  ;;  %9335 = vmatprep.subr.msk.mxu0 %vm488_vm0, %v10368_v4  ;;  %v10405_v11 = vld [vmem:[%s10028_s15 + $0x4a] sm:$0xff]  ;;  %13402 = vst [vmem:[#allocation31_spill] sm:$0xff] %v10576_v15 }
  0x58   : > { %9385 = vmatprep.subr.msk.mxu1 %vm488_vm0, %v10373_v6  ;;  %9141 = vmatmul.mubr.msk.f32.gmra.mxu0 %vm280_vm1, %v10380_v9 }
  0x59   : > { %9191 = vmatmul.mubr.msk.f32.gmra.mxu1 %vm280_vm1, %v10088_v17  ;;  %9143 = vmatprep.mubr.msk.f32.mxu0 %vm280_vm1, %v10385_v13  ;;  %v10419_v17 = vld [vmem:[%s10028_s15 + $0x62] sm:$0xff] }
  0x5a   : > { %9193 = vmatprep.mubr.msk.f32.mxu1 %vm280_vm1, %v10094_v19  ;;  %v10433_v19 = vld [vmem:[%s10028_s15 + $0x7a] sm:$0xff] }
  0x5c   : > { %9144 = vmatmul.mubr.msk.f32.gmra.mxu0 %vm280_vm1, %v10400_v10 }
  0x5d   : > { %9194 = vmatmul.mubr.msk.f32.gmra.mxu1 %vm280_vm1, %v10108_v21  ;;  %9146 = vmatprep.mubr.msk.f32.mxu0 %vm280_vm1, %v10405_v11  ;;  %v10428_v21 = vld [vmem:[%s10028_s15 + $0x6a] sm:$0xff] }
  0x5e   : > { %9196 = vmatprep.mubr.msk.f32.mxu1 %vm280_vm1, %v10114_v23  ;;  %v10447_v23 = vld [vmem:[%s10028_s15 + $0x92] sm:$0xff] }
  0x60   : > { %9147 = vmatmul.mubr.msk.f32.gmra.mxu0 %vm280_vm1, %v10414_v7 }
  0x61   : > { %9197 = vmatmul.mubr.msk.f32.gmra.mxu1 %vm280_vm1, %v10128_v25  ;;  %9149 = vmatprep.mubr.msk.f32.mxu0 %vm280_vm1, %v10419_v17  ;;  %v10442_v25 = vld [vmem:[%s10028_s15 + $0x82] sm:$0xff] }
  0x62   : > { %9199 = vmatprep.mubr.msk.f32.mxu1 %vm280_vm1, %v10134_v27  ;;  %v10461_v27 = vld [vmem:[%s10028_s15 + $0xaa] sm:$0xff] }
  0x64   : > { %9150 = vmatmul.mubr.msk.f32.gmra.mxu0 %vm280_vm1, %v10428_v21 }
  0x65   : > { %9200 = vmatmul.mubr.msk.f32.gmra.mxu1 %vm280_vm1, %v10148_v29  ;;  %9152 = vmatprep.mubr.msk.f32.mxu0 %vm280_vm1, %v10433_v19  ;;  %v10456_v29 = vld [vmem:[%s10028_s15 + $0x9a] sm:$0xff] }
  0x66   : > { %9202 = vmatprep.mubr.msk.f32.mxu1 %vm280_vm1, %v10154_v31  ;;  %v10475_v31 = vld [vmem:[%s10028_s15 + $0xc2] sm:$0xff] }
  0x68   : > { %9153 = vmatmul.mubr.msk.f32.gmra.mxu0 %vm280_vm1, %v10442_v25 }
  0x69   : > { %9203 = vmatmul.mubr.msk.f32.gmra.mxu1 %vm280_vm1, %v10168_v33  ;;  %9155 = vmatprep.mubr.msk.f32.mxu0 %vm280_vm1, %v10447_v23  ;;  %v10470_v33 = vld [vmem:[%s10028_s15 + $0xb2] sm:$0xff] }
  0x6a   : > { %9205 = vmatprep.mubr.msk.f32.mxu1 %vm280_vm1, %v10174_v35  ;;  %v10489_v35 = vld [vmem:[%s10028_s15 + $0xda] sm:$0xff] }
  0x6c   : > { %9156 = vmatmul.mubr.msk.f32.gmra.mxu0 %vm280_vm1, %v10456_v29 }
  0x6d   : > { %9206 = vmatmul.mubr.msk.f32.gmra.mxu1 %vm280_vm1, %v10188_v37  ;;  %9158 = vmatprep.mubr.msk.f32.mxu0 %vm280_vm1, %v10461_v27  ;;  %v10484_v37 = vld [vmem:[%s10028_s15 + $0xca] sm:$0xff] }
  0x6e   : > { %9208 = vmatprep.mubr.msk.f32.mxu1 %vm280_vm1, %v10194_v39  ;;  %v10503_v39 = vld [vmem:[%s10028_s15 + $0xf2] sm:$0xff] }
  0x70   : > { %9159 = vmatmul.mubr.msk.f32.gmra.mxu0 %vm280_vm1, %v10470_v33 }
  0x71   : > { %9209 = vmatmul.mubr.msk.f32.gmra.mxu1 %vm280_vm1, %v10208_v41  ;;  %9161 = vmatprep.mubr.msk.f32.mxu0 %vm280_vm1, %v10475_v31  ;;  %v10498_v41 = vld [vmem:[%s10028_s15 + $0xe2] sm:$0xff] }
  0x72   : > { %9211 = vmatprep.mubr.msk.f32.mxu1 %vm280_vm1, %v10214_v43  ;;  %v10517_v43 = vld [vmem:[%s10028_s15 + $0x10a] sm:$0xff] }
  0x74   : > { %9162 = vmatmul.mubr.msk.f32.gmra.mxu0 %vm280_vm1, %v10484_v37 }
  0x75   : > { %9212 = vmatmul.mubr.msk.f32.gmra.mxu1 %vm280_vm1, %v10228_v45  ;;  %9164 = vmatprep.mubr.msk.f32.mxu0 %vm280_vm1, %v10489_v35  ;;  %v10512_v45 = vld [vmem:[%s10028_s15 + $0xfa] sm:$0xff] }
  0x76   : > { %9214 = vmatprep.mubr.msk.f32.mxu1 %vm280_vm1, %v10234_v47  ;;  %v10531_v47 = vld [vmem:[%s10028_s15 + $0x122] sm:$0xff] }
  0x78   : > { %9165 = vmatmul.mubr.msk.f32.gmra.mxu0 %vm280_vm1, %v10498_v41 }
  0x79   : > { %9215 = vmatmul.mubr.msk.f32.gmra.mxu1 %vm280_vm1, %v10248_v49  ;;  %9167 = vmatprep.mubr.msk.f32.mxu0 %vm280_vm1, %v10503_v39  ;;  %v10526_v49 = vld [vmem:[%s10028_s15 + $0x112] sm:$0xff] }
  0x7a   : > { %9217 = vmatprep.mubr.msk.f32.mxu1 %vm280_vm1, %v10254_v51  ;;  %v10559_v51 = vld [vmem:[%s10028_s15 + $0x152] sm:$0xff] }
  0x7c   : > { %9168 = vmatmul.mubr.msk.f32.gmra.mxu0 %vm280_vm1, %v10512_v45 }
  0x7d   : > { %9218 = vmatmul.mubr.msk.f32.gmra.mxu1 %vm280_vm1, %v10268_v53  ;;  %9170 = vmatprep.mubr.msk.f32.mxu0 %vm280_vm1, %v10517_v43  ;;  %v10540_v53 = vld [vmem:[%s10028_s15 + $0x12a] sm:$0xff] }
  0x7e   : > { %9220 = vmatprep.mubr.msk.f32.mxu1 %vm280_vm1, %v10274_v55  ;;  %v10545_v55 = vld [vmem:[%s10028_s15 + $0x13a] sm:$0xff] }
  0x80   : > { %9171 = vmatmul.mubr.msk.f32.gmra.mxu0 %vm280_vm1, %v10526_v49 }
  0x81   : > { %9221 = vmatmul.mubr.msk.f32.gmra.mxu1 %vm280_vm1, %v10288_v57  ;;  %9173 = vmatprep.mubr.msk.f32.mxu0 %vm280_vm1, %v10531_v47  ;;  %v10554_v57 = vld [vmem:[%s10028_s15 + $0x142] sm:$0xff] }
  0x82   : > { %9223 = vmatprep.mubr.msk.f32.mxu1 %vm280_vm1, %v10294_v59  ;;  %v10573_v59 = vld [vmem:[%s10028_s15 + $0x16a] sm:$0xff] }
  0x84   : > { %9174 = vmatmul.mubr.msk.f32.gmra.mxu0 %vm280_vm1, %v10540_v53 }
  0x85   : > { %9224 = vmatmul.mubr.msk.f32.gmra.mxu1 %vm280_vm1, %v10308_v61  ;;  %9176 = vmatprep.mubr.msk.f32.mxu0 %vm280_vm1, %v10545_v55  ;;  %v10568_v61 = vld [vmem:[%s10028_s15 + $0x15a] sm:$0xff] }
  0x86   : > { %9226 = vmatprep.mubr.msk.f32.mxu1 %vm280_vm1, %v10314_v63  ;;  %v10590_v63 = vld [vmem:[%s10028_s15 + $0x188] sm:$0xff] }
  0x88   : > { %9177 = vmatmul.mubr.msk.f32.gmra.mxu0 %vm280_vm1, %v10554_v57 }
  0x89   : > { %9227 = vmatmul.mubr.msk.f32.gmra.mxu1 %vm280_vm1, %v10328_v1  ;;  %9179 = vmatprep.mubr.msk.f32.mxu0 %vm280_vm1, %v10559_v51  ;;  %v10585_v1 = vld [vmem:[%s10028_s15 + $0x172] sm:$0xff] }
  0x8a   : > { %9229 = vmatprep.mubr.msk.f32.mxu1 %vm280_vm1, %v10334_v3 }
  0x8c   : > { %9180 = vmatmul.mubr.msk.f32.gmra.mxu0 %vm280_vm1, %v10568_v61 }
  0x8d   : > { %9230 = vmatmul.mubr.msk.f32.gmra.mxu1 %vm280_vm1, %v10348_v5  ;;  %9182 = vmatprep.mubr.msk.f32.mxu0 %vm280_vm1, %v10573_v59 }
  0x8e   : > { %9232 = vmatprep.mubr.msk.f32.mxu1 %vm280_vm1, %v10576_v15  ;;  %v10607_v15 = vld [vmem:[%s13303_s1 + $0x20] sm:$0xf] }
  0x90   : > { %9183 = vmatmul.mubr.msk.f32.gmra.mxu0 %vm280_vm1, %v10585_v1 }
  0x91   : > { %9233 = vmatmul.mubr.msk.f32.gmra.mxu1 %vm280_vm1, %v10590_v63  ;;  %9237 = vmatprep.mubr.msk.f32.mxu0 %vm280_vm1, %v10037_v8  ;;  %v13403_v8 = vld [vmem:[#allocation29_spill] sm:$0xff] }
  0x92   : > { %9287 = vmatprep.mubr.msk.f32.mxu1 %vm280_vm1, %v10360_v2  ;;  %v13407_v2 = vld [vmem:[#allocation5_spill] sm:$0xff] }
  0x94   : > { %9238 = vmatmul.mubr.msk.f32.vlgmr.msra.gmra.mxu0 %vm280_vm1, %v10058_v12  ;;  %v10724_v12 = vld [vmem:[%s10028_s15 + $0x181] sm:$0xff] }
  0x95   : > { %9288 = vmatmul.mubr.msk.f32.vlgmr.msra.gmra.mxu1 %vm280_vm1, %v10380_v9  ;;  %9336 = vmatpush3.msk.msra.mxu0 %vm488_vm0, %v10368_v4 }
  0x96   : > { %9240 = vmatprep.mubr.msk.f32.mxu0 %vm280_vm1, %v10066_v14  ;;  %9290 = vmatprep.mubr.msk.f32.mxu1 %vm280_vm1, %v10385_v13 }
  0x97   : > { %9386 = vmatpush3.msk.msra.mxu1 %vm488_vm0, %v10373_v6  ;;  %9435 = vmatprep.subr.msk.mxu0 %vm488_vm0, %v10607_v15 }
  0x98   : > { %9241 = vmatmul.mubr.msk.f32.gmra.mxu0 %vm280_vm1, %v10085_v16 }
  0x99   : > { %9291 = vmatmul.mubr.msk.f32.gmra.mxu1 %vm280_vm1, %v10400_v10  ;;  %9243 = vmatprep.mubr.msk.f32.mxu0 %vm280_vm1, %v10091_v18 }
  0x9a   : > { %9293 = vmatprep.mubr.msk.f32.mxu1 %vm280_vm1, %v10405_v11 }
  0x9c   : > { %9244 = vmatmul.mubr.msk.f32.gmra.mxu0 %vm280_vm1, %v10105_v20 }
  0x9d   : > { %9294 = vmatmul.mubr.msk.f32.gmra.mxu1 %vm280_vm1, %v10414_v7  ;;  %9246 = vmatprep.mubr.msk.f32.mxu0 %vm280_vm1, %v10111_v22 }
  0x9e   : > { %9296 = vmatprep.mubr.msk.f32.mxu1 %vm280_vm1, %v10419_v17 }
  0xa0   : > { %9247 = vmatmul.mubr.msk.f32.gmra.mxu0 %vm280_vm1, %v10125_v24 }
  0xa1   : > { %9297 = vmatmul.mubr.msk.f32.gmra.mxu1 %vm280_vm1, %v10428_v21  ;;  %9249 = vmatprep.mubr.msk.f32.mxu0 %vm280_vm1, %v10131_v26 }
  0xa2   : > { %9299 = vmatprep.mubr.msk.f32.mxu1 %vm280_vm1, %v10433_v19 }
  0xa4   : > { %9250 = vmatmul.mubr.msk.f32.gmra.mxu0 %vm280_vm1, %v10145_v28 }
  0xa5   : > { %9300 = vmatmul.mubr.msk.f32.gmra.mxu1 %vm280_vm1, %v10442_v25  ;;  %9252 = vmatprep.mubr.msk.f32.mxu0 %vm280_vm1, %v10151_v30 }
  0xa6   : > { %9302 = vmatprep.mubr.msk.f32.mxu1 %vm280_vm1, %v10447_v23 }
  0xa8   : > { %9253 = vmatmul.mubr.msk.f32.gmra.mxu0 %vm280_vm1, %v10165_v32 }
  0xa9   : > { %9303 = vmatmul.mubr.msk.f32.gmra.mxu1 %vm280_vm1, %v10456_v29  ;;  %9255 = vmatprep.mubr.msk.f32.mxu0 %vm280_vm1, %v10171_v34 }
  0xaa   : > { %9305 = vmatprep.mubr.msk.f32.mxu1 %vm280_vm1, %v10461_v27 }
  0xac   : > { %9256 = vmatmul.mubr.msk.f32.gmra.mxu0 %vm280_vm1, %v10185_v36 }
  0xad   : > { %9306 = vmatmul.mubr.msk.f32.gmra.mxu1 %vm280_vm1, %v10470_v33  ;;  %9258 = vmatprep.mubr.msk.f32.mxu0 %vm280_vm1, %v10191_v38 }
  0xae   : > { %9308 = vmatprep.mubr.msk.f32.mxu1 %vm280_vm1, %v10475_v31 }
  0xb0   : > { %9259 = vmatmul.mubr.msk.f32.gmra.mxu0 %vm280_vm1, %v10205_v40 }
  0xb1   : > { %9309 = vmatmul.mubr.msk.f32.gmra.mxu1 %vm280_vm1, %v10484_v37  ;;  %9261 = vmatprep.mubr.msk.f32.mxu0 %vm280_vm1, %v10211_v42 }
  0xb2   : > { %9311 = vmatprep.mubr.msk.f32.mxu1 %vm280_vm1, %v10489_v35 }
  0xb4   : > { %9262 = vmatmul.mubr.msk.f32.gmra.mxu0 %vm280_vm1, %v10225_v44 }
  0xb5   : > { %9312 = vmatmul.mubr.msk.f32.gmra.mxu1 %vm280_vm1, %v10498_v41  ;;  %9264 = vmatprep.mubr.msk.f32.mxu0 %vm280_vm1, %v10231_v46 }
  0xb6   : > { %9314 = vmatprep.mubr.msk.f32.mxu1 %vm280_vm1, %v10503_v39 }
  0xb8   : > { %9265 = vmatmul.mubr.msk.f32.gmra.mxu0 %vm280_vm1, %v10245_v48 }
  0xb9   : > { %9315 = vmatmul.mubr.msk.f32.gmra.mxu1 %vm280_vm1, %v10512_v45  ;;  %9267 = vmatprep.mubr.msk.f32.mxu0 %vm280_vm1, %v10251_v50 }
  0xba   : > { %9317 = vmatprep.mubr.msk.f32.mxu1 %vm280_vm1, %v10517_v43 }
  0xbc   : > { %9268 = vmatmul.mubr.msk.f32.gmra.mxu0 %vm280_vm1, %v10265_v52 }
  0xbd   : > { %9318 = vmatmul.mubr.msk.f32.gmra.mxu1 %vm280_vm1, %v10526_v49  ;;  %9270 = vmatprep.mubr.msk.f32.mxu0 %vm280_vm1, %v10271_v54  ;;  %v13404_v49 = vld [vmem:[#allocation30_spill] sm:$0xff] }
  0xbe   : > { %9320 = vmatprep.mubr.msk.f32.mxu1 %vm280_vm1, %v10531_v47  ;;  %v10727_v47 = vld [vmem:[%s10028_s15 + $0x182] sm:$0xff] }
  0xc0   : > { %9271 = vmatmul.mubr.msk.f32.gmra.mxu0 %vm280_vm1, %v10285_v56 }
  0xc1   : > { %9321 = vmatmul.mubr.msk.f32.gmra.mxu1 %vm280_vm1, %v10540_v53  ;;  %9273 = vmatprep.mubr.msk.f32.mxu0 %vm280_vm1, %v10291_v58  ;;  %v10741_v53 = vld [vmem:[%s10028_s15 + $0x18a] sm:$0xff] }
  0xc2   : > { %9323 = vmatprep.mubr.msk.f32.mxu1 %vm280_vm1, %v10545_v55  ;;  %v13405_v55 = vld [vmem:[#allocation3_spill] sm:$0xff] }
  0xc4   : > { %9274 = vmatmul.mubr.msk.f32.gmra.mxu0 %vm280_vm1, %v10305_v60 }
  0xc5   : > { %9324 = vmatmul.mubr.msk.f32.gmra.mxu1 %vm280_vm1, %v10554_v57  ;;  %9276 = vmatprep.mubr.msk.f32.mxu0 %vm280_vm1, %v10311_v62 }
  0xc6   : > { %9326 = vmatprep.mubr.msk.f32.mxu1 %vm280_vm1, %v10559_v51  ;;  %v10736_v51 = vld [vmem:[%s10028_s15 + $0x189] sm:$0xff] }
  0xc8   : > { %9277 = vmatmul.mubr.msk.f32.gmra.mxu0 %vm280_vm1, %v10325_v0 }
  0xc9   : > { %9327 = vmatmul.mubr.msk.f32.gmra.mxu1 %vm280_vm1, %v10568_v61  ;;  %9279 = vmatprep.mubr.msk.f32.mxu0 %vm280_vm1, %v13403_v8  ;;  %v13406_v61 = vld [vmem:[#allocation4_spill] sm:$0xff] }
  0xca   : > { %9329 = vmatprep.mubr.msk.f32.mxu1 %vm280_vm1, %v10573_v59 }
  0xcc   : > { %9280 = vmatmul.mubr.msk.f32.gmra.mxu0 %vm280_vm1, %v13404_v49 }
  0xcd   : > { %9330 = vmatmul.mubr.msk.f32.gmra.mxu1 %vm280_vm1, %v10585_v1  ;;  %9282 = vmatprep.mubr.msk.f32.mxu0 %vm280_vm1, %v10724_v12 }
  0xce   : > { %9332 = vmatprep.mubr.msk.f32.mxu1 %vm280_vm1, %v10727_v47 }
  0xd0   : > { %9283 = vmatmul.mubr.msk.f32.gmra.mxu0 %vm280_vm1, %v10736_v51 }
  0xd1   : > { %9333 = vmatmul.mubr.msk.f32.gmra.mxu1 %vm280_vm1, %v10741_v53  ;;  %9337 = vmatprep.mubr.msk.f32.mxu0 %vm280_vm1, %v13405_v55 }
  0xd2   : > { %9387 = vmatprep.mubr.msk.f32.mxu1 %vm280_vm1, %v10066_v14 }
  0xd4   : > { %v9039_v57 = vpop.f32.mrf.mxu0  ;;  %9338 = vmatmul.mubr.msk.f32.vlgmr.msra.gmra.mxu0 %vm280_vm1, %v13406_v61  ;;  %v13408_v61 = vld [vmem:[#allocation6_spill] sm:$0xff] }
  0xd5   : > { %v9089_v59 = vpop.f32.mrf.mxu1  ;;  %9388 = vmatmul.mubr.msk.f32.vlgmr.msra.gmra.mxu1 %vm280_vm1, %v10085_v16  ;;  %9436 = vmatpush3.msk.msra.mxu0 %vm488_vm0, %v10607_v15  ;;  %v13409_v15 = vld [vmem:[#allocation7_spill] sm:$0xff] }
  0xd6   : > { %v10755_v1 = vadd.f32 %v9089_v59, %v9039_v57  ;;  %9340 = vmatprep.mubr.msk.f32.mxu0 %vm280_vm1, %v13407_v2  ;;  %v558_v4 = vpop.f32.mrf.mxu0  ;;  %9390 = vmatprep.mubr.msk.f32.mxu1 %vm280_vm1, %v10091_v18 }
  0xd7   : > { %v882_v6 = vpop.f32.mrf.mxu1 }
  0xd8   : > { %v10763_v14 = vadd.f32 %v882_v6, %v558_v4  ;;  %v9042_v9 = vpop.f32.mrf.mxu0  ;;  %9341 = vmatmul.mubr.msk.f32.gmra.mxu0 %vm280_vm1, %v13408_v61  ;;  %v13410_v6 = vld [vmem:[#allocation8_spill] sm:$0xff] }
  0xd9   : > { %v9092_v55 = vpop.f32.mrf.mxu1  ;;  %9391 = vmatmul.mubr.msk.f32.gmra.mxu1 %vm280_vm1, %v10105_v20  ;;  %9343 = vmatprep.mubr.msk.f32.mxu0 %vm280_vm1, %v13409_v15 }
  0xda   : > { %v10769_v16 = vadd.f32 %v9092_v55, %v9042_v9  ;;  %9393 = vmatprep.mubr.msk.f32.mxu1 %vm280_vm1, %v10111_v22  ;;  %v568_v57 = vpop.f32.mrf.mxu0  ;;  %v13411_v9 = vld [vmem:[#allocation9_spill] sm:$0xff] }
  0xdb   : > { %v892_v18 = vpop.f32.mrf.mxu1 }
  0xdc   : > { %v10775_v59 = vadd.f32 %v892_v18, %v568_v57  ;;  %v9045_v2 = vpop.f32.mrf.mxu0  ;;  %9344 = vmatmul.mubr.msk.f32.gmra.mxu0 %vm280_vm1, %v13410_v6  ;;  %v13412_v18 = vld [vmem:[#allocation10_spill] sm:$0xff] }
  0xdd   : > { %v9095_v4 = vpop.f32.mrf.mxu1  ;;  %9394 = vmatmul.mubr.msk.f32.gmra.mxu1 %vm280_vm1, %v10125_v24  ;;  %9346 = vmatprep.mubr.msk.f32.mxu0 %vm280_vm1, %v13411_v9 }
  0xde   : > { %v10781_v20 = vadd.f32 %v9095_v4, %v9045_v2  ;;  %9396 = vmatprep.mubr.msk.f32.mxu1 %vm280_vm1, %v10131_v26  ;;  %v578_v22 = vpop.f32.mrf.mxu0  ;;  %v13413_v2 = vld [vmem:[#allocation11_spill] sm:$0xff] }
  0xdf   : > { %v902_v55 = vpop.f32.mrf.mxu1 }
  0xe0   : > { %v10787_v61 = vadd.f32 %v902_v55, %v578_v22  ;;  %v9048_v15 = vpop.f32.mrf.mxu0  ;;  %9347 = vmatmul.mubr.msk.f32.gmra.mxu0 %vm280_vm1, %v13412_v18  ;;  %v13414_v55 = vld [vmem:[#allocation12_spill] sm:$0xff] }
  0xe1   : > { %v9098_v57 = vpop.f32.mrf.mxu1  ;;  %9397 = vmatmul.mubr.msk.f32.gmra.mxu1 %vm280_vm1, %v10145_v28  ;;  %9349 = vmatprep.mubr.msk.f32.mxu0 %vm280_vm1, %v13413_v2 }
  0xe2   : > { %v10793_v24 = vadd.f32 %v9098_v57, %v9048_v15  ;;  %9399 = vmatprep.mubr.msk.f32.mxu1 %vm280_vm1, %v10151_v30  ;;  %v588_v26 = vpop.f32.mrf.mxu0  ;;  %v13415_v15 = vld [vmem:[#allocation13_spill] sm:$0xff] }
  0xe3   : > { %v912_v4 = vpop.f32.mrf.mxu1 }
  0xe4   : > { %v10799_v6 = vadd.f32 %v912_v4, %v588_v26  ;;  %v9051_v9 = vpop.f32.mrf.mxu0  ;;  %9350 = vmatmul.mubr.msk.f32.gmra.mxu0 %vm280_vm1, %v13414_v55  ;;  %v13416_v4 = vld [vmem:[#allocation14_spill] sm:$0xff] }
  0xe5   : > { %v9101_v22 = vpop.f32.mrf.mxu1  ;;  %9400 = vmatmul.mubr.msk.f32.gmra.mxu1 %vm280_vm1, %v10165_v32  ;;  %9352 = vmatprep.mubr.msk.f32.mxu0 %vm280_vm1, %v13415_v15 }
  0xe6   : > { %v10805_v28 = vadd.f32 %v9101_v22, %v9051_v9  ;;  %9402 = vmatprep.mubr.msk.f32.mxu1 %vm280_vm1, %v10171_v34  ;;  %v598_v30 = vpop.f32.mrf.mxu0  ;;  %v13417_v9 = vld [vmem:[#allocation15_spill] sm:$0xff] }
  0xe7   : > { %v922_v57 = vpop.f32.mrf.mxu1 }
  0xe8   : > { %v10811_v18 = vadd.f32 %v922_v57, %v598_v30  ;;  %v9054_v2 = vpop.f32.mrf.mxu0  ;;  %9353 = vmatmul.mubr.msk.f32.gmra.mxu0 %vm280_vm1, %v13416_v4  ;;  %v13418_v57 = vld [vmem:[#allocation16_spill] sm:$0xff] }
  0xe9   : > { %v9104_v26 = vpop.f32.mrf.mxu1  ;;  %9403 = vmatmul.mubr.msk.f32.gmra.mxu1 %vm280_vm1, %v10185_v36  ;;  %9355 = vmatprep.mubr.msk.f32.mxu0 %vm280_vm1, %v13417_v9 }
  0xea   : > { %v10817_v32 = vadd.f32 %v9104_v26, %v9054_v2  ;;  %9405 = vmatprep.mubr.msk.f32.mxu1 %vm280_vm1, %v10191_v38  ;;  %v608_v34 = vpop.f32.mrf.mxu0  ;;  %v13419_v2 = vld [vmem:[#allocation17_spill] sm:$0xff] }
  0xeb   : > { %v932_v22 = vpop.f32.mrf.mxu1 }
  0xec   : > { %v10823_v55 = vadd.f32 %v932_v22, %v608_v34  ;;  %v9057_v15 = vpop.f32.mrf.mxu0  ;;  %9356 = vmatmul.mubr.msk.f32.gmra.mxu0 %vm280_vm1, %v13418_v57  ;;  %v13420_v22 = vld [vmem:[#allocation18_spill] sm:$0xff] }
  0xed   : > { %v9107_v30 = vpop.f32.mrf.mxu1  ;;  %9406 = vmatmul.mubr.msk.f32.gmra.mxu1 %vm280_vm1, %v10205_v40  ;;  %9358 = vmatprep.mubr.msk.f32.mxu0 %vm280_vm1, %v13419_v2 }
  0xee   : > { %v10829_v36 = vadd.f32 %v9107_v30, %v9057_v15  ;;  %9408 = vmatprep.mubr.msk.f32.mxu1 %vm280_vm1, %v10211_v42  ;;  %v618_v38 = vpop.f32.mrf.mxu0  ;;  %v13421_v15 = vld [vmem:[#allocation19_spill] sm:$0xff] }
  0xef   : > { %v942_v26 = vpop.f32.mrf.mxu1 }
  0xf0   : > { %v10835_v4 = vadd.f32 %v942_v26, %v618_v38  ;;  %v9060_v9 = vpop.f32.mrf.mxu0  ;;  %9359 = vmatmul.mubr.msk.f32.gmra.mxu0 %vm280_vm1, %v13420_v22  ;;  %v13422_v26 = vld [vmem:[#allocation20_spill] sm:$0xff] }
  0xf1   : > { %v9110_v34 = vpop.f32.mrf.mxu1  ;;  %9409 = vmatmul.mubr.msk.f32.gmra.mxu1 %vm280_vm1, %v10225_v44  ;;  %9361 = vmatprep.mubr.msk.f32.mxu0 %vm280_vm1, %v13421_v15 }
  0xf2   : > { %v10841_v40 = vadd.f32 %v9110_v34, %v9060_v9  ;;  %9411 = vmatprep.mubr.msk.f32.mxu1 %vm280_vm1, %v10231_v46  ;;  %v628_v42 = vpop.f32.mrf.mxu0  ;;  %v13423_v9 = vld [vmem:[#allocation21_spill] sm:$0xff] }
  0xf3   : > { %v952_v30 = vpop.f32.mrf.mxu1 }
  0xf4   : > { %v10847_v57 = vadd.f32 %v952_v30, %v628_v42  ;;  %v9063_v2 = vpop.f32.mrf.mxu0  ;;  %9362 = vmatmul.mubr.msk.f32.gmra.mxu0 %vm280_vm1, %v13422_v26  ;;  %v13424_v42 = vld [vmem:[#allocation22_spill] sm:$0xff]  ;;  %v13425_v30 = vld [vmem:[#allocation23_spill] sm:$0xff] }
  0xf5   : > { %v9113_v38 = vpop.f32.mrf.mxu1  ;;  %9412 = vmatmul.mubr.msk.f32.gmra.mxu1 %vm280_vm1, %v10245_v48  ;;  %9364 = vmatprep.mubr.msk.f32.mxu0 %vm280_vm1, %v13423_v9  ;;  %v13427_v9 = vld [vmem:[#allocation24_spill] sm:$0xff] }
  0xf6   : > { %v10853_v44 = vadd.f32 %v9113_v38, %v9063_v2  ;;  %9414 = vmatprep.mubr.msk.f32.mxu1 %vm280_vm1, %v10251_v50  ;;  %v10859_v46 = vpop.f32.mrf.mxu0 }
  0xf7   : > { %v10861_v34 = vpop.f32.mrf.mxu1 }
  0xf8   : > { %v9066_v22 = vpop.f32.mrf.mxu0  ;;  %9365 = vmatmul.mubr.msk.f32.gmra.mxu0 %vm280_vm1, %v13424_v42 }
  0xf9   : > { %v9116_v15 = vpop.f32.mrf.mxu1  ;;  %9415 = vmatmul.mubr.msk.f32.gmra.mxu1 %vm280_vm1, %v10265_v52  ;;  %9367 = vmatprep.mubr.msk.f32.mxu0 %vm280_vm1, %v13425_v30 }
  0xfa   : > { %v10867_v48 = vadd.f32 %v9116_v15, %v9066_v22  ;;  %9417 = vmatprep.mubr.msk.f32.mxu1 %vm280_vm1, %v10271_v54  ;;  %v10873_v50 = vpop.f32.mrf.mxu0  ;;  %v13428_v22 = vld [vmem:[#allocation25_spill] sm:$0xff] }
  0xfb   : > { %v10875_v2 = vpop.f32.mrf.mxu1 }
  0xfc   : > { %13426 = vst [vmem:[#allocation29_spill] sm:$0xff] %v10875_v2  ;;  %v9069_v38 = vpop.f32.mrf.mxu0  ;;  %9368 = vmatmul.mubr.msk.f32.gmra.mxu0 %vm280_vm1, %v13427_v9  ;;  %v13430_v2 = vld [vmem:[#allocation26_spill] sm:$0xff] }
  0xfd   : > { %v9119_v26 = vpop.f32.mrf.mxu1  ;;  %9418 = vmatmul.mubr.msk.f32.gmra.mxu1 %vm280_vm1, %v10285_v56  ;;  %9370 = vmatprep.mubr.msk.f32.mxu0 %vm280_vm1, %v13428_v22 }
  0xfe   : > { %v10881_v52 = vadd.f32 %v9119_v26, %v9069_v38  ;;  %9420 = vmatprep.mubr.msk.f32.mxu1 %vm280_vm1, %v10291_v58  ;;  %v10887_v54 = vpop.f32.mrf.mxu0  ;;  %v13431_v38 = vld [vmem:[#allocation27_spill] sm:$0xff] }
  0xff   : > { %v10889_v15 = vpop.f32.mrf.mxu1 }
 0x100   : > { %13429 = vst [vmem:[#allocation30_spill] sm:$0xff] %v10889_v15  ;;  %v9072_v42 = vpop.f32.mrf.mxu0  ;;  %9371 = vmatmul.mubr.msk.f32.gmra.mxu0 %vm280_vm1, %v13430_v2  ;;  %v13432_v15 = vld [vmem:[#allocation28_spill] sm:$0xff] }
 0x101   : > { %v9122_v30 = vpop.f32.mrf.mxu1  ;;  %9421 = vmatmul.mubr.msk.f32.gmra.mxu1 %vm280_vm1, %v10305_v60  ;;  %9373 = vmatprep.mubr.msk.f32.mxu0 %vm280_vm1, %v13431_v38  ;;  %v7941_v38 = vld [vmem:[%s10028_s15 + $0x198] sm:$0xff] }
 0x102   : > { %v10895_v56 = vadd.f32 %v9122_v30, %v9072_v42  ;;  %9423 = vmatprep.mubr.msk.f32.mxu1 %vm280_vm1, %v10311_v62  ;;  %v10901_v58 = vpop.f32.mrf.mxu0 }
 0x103   : > { %v10903_v26 = vpop.f32.mrf.mxu1 }
 0x104   : > { %v9075_v9 = vpop.f32.mrf.mxu0  ;;  %9374 = vmatmul.mubr.msk.f32.gmra.mxu0 %vm280_vm1, %v13432_v15 }
 0x105   : > { %v9125_v22 = vpop.f32.mrf.mxu1  ;;  %9424 = vmatmul.mubr.msk.f32.gmra.mxu1 %vm280_vm1, %v10325_v0  ;;  %9376 = vmatprep.mubr.msk.f32.mxu0 %vm280_vm1, %v10334_v3  ;;  %v13433_v3 = vld [vmem:[#allocation31_spill] sm:$0xff] }
 0x106   : > { %v10909_v60 = vadd.f32 %v9125_v22, %v9075_v9  ;;  %9426 = vmatprep.mubr.msk.f32.mxu1 %vm280_vm1, %v13403_v8  ;;  %v10915_v62 = vpop.f32.mrf.mxu0  ;;  %v8006_v9 = vld [vmem:[%s10028_s15 + $0x199] sm:$0xff] }
 0x107   : > { %v10917_v2 = vpop.f32.mrf.mxu1 }
 0x108   : > { %v9078_v42 = vpop.f32.mrf.mxu0  ;;  %9377 = vmatmul.mubr.msk.f32.gmra.mxu0 %vm280_vm1, %v10348_v5 }
 0x109   : > { %v9128_v30 = vpop.f32.mrf.mxu1  ;;  %9427 = vmatmul.mubr.msk.f32.gmra.mxu1 %vm280_vm1, %v13404_v49  ;;  %9379 = vmatprep.mubr.msk.f32.mxu0 %vm280_vm1, %v13433_v3 }
 0x10a   : > { %v10923_v0 = vadd.f32 %v9128_v30, %v9078_v42  ;;  %9429 = vmatprep.mubr.msk.f32.mxu1 %vm280_vm1, %v10724_v12  ;;  %v10929_v8 = vpop.f32.mrf.mxu0  ;;  %v7942_v42 = vld [vmem:[%s10028_s15 + $0x1a0] sm:$0xff] }
 0x10b   : > { %13434 = vst [vmem:[#allocation3_spill] sm:$0xff] %v10929_v8  ;;  %v10931_v15 = vpop.f32.mrf.mxu1  ;;  %v8007_v12 = vld [vmem:[%s10028_s15 + $0x1a1] sm:$0xff] }
 0x10c   : > { %13435 = vst [vmem:[#allocation4_spill] sm:$0xff] %v10931_v15  ;;  %v9081_v22 = vpop.f32.mrf.mxu0  ;;  %9380 = vmatmul.mubr.msk.f32.gmra.mxu0 %vm280_vm1, %v10590_v63 }
 0x10d   : > { %v9131_v5 = vpop.f32.mrf.mxu1  ;;  %9430 = vmatmul.mubr.msk.f32.gmra.mxu1 %vm280_vm1, %v10736_v51  ;;  %9382 = vmatprep.mubr.msk.f32.mxu0 %vm280_vm1, %v7941_v38 }
 0x10e   : > { %v10939_v49 = vadd.f32 %v9131_v5, %v9081_v22  ;;  %9432 = vmatprep.mubr.msk.f32.mxu1 %vm280_vm1, %v8006_v9  ;;  %v10945_v30 = vpop.f32.mrf.mxu0 }
 0x10f   : > { %v10947_v3 = vpop.f32.mrf.mxu1 }
 0x110   : > { %v9084_v15 = vpop.f32.mrf.mxu0  ;;  %9383 = vmatmul.mubr.msk.f32.gmra.mxu0 %vm280_vm1, %v7942_v42 }
 0x111   : > { %v9134_v8 = vpop.f32.mrf.mxu1  ;;  %9433 = vmatmul.mubr.msk.f32.gmra.mxu1 %vm280_vm1, %v8007_v12  ;;  %9437 = vmatprep.mubr.msk.f32.mxu0 %vm280_vm1, %v10385_v13 }
 0x112   : > { %v10951_v63 = vadd.f32 %v9134_v8, %v9084_v15  ;;  %v10955_v51 = vpop.f32.mrf.mxu0 }
 0x113   : > { %v10957_v38 = vpop.f32.mrf.mxu1 }
 0x114   : > { %13436 = vst [vmem:[#allocation5_spill] sm:$0xff] %v10957_v38  ;;  %v9139_v9 = vpop.f32.mrf.mxu0  ;;  %9438 = vmatmul.mubr.msk.f32.vlgmr.msra.gmra.mxu0 %vm280_vm1, %v10400_v10 }
 0x115   : > { %v9189_v22 = vpop.f32.mrf.mxu1  ;;  %v1399_v5 = vadd.f32 %v9139_v9, %v10755_v1  ;;  %9440 = vmatprep.mubr.msk.f32.mxu0 %vm280_vm1, %v10405_v11 }
 0x116   : > { %v1239_v42 = vpop.f32.mrf.mxu0 }
 0x117   : > { %v10964_v8 = vpop.f32.mrf.mxu1  ;;  %v10967_v15 = vadd.f32 %v1239_v42, %v10763_v14  ;;  %v10969_v13 = vadd.f32 %v9189_v22, %v1399_v5 }
 0x118   : > { %v9142_v12 = vpop.f32.mrf.mxu0  ;;  %9441 = vmatmul.mubr.msk.f32.gmra.mxu0 %vm280_vm1, %v10414_v7 }
 0x119   : > { %v9192_v38 = vpop.f32.mrf.mxu1  ;;  %v1401_v10 = vadd.f32 %v9142_v12, %v10769_v16  ;;  %9443 = vmatprep.mubr.msk.f32.mxu0 %vm280_vm1, %v10419_v17 }
 0x11a   : > { %v1249_v1 = vpop.f32.mrf.mxu0 }
 0x11b   : > { %v10976_v11 = vpop.f32.mrf.mxu1  ;;  %v10979_v9 = vadd.f32 %v1249_v1, %v10775_v59  ;;  %v10981_v14 = vadd.f32 %v9192_v38, %v1401_v10  ;;  %v3974_v1 = vld [vmem:[%s13306_s4 + $0x4] sm:$0xf] }
 0x11c   : > { %v9145_v22 = vpop.f32.mrf.mxu0  ;;  %9444 = vmatmul.mubr.msk.f32.gmra.mxu0 %vm280_vm1, %v10428_v21  ;;  %9485 = vmatprep.subr.msk.mxu1 %vm488_vm0, %v3974_v1 }
 0x11d   : > { %v9195_v5 = vpop.f32.mrf.mxu1  ;;  %v1403_v7 = vadd.f32 %v9145_v22, %v10781_v20  ;;  %9446 = vmatprep.mubr.msk.f32.mxu0 %vm280_vm1, %v10433_v19  ;;  %9486 = vmatpush3.msk.msra.mxu1 %vm488_vm0, %v3974_v1 }
 0x11e   : > { %v1259_v16 = vpop.f32.mrf.mxu0 }
 0x11f   : > { %v10988_v17 = vpop.f32.mrf.mxu1  ;;  %v10991_v42 = vadd.f32 %v1259_v16, %v10787_v61  ;;  %v10993_v59 = vadd.f32 %v9195_v5, %v1403_v7 }
 0x120   : > { %v9148_v38 = vpop.f32.mrf.mxu0  ;;  %9447 = vmatmul.mubr.msk.f32.gmra.mxu0 %vm280_vm1, %v10442_v25 }
 0x121   : > { %v9198_v12 = vpop.f32.mrf.mxu1  ;;  %v1405_v21 = vadd.f32 %v9148_v38, %v10793_v24  ;;  %9449 = vmatprep.mubr.msk.f32.mxu0 %vm280_vm1, %v10447_v23 }
 0x122   : > { %v1269_v20 = vpop.f32.mrf.mxu0 }
 0x123   : > { %v11000_v19 = vpop.f32.mrf.mxu1  ;;  %v11003_v10 = vadd.f32 %v1269_v20, %v10799_v6  ;;  %v11005_v61 = vadd.f32 %v9198_v12, %v1405_v21 }
 0x124   : > { %v9151_v22 = vpop.f32.mrf.mxu0  ;;  %9450 = vmatmul.mubr.msk.f32.gmra.mxu0 %vm280_vm1, %v10456_v29 }
 0x125   : > { %v9201_v25 = vpop.f32.mrf.mxu1  ;;  %v1407_v23 = vadd.f32 %v9151_v22, %v10805_v28  ;;  %9452 = vmatprep.mubr.msk.f32.mxu0 %vm280_vm1, %v10461_v27 }
 0x126   : > { %v1279_v24 = vpop.f32.mrf.mxu0 }
 0x127   : > { %v11017_v6 = vpop.f32.mrf.mxu1  ;;  %v11020_v5 = vadd.f32 %v1279_v24, %v10811_v18  ;;  %v11022_v7 = vadd.f32 %v9201_v25, %v1407_v23 }
 0x128   : > { %v9154_v16 = vpop.f32.mrf.mxu0  ;;  %9453 = vmatmul.mubr.msk.f32.gmra.mxu0 %vm280_vm1, %v10470_v33 }
 0x129   : > { %v9204_v29 = vpop.f32.mrf.mxu1  ;;  %v1409_v28 = vadd.f32 %v9154_v16, %v10817_v32  ;;  %9455 = vmatprep.mubr.msk.f32.mxu0 %vm280_vm1, %v10475_v31 }
 0x12a   : > { %v1289_v27 = vpop.f32.mrf.mxu0 }
 0x12b   : > { %v11029_v38 = vpop.f32.mrf.mxu1  ;;  %v11032_v12 = vadd.f32 %v1289_v27, %v10823_v55  ;;  %v11034_v18 = vadd.f32 %v9204_v29, %v1409_v28  ;;  %v8061_v28 = vld [vmem:[%s10028_s15 + $0x122] sm:$0xff] }
 0x12c   : > { %v9157_v21 = vpop.f32.mrf.mxu0  ;;  %9456 = vmatmul.mubr.msk.f32.gmra.mxu0 %vm280_vm1, %v10484_v37 }
 0x12d   : > { %v9207_v20 = vpop.f32.mrf.mxu1  ;;  %v1411_v33 = vadd.f32 %v9157_v21, %v10829_v36  ;;  %9458 = vmatprep.mubr.msk.f32.mxu0 %vm280_vm1, %v10489_v35 }
 0x12e   : > { %v1299_v32 = vpop.f32.mrf.mxu0 }
 0x12f   : > { %v11041_v31 = vpop.f32.mrf.mxu1  ;;  %v11044_v1 = vadd.f32 %v1299_v32, %v10835_v4  ;;  %v11046_v55 = vadd.f32 %v9207_v20, %v1411_v33  ;;  %v8063_v33 = vld [vmem:[%s10028_s15 + $0x13a] sm:$0xff] }
 0x130   : > { %v9160_v22 = vpop.f32.mrf.mxu0  ;;  %9459 = vmatmul.mubr.msk.f32.gmra.mxu0 %vm280_vm1, %v10498_v41 }
 0x131   : > { %v9210_v37 = vpop.f32.mrf.mxu1  ;;  %v1413_v36 = vadd.f32 %v9160_v22, %v10841_v40  ;;  %9461 = vmatprep.mubr.msk.f32.mxu0 %vm280_vm1, %v10503_v39  ;;  %v963_v40 = vadd.f32 %v10861_v34, %v10859_v46  ;;  %v8060_v39 = vld [vmem:[%s10028_s15 + $0x112] sm:$0xff] }
 0x132   : > { %v1309_v35 = vpop.f32.mrf.mxu0 }
 0x133   : > { %v11053_v25 = vpop.f32.mrf.mxu1  ;;  %v11056_v4 = vadd.f32 %v1309_v35, %v10847_v57  ;;  %v11058_v23 = vadd.f32 %v9210_v37, %v1413_v36 }
 0x134   : > { %v9163_v24 = vpop.f32.mrf.mxu0  ;;  %9462 = vmatmul.mubr.msk.f32.gmra.mxu0 %vm280_vm1, %v10512_v45 }
 0x135   : > { %v9213_v41 = vpop.f32.mrf.mxu1  ;;  %v1415_v16 = vadd.f32 %v9163_v24, %v10853_v44  ;;  %9464 = vmatprep.mubr.msk.f32.mxu0 %vm280_vm1, %v10517_v43  ;;  %v8062_v43 = vld [vmem:[%s10028_s15 + $0x12a] sm:$0xff] }
 0x136   : > { %v1319_v57 = vpop.f32.mrf.mxu0 }
 0x137   : > { %v11068_v29 = vpop.f32.mrf.mxu1  ;;  %v11071_v27 = vadd.f32 %v1319_v57, %v963_v40  ;;  %v11073_v21 = vadd.f32 %v9213_v41, %v1415_v16  ;;  %v8065_v41 = vld [vmem:[%s10028_s15 + $0x152] sm:$0xff] }
 0x138   : > { %v9166_v45 = vpop.f32.mrf.mxu0  ;;  %9465 = vmatmul.mubr.msk.f32.gmra.mxu0 %vm280_vm1, %v8060_v39 }
 0x139   : > { %v9216_v46 = vpop.f32.mrf.mxu1  ;;  %v1417_v44 = vadd.f32 %v9166_v45, %v10867_v48  ;;  %9467 = vmatprep.mubr.msk.f32.mxu0 %vm280_vm1, %v8061_v28  ;;  %v8064_v48 = vld [vmem:[%s10028_s15 + $0x142] sm:$0xff] }
 0x13a   : > { %v11079_v34 = vpop.f32.mrf.mxu0 }
 0x13b   : > { %v11081_v20 = vpop.f32.mrf.mxu1  ;;  %v11084_v32 = vadd.f32 %v9216_v46, %v1417_v44  ;;  %v8067_v46 = vld [vmem:[%s10028_s15 + $0x16a] sm:$0xff] }
 0x13c   : > { %13437 = vst [vmem:[#allocation6_spill] sm:$0xff] %v11081_v20  ;;  %v9169_v22 = vpop.f32.mrf.mxu0  ;;  %9468 = vmatmul.mubr.msk.f32.gmra.mxu0 %vm280_vm1, %v8062_v43 }
 0x13d   : > { %v9219_v37 = vpop.f32.mrf.mxu1  ;;  %v1419_v36 = vadd.f32 %v9169_v22, %v10881_v52  ;;  %9470 = vmatprep.mubr.msk.f32.mxu0 %vm280_vm1, %v8063_v33  ;;  %v8066_v52 = vld [vmem:[%s10028_s15 + $0x15a] sm:$0xff] }
 0x13e   : > { %v11090_v35 = vpop.f32.mrf.mxu0 }
 0x13f   : > { %v11092_v24 = vpop.f32.mrf.mxu1  ;;  %v11095_v40 = vadd.f32 %v9219_v37, %v1419_v36 }
 0x140   : > { %13438 = vst [vmem:[#allocation7_spill] sm:$0xff] %v11092_v24  ;;  %v9172_v16 = vpop.f32.mrf.mxu0  ;;  %9471 = vmatmul.mubr.msk.f32.gmra.mxu0 %vm280_vm1, %v8064_v48 }
 0x141   : > { %v9222_v39 = vpop.f32.mrf.mxu1  ;;  %v1421_v57 = vadd.f32 %v9172_v16, %v10895_v56  ;;  %9473 = vmatprep.mubr.msk.f32.mxu0 %vm280_vm1, %v8065_v41  ;;  %v8068_v56 = vld [vmem:[%s10028_s15 + $0x172] sm:$0xff] }
 0x142   : > { %v11101_v28 = vpop.f32.mrf.mxu0 }
 0x143   : > { %v11103_v45 = vpop.f32.mrf.mxu1  ;;  %v11106_v44 = vadd.f32 %v9222_v39, %v1421_v57 }
 0x144   : > { %13439 = vst [vmem:[#allocation8_spill] sm:$0xff] %v11103_v45  ;;  %v9175_v43 = vpop.f32.mrf.mxu0  ;;  %9474 = vmatmul.mubr.msk.f32.gmra.mxu0 %vm280_vm1, %v8066_v52  ;;  %v8071_v52 = vld [vmem:[%s10028_s15 + $0x19a] sm:$0xff] }
 0x145   : > { %v9225_v33 = vpop.f32.mrf.mxu1  ;;  %v1423_v22 = vadd.f32 %v9175_v43, %v10909_v60  ;;  %9476 = vmatprep.mubr.msk.f32.mxu0 %vm280_vm1, %v8067_v46 }
 0x146   : > { %v11112_v37 = vpop.f32.mrf.mxu0 }
 0x147   : > { %v11114_v36 = vpop.f32.mrf.mxu1  ;;  %v11116_v48 = vadd.f32 %v9225_v33, %v1423_v22 }
 0x148   : > { %13440 = vst [vmem:[#allocation9_spill] sm:$0xff] %v11114_v36  ;;  %v9178_v41 = vpop.f32.mrf.mxu0  ;;  %9477 = vmatmul.mubr.msk.f32.gmra.mxu0 %vm280_vm1, %v8068_v56 }
 0x149   : > { %v9228_v16 = vpop.f32.mrf.mxu1  ;;  %v1425_v39 = vadd.f32 %v9178_v41, %v10923_v0  ;;  %9479 = vmatprep.mubr.msk.f32.mxu0 %vm280_vm1, %v10727_v47  ;;  %v8072_v0 = vld [vmem:[%s10028_s15 + $0x1a2] sm:$0xff] }
 0x14a   : > { %v11122_v60 = vpop.f32.mrf.mxu0 }
 0x14b   : > { %13441 = vst [vmem:[#allocation10_spill] sm:$0xff] %v11122_v60  ;;  %v11124_v57 = vpop.f32.mrf.mxu1  ;;  %v11127_v46 = vadd.f32 %v9228_v16, %v1425_v39 }
 0x14c   : > { %13442 = vst [vmem:[#allocation11_spill] sm:$0xff] %v11124_v57  ;;  %v9181_v43 = vpop.f32.mrf.mxu0  ;;  %9480 = vmatmul.mubr.msk.f32.gmra.mxu0 %vm280_vm1, %v10741_v53 }
 0x14d   : > { %v9231_v33 = vpop.f32.mrf.mxu1  ;;  %v1427_v22 = vadd.f32 %v9181_v43, %v10939_v49  ;;  %9482 = vmatprep.mubr.msk.f32.mxu0 %vm280_vm1, %v8071_v52 }
 0x14e   : > { %v11134_v56 = vpop.f32.mrf.mxu0 }
 0x14f   : > { %13443 = vst [vmem:[#allocation12_spill] sm:$0xff] %v11134_v56  ;;  %v11136_v47 = vpop.f32.mrf.mxu1  ;;  %v11138_v41 = vadd.f32 %v9231_v33, %v1427_v22 }
 0x150   : > { %13444 = vst [vmem:[#allocation13_spill] sm:$0xff] %v11136_v47  ;;  %v9184_v57 = vpop.f32.mrf.mxu0  ;;  %9483 = vmatmul.mubr.msk.f32.gmra.mxu0 %vm280_vm1, %v8072_v0 }
 0x151   : > { %v9234_v16 = vpop.f32.mrf.mxu1  ;;  %v1429_v39 = vadd.f32 %v9184_v57, %v10951_v63  ;;  %v9954_v63 = vmov 0.0  }
 0x152   : > { %v11142_v36 = vpop.f32.mrf.mxu0  ;;  %281 = vst.msk [vmem:[#allocation2] sm:$0xff] %vm280_vm1, %v9954_v63  ;;  %282 = vst.msk [vmem:[#allocation2 + $0x8] sm:$0xff] %vm280_vm1, %v9954_v63 }
 0x153   : > { %13445 = vst [vmem:[#allocation14_spill] sm:$0xff] %v11142_v36  ;;  %v11144_v53 = vpop.f32.mrf.mxu1  ;;  %v11146_v49 = vadd.f32 %v9234_v16, %v1429_v39  ;;  %286 = vst.msk [vmem:[#allocation2 + $0x198] sm:$0xff] %vm280_vm1, %v9954_v63  ;;  %v3941_v36 = vld [vmem:[%s13306_s4] sm:$0xf] }
 0x154   : > { %13446 = vst [vmem:[#allocation15_spill] sm:$0xff] %v11144_v53  ;;  %v9239_v52 = vpop.f32.mrf.mxu0  ;;  %287 = vst.msk [vmem:[#allocation2 + $0x1a0] sm:$0xff] %vm280_vm1, %v9954_v63  ;;  %9535 = vmatprep.subr.msk.mxu0 %vm488_vm0, %v3941_v36 }
 0x155   : > { %v11148_v43 = vpop.f32.mrf.mxu1  ;;  %v11151_v56 = vadd.f32 %v9239_v52, %v10969_v13  ;;  %290 = vst.msk [vmem:[#allocation2] sm:$0x1] %vm289_vm2, %v9954_v63  ;;  %291 = vst.msk [vmem:[#allocation2 + $0x18] sm:$0x1] %vm289_vm2, %v9954_v63  ;;  %9536 = vmatpush3.msk.msra.mxu0 %vm488_vm0, %v3941_v36 }
 0x156   : > { %v11153_v33 = vpop.f32.mrf.mxu0  ;;  %292 = vst.msk [vmem:[#allocation2 + $0x30] sm:$0x1] %vm289_vm2, %v9954_v63  ;;  %293 = vst.msk [vmem:[#allocation2 + $0x48] sm:$0x1] %vm289_vm2, %v9954_v63 }
 0x157   : > { %v11155_v22 = vpop.f32.mrf.mxu1  ;;  %294 = vst.msk [vmem:[#allocation2 + $0x60] sm:$0x1] %vm289_vm2, %v9954_v63  ;;  %295 = vst.msk [vmem:[#allocation2 + $0x78] sm:$0x1] %vm289_vm2, %v9954_v63 }
 0x158   : > { %v9242_v0 = vpop.f32.mrf.mxu0  ;;  %296 = vst.msk [vmem:[#allocation2 + $0x90] sm:$0x1] %vm289_vm2, %v9954_v63  ;;  %297 = vst.msk [vmem:[#allocation2 + $0xa8] sm:$0x1] %vm289_vm2, %v9954_v63 }
 0x159   : > { %v11157_v47 = vpop.f32.mrf.mxu1  ;;  %v11164_v13 = vadd.f32 %v9242_v0, %v10981_v14  ;;  %298 = vst.msk [vmem:[#allocation2 + $0xc0] sm:$0x1] %vm289_vm2, %v9954_v63  ;;  %299 = vst.msk [vmem:[#allocation2 + $0xd8] sm:$0x1] %vm289_vm2, %v9954_v63 }
 0x15a   : > { %300 = vst.msk [vmem:[#allocation2 + $0xf0] sm:$0x1] %vm289_vm2, %v9954_v63  ;;  %301 = vst.msk [vmem:[#allocation2 + $0x108] sm:$0x1] %vm289_vm2, %v9954_v63  ;;  %v11200_v14 = vpop.f32.mrf.mxu0 }
 0x15b   : > { %302 = vst.msk [vmem:[#allocation2 + $0x120] sm:$0x1] %vm289_vm2, %v9954_v63  ;;  %303 = vst.msk [vmem:[#allocation2 + $0x138] sm:$0x1] %vm289_vm2, %v9954_v63  ;;  %v11202_v57 = vpop.f32.mrf.mxu1 }
 0x15c   : > { %304 = vst.msk [vmem:[#allocation2 + $0x150] sm:$0x1] %vm289_vm2, %v9954_v63  ;;  %305 = vst.msk [vmem:[#allocation2 + $0x168] sm:$0x1] %vm289_vm2, %v9954_v63  ;;  %v9245_v16 = vpop.f32.mrf.mxu0  ;;  %v3909_v60 = vld [vmem:[#allocation2] sm:$0xff] }
 0x15d   : > { %306 = vst.msk [vmem:[#allocation2 + $0x180] sm:$0x1] %vm289_vm2, %v9954_v63  ;;  %307 = vst.msk [vmem:[#allocation2 + $0x198] sm:$0x1] %vm289_vm2, %v9954_v63  ;;  %v11206_v39 = vpop.f32.mrf.mxu1  ;;  %v11209_v52 = vadd.f32 %v9245_v16, %v10993_v59  ;;  %v3910_v16 = vld [vmem:[#allocation2 + $0x8] sm:$0xff]  ;;  %9537 = vmatprep.mubr.msk.f32.mxu0 %vm280_vm1, %v3909_v60 }
 0x15e   : > { %309 = vst.msk [vmem:[#allocation2 + $0x29] sm:$0x1] %vm289_vm2, %v9954_v63  ;;  %310 = vst.msk [vmem:[#allocation2 + $0x41] sm:$0x1] %vm289_vm2, %v9954_v63  ;;  %v11211_v0 = vpop.f32.mrf.mxu0  ;;  %9538 = vmatmul.mubr.msk.f32.vlgmr.msra.gmra.mxu0 %vm280_vm1, %v3910_v16  ;;  %v4655_v16 = vld [vmem:[%s13306_s4 + $0x8] sm:$0xf] }
 0x15f   : > { %311 = vst.msk [vmem:[#allocation2 + $0x59] sm:$0x1] %vm289_vm2, %v9954_v63  ;;  %312 = vst.msk [vmem:[#allocation2 + $0x71] sm:$0x1] %vm289_vm2, %v9954_v63  ;;  %v11213_v53 = vpop.f32.mrf.mxu1  ;;  %9585 = vmatprep.subr.msk.mxu1 %vm488_vm0, %v4655_v16 }
 0x160   : > { %313 = vst.msk [vmem:[#allocation2 + $0x89] sm:$0x1] %vm289_vm2, %v9954_v63  ;;  %314 = vst.msk [vmem:[#allocation2 + $0xa1] sm:$0x1] %vm289_vm2, %v9954_v63  ;;  %v9248_v45 = vpop.f32.mrf.mxu0 }
 0x161   : > { %315 = vst.msk [vmem:[#allocation2 + $0xb9] sm:$0x1] %vm289_vm2, %v9954_v63  ;;  %316 = vst.msk [vmem:[#allocation2 + $0xd1] sm:$0x1] %vm289_vm2, %v9954_v63  ;;  %v11218_v24 = vpop.f32.mrf.mxu1 }
 0x162   : > { %317 = vst.msk [vmem:[#allocation2 + $0xe9] sm:$0x1] %vm289_vm2, %v9954_v63  ;;  %318 = vst.msk [vmem:[#allocation2 + $0x101] sm:$0x1] %vm289_vm2, %v9954_v63 }
 0x163   : > { %319 = vst.msk [vmem:[#allocation2 + $0x119] sm:$0x1] %vm289_vm2, %v9954_v63  ;;  %320 = vst.msk [vmem:[#allocation2 + $0x131] sm:$0x1] %vm289_vm2, %v9954_v63 }
 0x164   : > { %321 = vst.msk [vmem:[#allocation2 + $0x149] sm:$0x1] %vm289_vm2, %v9954_v63  ;;  %322 = vst.msk [vmem:[#allocation2 + $0x161] sm:$0x1] %vm289_vm2, %v9954_v63 }
 0x165   : > { %323 = vst.msk [vmem:[#allocation2 + $0x179] sm:$0x1] %vm289_vm2, %v9954_v63  ;;  %324 = vst.msk [vmem:[#allocation2 + $0x191] sm:$0x1] %vm289_vm2, %v9954_v63 }
 0x166   : > { %284 = vst.msk [vmem:[#allocation2 + $0x10] sm:$0x3] %vm283_vm3, %v9954_v63  ;;  %288 = vst.msk [vmem:[#allocation2 + $0x1a8] sm:$0x3] %vm283_vm3, %v9954_v63 }
 0x167   : > { %308 = vst.msk [vmem:[#allocation2 + $0x11] sm:$0x1] %vm289_vm2, %v9954_v63  ;;  %325 = vst.msk [vmem:[#allocation2 + $0x1a9] sm:$0x1] %vm289_vm2, %v9954_v63  ;;  %v3942_v63 = vld [vmem:[#allocation2 + $0x1] sm:$0xff] }
 0x168   : > { %13447 = vst [vmem:[#allocation16_spill] sm:$0xff] %v11206_v39  ;;  %13448 = vst [vmem:[#allocation17_spill] sm:$0xff] %v11209_v52  ;;  %v11222_v39 = vadd.f32 %v9248_v45, %v11005_v61  ;;  %9487 = vmatprep.mubr.msk.f32.mxu1 %vm280_vm1, %v3942_v63  ;;  %v11228_v52 = vpop.f32.mrf.mxu1 }
 0x169   : > { %13449 = vst [vmem:[#allocation18_spill] sm:$0xff] %v11213_v53  ;;  %13450 = vst [vmem:[#allocation19_spill] sm:$0xff] %v11218_v24  ;;  %v11226_v53 = vpop.f32.mrf.mxu0 }
 0x16a   : > { %13451 = vst [vmem:[#allocation20_spill] sm:$0xff] %v11222_v39  ;;  %13452 = vst [vmem:[#allocation21_spill] sm:$0xff] %v11228_v52  ;;  %v11233_v20 = vpop.f32.mrf.mxu1 }
 0x16b   : > { %v9251_v24 = vpop.f32.mrf.mxu0  ;;  %13453 = vst [vmem:[#allocation22_spill] sm:$0xff] %v11233_v20 }
 0x16c   : > { %v11236_v61 = vadd.f32 %v9251_v24, %v11022_v7  ;;  %v11240_v36 = vpop.f32.mrf.mxu1 }
 0x16d   : > { %v3943_v59 = vld [vmem:[#allocation2 + $0x9] sm:$0xff]  ;;  %v11238_v45 = vpop.f32.mrf.mxu0  ;;  %13455 = vst [vmem:[#allocation24_spill] sm:$0xff] %v11240_v36 }
 0x16e   : > { %9488 = vmatmul.mubr.msk.f32.vlgmr.msra.gmra.mxu1 %vm280_vm1, %v3943_v59  ;;  %13454 = vst [vmem:[#allocation23_spill] sm:$0xff] %v11236_v61  ;;  %v11242_v39 = vpop.f32.mrf.mxu1 }
 0x16f   : > { %v9254_v63 = vpop.f32.mrf.mxu0  ;;  %13456 = vst [vmem:[#allocation25_spill] sm:$0xff] %v11242_v39  ;;  %9586 = vmatpush3.msk.msra.mxu1 %vm488_vm0, %v4655_v16 }
 0x170   : > { %v11245_v52 = vadd.f32 %v9254_v63, %v11034_v18  ;;  %v11249_v59 = vpop.f32.mrf.mxu1 }
 0x171   : > { %v11247_v60 = vpop.f32.mrf.mxu0  ;;  %13459 = vst [vmem:[#allocation28_spill] sm:$0xff] %v11249_v59 }
 0x172   : > { %13457 = vst [vmem:[#allocation26_spill] sm:$0xff] %v11245_v52  ;;  %13458 = vst [vmem:[#allocation27_spill] sm:$0xff] %v11247_v60  ;;  %v11254_v24 = vpop.f32.mrf.mxu1 }
 0x173   : > { %v9257_v7 = vpop.f32.mrf.mxu0  ;;  %13460 = vst [vmem:[#allocation31_spill] sm:$0xff] %v11254_v24 }
 0x174   : > { %v11258_v36 = vadd.f32 %v9257_v7, %v11046_v55  ;;  %v11263_v63 = vpop.f32.mrf.mxu1 }
 0x175   : > { %v11261_v18 = vpop.f32.mrf.mxu0  ;;  %13463 = vst [vmem:[#allocation34_spill] sm:$0xff] %v11263_v63 }
 0x176   : > { %13461 = vst [vmem:[#allocation32_spill] sm:$0xff] %v11258_v36  ;;  %13462 = vst [vmem:[#allocation33_spill] sm:$0xff] %v11261_v18  ;;  %v11265_v59 = vpop.f32.mrf.mxu1 }
 0x177   : > { %v9260_v39 = vpop.f32.mrf.mxu0  ;;  %13464 = vst [vmem:[#allocation35_spill] sm:$0xff] %v11265_v59 }
 0x178   : > { %v11268_v52 = vadd.f32 %v9260_v39, %v11058_v23  ;;  %v11272_v24 = vpop.f32.mrf.mxu1 }
 0x179   : > { %v11270_v60 = vpop.f32.mrf.mxu0  ;;  %13467 = vst [vmem:[#allocation38_spill] sm:$0xff] %v11272_v24 }
 0x17a   : > { %13465 = vst [vmem:[#allocation36_spill] sm:$0xff] %v11268_v52  ;;  %13466 = vst [vmem:[#allocation37_spill] sm:$0xff] %v11270_v60  ;;  %v11274_v61 = vpop.f32.mrf.mxu1 }
 0x17b   : > { %v9263_v20 = vpop.f32.mrf.mxu0  ;;  %13468 = vst [vmem:[#allocation39_spill] sm:$0xff] %v11274_v61 }
 0x17c   : > { %v11277_v55 = vadd.f32 %v9263_v20, %v11073_v21  ;;  %v11281_v7 = vpop.f32.mrf.mxu1 }
 0x17d   : > { %v11279_v16 = vpop.f32.mrf.mxu0  ;;  %13471 = vst [vmem:[#allocation42_spill] sm:$0xff] %v11281_v7 }
 0x17e   : > { %13469 = vst [vmem:[#allocation40_spill] sm:$0xff] %v11277_v55  ;;  %13470 = vst [vmem:[#allocation41_spill] sm:$0xff] %v11279_v16  ;;  %v11283_v36 = vpop.f32.mrf.mxu1 }
 0x17f   : > { %v9266_v63 = vpop.f32.mrf.mxu0  ;;  %13472 = vst [vmem:[#allocation43_spill] sm:$0xff] %v11283_v36 }
 0x180   : > { %v11286_v23 = vadd.f32 %v9266_v63, %v11084_v32  ;;  %v11290_v59 = vpop.f32.mrf.mxu1 }
 0x181   : > { %v11288_v39 = vpop.f32.mrf.mxu0  ;;  %13475 = vst [vmem:[#allocation46_spill] sm:$0xff] %v11290_v59 }
 0x182   : > { %13473 = vst [vmem:[#allocation44_spill] sm:$0xff] %v11286_v23  ;;  %13474 = vst [vmem:[#allocation45_spill] sm:$0xff] %v11288_v39  ;;  %v11292_v52 = vpop.f32.mrf.mxu1 }
 0x183   : > { %v9269_v24 = vpop.f32.mrf.mxu0  ;;  %13476 = vst [vmem:[#allocation47_spill] sm:$0xff] %v11292_v52 }
 0x184   : > { %v11295_v21 = vadd.f32 %v9269_v24, %v11095_v40  ;;  %v11299_v61 = vpop.f32.mrf.mxu1 }
 0x185   : > { %v11297_v20 = vpop.f32.mrf.mxu0  ;;  %13479 = vst [vmem:[#allocation50_spill] sm:$0xff] %v11299_v61 }
 0x186   : > { %13477 = vst [vmem:[#allocation48_spill] sm:$0xff] %v11295_v21  ;;  %13478 = vst [vmem:[#allocation49_spill] sm:$0xff] %v11297_v20  ;;  %v11301_v55 = vpop.f32.mrf.mxu1 }
 0x187   : > { %v9272_v7 = vpop.f32.mrf.mxu0  ;;  %13480 = vst [vmem:[#allocation51_spill] sm:$0xff] %v11301_v55 }
 0x188   : > { %v11304_v32 = vadd.f32 %v9272_v7, %v11106_v44  ;;  %v11308_v36 = vpop.f32.mrf.mxu1 }
 0x189   : > { %v11306_v63 = vpop.f32.mrf.mxu0  ;;  %13483 = vst [vmem:[#allocation54_spill] sm:$0xff] %v11308_v36 }
 0x18a   : > { %13481 = vst [vmem:[#allocation52_spill] sm:$0xff] %v11304_v32  ;;  %13482 = vst [vmem:[#allocation53_spill] sm:$0xff] %v11306_v63  ;;  %v11310_v23 = vpop.f32.mrf.mxu1 }
 0x18b   : > { %v9275_v59 = vpop.f32.mrf.mxu0  ;;  %13484 = vst [vmem:[#allocation55_spill] sm:$0xff] %v11310_v23 }
 0x18c   : > { %v11313_v40 = vadd.f32 %v9275_v59, %v11116_v48  ;;  %v11317_v52 = vpop.f32.mrf.mxu1 }
 0x18d   : > { %v11315_v24 = vpop.f32.mrf.mxu0  ;;  %13487 = vst [vmem:[#allocation58_spill] sm:$0xff] %v11317_v52 }
 0x18e   : > { %13485 = vst [vmem:[#allocation56_spill] sm:$0xff] %v11313_v40  ;;  %13486 = vst [vmem:[#allocation57_spill] sm:$0xff] %v11315_v24  ;;  %v11319_v21 = vpop.f32.mrf.mxu1 }
 0x18f   : > { %v9278_v61 = vpop.f32.mrf.mxu0  ;;  %13488 = vst [vmem:[#allocation59_spill] sm:$0xff] %v11319_v21 }
 0x190   : > { %v11322_v44 = vadd.f32 %v9278_v61, %v11127_v46  ;;  %v11326_v55 = vpop.f32.mrf.mxu1 }
 0x191   : > { %v11324_v7 = vpop.f32.mrf.mxu0  ;;  %13491 = vst [vmem:[#allocation62_spill] sm:$0xff] %v11326_v55 }
 0x192   : > { %13489 = vst [vmem:[#allocation60_spill] sm:$0xff] %v11322_v44  ;;  %13490 = vst [vmem:[#allocation61_spill] sm:$0xff] %v11324_v7  ;;  %v11328_v32 = vpop.f32.mrf.mxu1  ;;  %v5433_v44 = vld [vmem:[%s13306_s4 + $0x10] sm:$0xf] }
 0x193   : > { %v9281_v36 = vpop.f32.mrf.mxu0  ;;  %13492 = vst [vmem:[#allocation63_spill] sm:$0xff] %v11328_v32  ;;  %9685 = vmatprep.subr.msk.mxu1 %vm488_vm0, %v5433_v44 }
 0x194   : > { %v11331_v48 = vadd.f32 %v9281_v36, %v11138_v41  ;;  %v11335_v23 = vpop.f32.mrf.mxu1 }
 0x195   : > { %v11333_v59 = vpop.f32.mrf.mxu0  ;;  %13495 = vst [vmem:[#allocation66_spill] sm:$0xff] %v11335_v23 }
 0x196   : > { %13493 = vst [vmem:[#allocation64_spill] sm:$0xff] %v11331_v48  ;;  %13494 = vst [vmem:[#allocation65_spill] sm:$0xff] %v11333_v59  ;;  %v11337_v40 = vpop.f32.mrf.mxu1 }
 0x197   : > { %v9284_v52 = vpop.f32.mrf.mxu0  ;;  %13496 = vst [vmem:[#allocation67_spill] sm:$0xff] %v11337_v40 }
 0x198   : > { %v11340_v46 = vadd.f32 %v9284_v52, %v11146_v49  ;;  %v11344_v21 = vpop.f32.mrf.mxu1 }
 0x199   : > { %v11342_v61 = vpop.f32.mrf.mxu0  ;;  %13499 = vst [vmem:[#allocation70_spill] sm:$0xff] %v11344_v21 }
 0x19a   : > { %13497 = vst [vmem:[#allocation68_spill] sm:$0xff] %v11340_v46  ;;  %13498 = vst [vmem:[#allocation69_spill] sm:$0xff] %v11342_v61  ;;  %v11348_v32 = vpop.f32.mrf.mxu1  ;;  %v5044_v61 = vld [vmem:[%s13306_s4 + $0xc] sm:$0xf] }
 0x19b   : > { %v11346_v55 = vpop.f32.mrf.mxu0  ;;  %9635 = vmatprep.subr.msk.mxu0 %vm488_vm0, %v5044_v61 }
 0x19c   : > { %v11352_v36 = vpop.f32.mrf.mxu1  ;;  %9636 = vmatpush3.msk.msra.mxu0 %vm488_vm0, %v5044_v61 }
 0x19d   : > { %v11350_v41 = vpop.f32.mrf.mxu0 }
 0x19e   : > { %v11356_v23 = vpop.f32.mrf.mxu1 }
 0x19f   : > { %v11354_v48 = vpop.f32.mrf.mxu0 }
 0x1a0   : > { %v11362_v52 = vpop.f32.mrf.mxu1 }
 0x1a1   : > { %v11358_v40 = vpop.f32.mrf.mxu0 }
 0x1a2   : > { %v11371_v59 = vpop.f32.mrf.mxu1 }
 0x1a3   : > { %v11360_v49 = vpop.f32.mrf.mxu0 }
 0x1a4   : > { %v11383_v63 = vpop.f32.mrf.mxu1 }
 0x1a5   : > { %v11364_v46 = vpop.f32.mrf.mxu0  ;;  %13503 = vst [vmem:[#allocation74_spill] sm:$0xff] %v11383_v63 }
 0x1a6   : > { %v11389_v16 = vpop.f32.mrf.mxu1 }
 0x1a7   : > { %v11366_v21 = vpop.f32.mrf.mxu0  ;;  %13506 = vst [vmem:[#allocation77_spill] sm:$0xff] %v11389_v16 }
 0x1a8   : > { %13500 = vst [vmem:[#allocation71_spill] sm:$0xff] %v11366_v21  ;;  %v11395_v21 = vpop.f32.mrf.mxu1 }
 0x1a9   : > { %v11377_v7 = vpop.f32.mrf.mxu0  ;;  %13509 = vst [vmem:[#allocation80_spill] sm:$0xff] %v11395_v21 }
 0x1aa   : > { %13501 = vst [vmem:[#allocation72_spill] sm:$0xff] %v11377_v7  ;;  %v11401_v44 = vpop.f32.mrf.mxu1 }
 0x1ab   : > { %v11381_v24 = vpop.f32.mrf.mxu0  ;;  %13512 = vst [vmem:[#allocation83_spill] sm:$0xff] %v11401_v44 }
 0x1ac   : > { %13502 = vst [vmem:[#allocation73_spill] sm:$0xff] %v11381_v24 }
 0x1ad   : > { %v11385_v20 = vpop.f32.mrf.mxu0 }
 0x1ae   : > { %13504 = vst [vmem:[#allocation75_spill] sm:$0xff] %v11385_v20  ;;  %v11407_v20 = vpop.f32.mrf.mxu1 }
 0x1af   : > { %v11387_v39 = vpop.f32.mrf.mxu0  ;;  %13515 = vst [vmem:[#allocation86_spill] sm:$0xff] %v11407_v20 }
 0x1b0   : > { %13505 = vst [vmem:[#allocation76_spill] sm:$0xff] %v11387_v39 }
 0x1b1   : > { %v11391_v60 = vpop.f32.mrf.mxu0 }
 0x1b2   : > { %13507 = vst [vmem:[#allocation78_spill] sm:$0xff] %v11391_v60  ;;  %v11413_v60 = vpop.f32.mrf.mxu1 }
 0x1b3   : > { %v11393_v18 = vpop.f32.mrf.mxu0  ;;  %13518 = vst [vmem:[#allocation89_spill] sm:$0xff] %v11413_v60 }
 0x1b4   : > { %13508 = vst [vmem:[#allocation79_spill] sm:$0xff] %v11393_v18 }
 0x1b5   : > { %v11397_v7 = vpop.f32.mrf.mxu0 }
 0x1b6   : > { %13510 = vst [vmem:[#allocation81_spill] sm:$0xff] %v11397_v7  ;;  %v11419_v7 = vpop.f32.mrf.mxu1 }
 0x1b7   : > { %v11399_v61 = vpop.f32.mrf.mxu0  ;;  %13521 = vst [vmem:[#allocation92_spill] sm:$0xff] %v11419_v7 }
 0x1b8   : > { %13511 = vst [vmem:[#allocation82_spill] sm:$0xff] %v11399_v61 }
 0x1b9   : > { %v11403_v24 = vpop.f32.mrf.mxu0 }
 0x1ba   : > { %13513 = vst [vmem:[#allocation84_spill] sm:$0xff] %v11403_v24  ;;  %v11425_v24 = vpop.f32.mrf.mxu1 }
 0x1bb   : > { %v11405_v63 = vpop.f32.mrf.mxu0  ;;  %13524 = vst [vmem:[#allocation95_spill] sm:$0xff] %v11425_v24 }
 0x1bc   : > { %13514 = vst [vmem:[#allocation85_spill] sm:$0xff] %v11405_v63 }
 0x1bd   : > { %v11409_v39 = vpop.f32.mrf.mxu0 }
 0x1be   : > { %13516 = vst [vmem:[#allocation87_spill] sm:$0xff] %v11409_v39  ;;  %v11431_v39 = vpop.f32.mrf.mxu1 }
 0x1bf   : > { %v11411_v16 = vpop.f32.mrf.mxu0  ;;  %13527 = vst [vmem:[#allocation98_spill] sm:$0xff] %v11431_v39  ;;  %v13532_v39 = vld [vmem:[#allocation30_spill] sm:$0xff] }
 0x1c0   : > { %13517 = vst [vmem:[#allocation88_spill] sm:$0xff] %v11411_v16  ;;  %v983_v7 = vadd.f32 %v13532_v39, %v10887_v54  ;;  %v1023_v54 = vadd.f32 %v10947_v3, %v10945_v30 }
 0x1c1   : > { %v11415_v18 = vpop.f32.mrf.mxu0 }
 0x1c2   : > { %13519 = vst [vmem:[#allocation90_spill] sm:$0xff] %v11415_v18  ;;  %v11439_v18 = vpop.f32.mrf.mxu1 }
 0x1c3   : > { %v11417_v21 = vpop.f32.mrf.mxu0 }
 0x1c4   : > { %13520 = vst [vmem:[#allocation91_spill] sm:$0xff] %v11417_v21  ;;  %v1788_v21 = vadd.f32 %v10964_v8, %v10967_v15  ;;  %v2567_v8 = vadd.f32 %v11148_v43, %v11151_v56  ;;  %v11454_v15 = vpop.f32.mrf.mxu1 }
 0x1c5   : > { %v11421_v61 = vpop.f32.mrf.mxu0 }
 0x1c6   : > { %13522 = vst [vmem:[#allocation93_spill] sm:$0xff] %v11421_v61 }
 0x1c7   : > { %v11423_v44 = vpop.f32.mrf.mxu0 }
 0x1c8   : > { %13523 = vst [vmem:[#allocation94_spill] sm:$0xff] %v11423_v44  ;;  %v2177_v44 = vadd.f32 %v11153_v33, %v1788_v21  ;;  %v1003_v33 = vadd.f32 %v10917_v2, %v10915_v62  ;;  %v13533_v21 = vld [vmem:[#allocation3_spill] sm:$0xff]  ;;  %v1794_v62 = vadd.f32 %v11000_v19, %v11003_v10  ;;  %v1796_v2 = vadd.f32 %v11017_v6, %v11020_v5 }
 0x1c9   : > { %v11427_v63 = vpop.f32.mrf.mxu0  ;;  %v11494_v19 = vadd.f32 %v11041_v31, %v11044_v1  ;;  %v11498_v10 = vadd.f32 %v11053_v25, %v11056_v4  ;;  %v11510_v31 = vadd.f32 %v11068_v29, %v11071_v27  ;;  %v13536_v1 = vld [vmem:[#allocation6_spill] sm:$0xff] }
 0x1ca   : > { %13525 = vst [vmem:[#allocation96_spill] sm:$0xff] %v11427_v63  ;;  %v13531_v63 = vld [vmem:[#allocation29_spill] sm:$0xff]  ;;  %v2566_v56 = vadd.f32 %v11155_v22, %v2177_v44  ;;  %v1418_v22 = vadd.f32 %v11090_v35, %v983_v7  ;;  %v13537_v4 = vld [vmem:[#allocation10_spill] sm:$0xff] }
 0x1cb   : > { %v11429_v20 = vpop.f32.mrf.mxu0 }
 0x1cc   : > { %13526 = vst [vmem:[#allocation97_spill] sm:$0xff] %v11429_v20  ;;  %v973_v20 = vadd.f32 %v13531_v63, %v10873_v50 }
 0x1cd   : > { %v11433_v16 = vpop.f32.mrf.mxu0 }
 0x1ce   : > { %v1416_v30 = vadd.f32 %v11079_v34, %v973_v20 }
 0x1cf   : > { %v11435_v60 = vpop.f32.mrf.mxu0 }
 0x1d0   : > { %13528 = vst [vmem:[#allocation99_spill] sm:$0xff] %v11435_v60  ;;  %v1790_v60 = vadd.f32 %v10976_v11, %v10979_v9  ;;  %v13535_v11 = vld [vmem:[#allocation5_spill] sm:$0xff]  ;;  %v11513_v25 = vadd.f32 %v13536_v1, %v1416_v30 }
 0x1d1   : > { %v11441_v61 = vpop.f32.mrf.mxu0  ;;  %v11468_v9 = vadd.f32 %v13535_v11, %v10955_v51  ;;  %v11484_v51 = vadd.f32 %v11029_v38, %v11032_v12  ;;  %v1422_v12 = vadd.f32 %v11112_v37, %v1003_v33  ;;  %v11521_v37 = vld [vmem:[%s13304_s2] ss:$0 sm:$0xff] }
 0x1d2   : > { %13529 = vst [vmem:[#allocation100_spill] sm:$0xff] %v11441_v61  ;;  %v993_v61 = vadd.f32 %v10903_v26, %v10901_v58  ;;  %v2179_v43 = vadd.f32 %v11200_v14, %v1790_v60  ;;  %v2957_v58 = vadd.f32 %v11346_v55, %v2567_v8  ;;  %v1792_v26 = vadd.f32 %v10988_v17, %v10991_v42  ;;  %v11490_v42 = vpop.f32.mrf.mxu1  ;;  %v11539_v8 = vld [vmem:[%s13305_s3] ss:$0 sm:$0xff] }
 0x1d3   : > { %v11444_v24 = vpop.f32.mrf.mxu0  ;;  %v2569_v14 = vadd.f32 %v11157_v47, %v11164_v13  ;;  %v2956_v17 = vadd.f32 %v11350_v41, %v2566_v56  ;;  %v13538_v13 = vld [vmem:[#allocation17_spill] sm:$0xff]  ;;  %v13544_v56 = vld [vmem:[#allocation11_spill] sm:$0xff] }
 0x1d4   : > { %13530 = vst [vmem:[#allocation101_spill] sm:$0xff] %v11444_v24  ;;  %v13534_v24 = vld [vmem:[#allocation4_spill] sm:$0xff]  ;;  %v1420_v6 = vadd.f32 %v11101_v28, %v993_v61  ;;  %v2181_v5 = vadd.f32 %v11211_v0, %v1792_v26  ;;  %v2568_v34 = vadd.f32 %v11202_v57, %v2179_v43  ;;  %v3346_v35 = vadd.f32 %v11348_v32, %v2957_v58  ;;  %v13540_v57 = vld [vmem:[#allocation7_spill] sm:$0xff]  ;;  %v11528_v32 = vpop.f32.mrf.mxu1  ;;  %v13543_v33 = vld [vmem:[#allocation9_spill] sm:$0xff] }
 0x1d5   : > { %v1013_v50 = vadd.f32 %v13534_v24, %v13533_v21  ;;  %v11464_v39 = vpop.f32.mrf.mxu0  ;;  %v2959_v47 = vadd.f32 %v11354_v48, %v2569_v14  ;;  %v13539_v0 = vld [vmem:[#allocation16_spill] sm:$0xff]  ;;  %v11524_v20 = vadd.f32 %v13540_v57, %v1418_v22  ;;  %v3345_v29 = vadd.f32 %v11352_v36, %v2956_v17  ;;  %v13542_v48 = vld [vmem:[#allocation18_spill] sm:$0xff]  ;;  %v13547_v26 = vld [vmem:[#allocation19_spill] sm:$0xff] }
 0x1d6   : > { %v2571_v60 = vadd.f32 %v13539_v0, %v13538_v13  ;;  %v2958_v27 = vadd.f32 %v11358_v40, %v2568_v34  ;;  %v13541_v24 = vld [vmem:[#allocation8_spill] sm:$0xff]  ;;  %v2570_v41 = vadd.f32 %v13542_v48, %v2181_v5  ;;  %v2183_v61 = vadd.f32 %v11226_v53, %v1794_v62  ;;  %v11554_v17 = vpop.f32.mrf.mxu1  ;;  %v13550_v0 = vld [vmem:[#allocation13_spill] sm:$0xff]  ;;  %v13552_v57 = vld [vmem:[#allocation22_spill] sm:$0xff] }
 0x1d7   : > { %v11480_v3 = vpop.f32.mrf.mxu0  ;;  %v1424_v28 = vadd.f32 %v13537_v4, %v1013_v50  ;;  %v11531_v7 = vadd.f32 %v13541_v24, %v1420_v6  ;;  %v11542_v40 = vadd.f32 %v13543_v33, %v1422_v12  ;;  %v3348_v21 = vadd.f32 %v11356_v23, %v2959_v47  ;;  %v13545_v53 = vld [vmem:[#allocation12_spill] sm:$0xff]  ;;  %v13548_v12 = vld [vmem:[#allocation21_spill] sm:$0xff]  ;;  %v13549_v47 = vld [vmem:[#allocation71_spill] sm:$0xff] }
 0x1d8   : > { %v2961_v44 = vadd.f32 %v11360_v49, %v2571_v60  ;;  %v1426_v58 = vadd.f32 %v13545_v53, %v1023_v54  ;;  %v13546_v49 = vld [vmem:[#allocation20_spill] sm:$0xff]  ;;  %v2960_v30 = vadd.f32 %v11364_v46, %v2570_v41  ;;  %v3347_v14 = vadd.f32 %v11362_v52, %v2958_v27  ;;  %v13553_v27 = vld [vmem:[#allocation74_spill] sm:$0xff]  ;;  %v11571_v24 = vpop.f32.mrf.mxu1  ;;  %v13558_v53 = vld [vmem:[#allocation73_spill] sm:$0xff] }
 0x1d9   : > { %v11502_v38 = vpop.f32.mrf.mxu0  ;;  %v11547_v43 = vadd.f32 %v13544_v56, %v1424_v28  ;;  %v2573_v62 = vadd.f32 %v13547_v26, %v13546_v49  ;;  %v2572_v34 = vadd.f32 %v13548_v12, %v2183_v61 }
 0x1da   : > { %v3350_v54 = vadd.f32 %v11371_v59, %v2961_v44  ;;  %v11565_v60 = vadd.f32 %v13550_v0, %v1426_v58 }
 0x1db   : > { %v9439_v55 = vpop.f32.mrf.mxu0  ;;  %v2963_v1 = vadd.f32 %v13549_v47, %v2573_v62 }
 0x1dc   : > { %v3735_v63 = vadd.f32 %v9439_v55, %v3346_v35  ;;  %v2185_v35 = vadd.f32 %v11238_v45, %v1796_v2  ;;  %v13551_v55 = vld [vmem:[#allocation23_spill] sm:$0xff]  ;;  %v13554_v45 = vld [vmem:[#allocation72_spill] sm:$0xff] }
 0x1dd   : > { %v3575_v36 = vpop.f32.mrf.mxu0  ;;  %v2962_v2 = vadd.f32 %v13554_v45, %v2572_v34 }
 0x1de   : > { %v3774_v50 = vmul.f32 %v11521_v37, %v3735_v63  ;;  %v3734_v11 = vadd.f32 %v3575_v36, %v3345_v29  ;;  %v2575_v29 = vadd.f32 %v13552_v57, %v13551_v55  ;;  %v3349_v63 = vadd.f32 %v13553_v27, %v2960_v30  ;;  %v13555_v36 = vld [vmem:[#allocation24_spill] sm:$0xff]  ;;  %v13565_v55 = vld [vmem:[#allocation33_spill] sm:$0xff] }
 0x1df   : > { %v9442_v22 = vpop.f32.mrf.mxu0  ;;  %v2574_v33 = vadd.f32 %v13555_v36, %v2185_v35  ;;  %v13563_v35 = vld [vmem:[#allocation75_spill] sm:$0xff]  ;;  %v2189_v57 = vadd.f32 %v13565_v55, %v11494_v19  ;;  %v13569_v19 = vld [vmem:[#allocation32_spill] sm:$0xff] }
 0x1e0   : > { %v3813_v23 = vadd.f32 %v11539_v8, %v3774_v50  ;;  %v3773_v6 = vmul.f32 %v11521_v37, %v3734_v11  ;;  %v3737_v5 = vadd.f32 %v9442_v22, %v3348_v21  ;;  %v13556_v21 = vld [vmem:[#allocation27_spill] sm:$0xff]  ;;  %v13557_v11 = vld [vmem:[#allocation77_spill] sm:$0xff]  ;;  %v2965_v58 = vadd.f32 %v13558_v53, %v2575_v29  ;;  %v13577_v55 = vld [vmem:[#allocation36_spill] sm:$0xff] }
 0x1e1   : > { %v3585_v4 = vpop.f32.mrf.mxu0  ;;  %v2187_v50 = vadd.f32 %v13556_v21, %v11484_v51  ;;  %v3352_v56 = vadd.f32 %v13557_v11, %v2963_v1  ;;  %v13562_v51 = vld [vmem:[#allocation80_spill] sm:$0xff]  ;;  %v11590_v1 = vpop.f32.mrf.mxu1  ;;  %v13566_v29 = vld [vmem:[#allocation83_spill] sm:$0xff] }
 0x1e2   : > { %v3845_v46 = vmax.f32 %v3813_v23, 0.0  ;;  %v3812_v28 = vadd.f32 %v11539_v8, %v3773_v6  ;;  %v3776_v52 = vmul.f32 %v11521_v37, %v3737_v5  ;;  %v3736_v13 = vadd.f32 %v3585_v4, %v3347_v14  ;;  %v13559_v14 = vld [vmem:[#allocation14_spill] sm:$0xff]  ;;  %v13561_v5 = vld [vmem:[#allocation25_spill] sm:$0xff] }
 0x1e3   : > { %v9445_v59 = vpop.f32.mrf.mxu0  ;;  %v1428_v23 = vadd.f32 %v13559_v14, %v11468_v9  ;;  %v13560_v6 = vld [vmem:[#allocation26_spill] sm:$0xff]  ;;  %v3351_v34 = vadd.f32 %v13562_v51, %v2962_v2  ;;  %v11598_v9 = vld [vmem:[%s13306_s4 + $0x14] sm:$0xf]  ;;  %v3354_v27 = vadd.f32 %v13566_v29, %v2965_v58 }
 0x1e4   : > { %3878 = vst.msk [vmem:[#allocation2 + $0x21] sm:$0xff] %vm280_vm1, %v3845_v46  ;;  %v3844_v48 = vmax.f32 %v3812_v28, 0.0  ;;  %v3815_v41 = vadd.f32 %v11539_v8, %v3776_v52  ;;  %v3775_v61 = vmul.f32 %v11521_v37, %v3736_v13  ;;  %v3739_v44 = vadd.f32 %v9445_v59, %v3350_v54  ;;  %v13564_v13 = vld [vmem:[#allocation28_spill] sm:$0xff]  ;;  %9735 = vmatprep.subr.msk.mxu0 %vm488_vm0, %v11598_v9  ;;  %v13573_v14 = vld [vmem:[#allocation34_spill] sm:$0xff] }
 0x1e5   : > { %v3595_v49 = vpop.f32.mrf.mxu0  ;;  %v2577_v12 = vadd.f32 %v13561_v5, %v13560_v6  ;;  %v2964_v54 = vadd.f32 %v13563_v35, %v2574_v33  ;;  %v2576_v0 = vadd.f32 %v13564_v13, %v2187_v50  ;;  %v13570_v33 = vld [vmem:[#allocation31_spill] sm:$0xff]  ;;  %v13571_v50 = vld [vmem:[#allocation86_spill] sm:$0xff]  ;;  %v13574_v6 = vld [vmem:[#allocation37_spill] sm:$0xff] }
 0x1e6   : > { %3877 = vst.msk [vmem:[#allocation2 + $0x19] sm:$0xff] %vm280_vm1, %v3844_v48  ;;  %v3847_v26 = vmax.f32 %v3815_v41, 0.0  ;;  %v3814_v62 = vadd.f32 %v11539_v8, %v3775_v61  ;;  %v3778_v30 = vmul.f32 %v11521_v37, %v3739_v44  ;;  %v3738_v22 = vadd.f32 %v3595_v49, %v3349_v63  ;;  %v13567_v63 = vld [vmem:[#allocation76_spill] sm:$0xff]  ;;  %v13568_v44 = vld [vmem:[#allocation15_spill] sm:$0xff]  ;;  %v11617_v49 = vpop.f32.mrf.mxu1 }
 0x1e7   : > { %v9448_v47 = vpop.f32.mrf.mxu0  ;;  %v2967_v45 = vadd.f32 %v13567_v63, %v2577_v12  ;;  %v11611_v36 = vadd.f32 %v13568_v44, %v1428_v23  ;;  %v2579_v21 = vadd.f32 %v13570_v33, %v13569_v19  ;;  %v3353_v11 = vadd.f32 %v13571_v50, %v2964_v54  ;;  %v13575_v12 = vld [vmem:[#allocation89_spill] sm:$0xff]  ;;  %v13581_v33 = vld [vmem:[#allocation38_spill] sm:$0xff] }
 0x1e8   : > { %3880 = vst.msk [vmem:[#allocation2 + $0x39] sm:$0xff] %vm280_vm1, %v3847_v26  ;;  %v3846_v4 = vmax.f32 %v3814_v62, 0.0  ;;  %v3817_v46 = vadd.f32 %v11539_v8, %v3778_v30  ;;  %v3777_v28 = vmul.f32 %v11521_v37, %v3738_v22  ;;  %v3741_v52 = vadd.f32 %v9448_v47, %v3352_v56  ;;  %v13572_v56 = vld [vmem:[#allocation78_spill] sm:$0xff]  ;;  %v13582_v50 = vld [vmem:[#allocation41_spill] sm:$0xff] }
 0x1e9   : > { %v3605_v2 = vpop.f32.mrf.mxu0  ;;  %v2966_v53 = vadd.f32 %v13572_v56, %v2576_v0  ;;  %v2578_v23 = vadd.f32 %v13573_v14, %v2189_v57  ;;  %v2191_v5 = vadd.f32 %v13574_v6, %v11498_v10  ;;  %v3356_v51 = vadd.f32 %v13575_v12, %v2967_v45  ;;  %v13578_v57 = vld [vmem:[#allocation35_spill] sm:$0xff]  ;;  %v13580_v45 = vld [vmem:[#allocation81_spill] sm:$0xff] }
 0x1ea   : > { %3879 = vst.msk [vmem:[#allocation2 + $0x31] sm:$0xff] %vm280_vm1, %v3846_v4  ;;  %v3849_v59 = vmax.f32 %v3817_v46, 0.0  ;;  %v3816_v48 = vadd.f32 %v11539_v8, %v3777_v28  ;;  %v3780_v41 = vmul.f32 %v11521_v37, %v3741_v52  ;;  %v3740_v61 = vadd.f32 %v3605_v2, %v3351_v34  ;;  %v13576_v34 = vld [vmem:[#allocation79_spill] sm:$0xff] }
 0x1eb   : > { %v9451_v58 = vpop.f32.mrf.mxu0  ;;  %v2969_v35 = vadd.f32 %v13576_v34, %v2579_v21  ;;  %v11640_v10 = vld [vmem:[#allocation2 + $0x21] sm:$0xff]  ;;  %v2581_v29 = vadd.f32 %v13578_v57, %v13577_v55  ;;  %v2968_v2 = vadd.f32 %v13580_v45, %v2578_v23  ;;  %v2580_v21 = vadd.f32 %v13581_v33, %v2191_v5  ;;  %v13583_v56 = vld [vmem:[#allocation95_spill] sm:$0xff] }
 0x1ec   : > { %3882 = vst.msk [vmem:[#allocation2 + $0x51] sm:$0xff] %vm280_vm1, %v3849_v59  ;;  %v3848_v26 = vmax.f32 %v3816_v48, 0.0  ;;  %v3819_v62 = vadd.f32 %v11539_v8, %v3780_v41  ;;  %v3779_v30 = vmul.f32 %v11521_v37, %v3740_v61  ;;  %v3743_v22 = vadd.f32 %v9451_v58, %v3354_v27  ;;  %v13579_v27 = vld [vmem:[#allocation92_spill] sm:$0xff]  ;;  %v11650_v48 = vpop.f32.mrf.mxu1  ;;  %v13584_v58 = vld [vmem:[#allocation82_spill] sm:$0xff]  ;;  %v13586_v34 = vld [vmem:[#allocation39_spill] sm:$0xff] }
 0x1ed   : > { %v3615_v54 = vpop.f32.mrf.mxu0  ;;  %v11627_v47 = vld [vmem:[#allocation2 + $0x19] sm:$0xff]  ;;  %v3355_v63 = vadd.f32 %v13579_v27, %v2966_v53  ;;  %v3358_v53 = vadd.f32 %v13583_v56, %v2969_v35  ;;  %v13589_v45 = vld [vmem:[#allocation42_spill] sm:$0xff] }
 0x1ee   : > { %v11629_v4 = vld [vmem:[#allocation2 + $0x18] sm:$0xff]  ;;  %v11631_v46 = vld [vmem:[#allocation2 + $0x20] sm:$0xff]  ;;  %3881 = vst.msk [vmem:[#allocation2 + $0x49] sm:$0xff] %vm280_vm1, %v3848_v26  ;;  %v3851_v28 = vmax.f32 %v3819_v62, 0.0  ;;  %v3818_v52 = vadd.f32 %v11539_v8, %v3779_v30  ;;  %v3782_v13 = vmul.f32 %v11521_v37, %v3743_v22  ;;  %v3742_v0 = vadd.f32 %v3615_v54, %v3353_v11  ;;  %9490 = vmatprep.mubr.msk.f32.mxu1 %vm280_vm1, %v11627_v47  ;;  %v13587_v54 = vld [vmem:[#allocation98_spill] sm:$0xff]  ;;  %v11683_v55 = vpop.f32.mrf.mxu1 }
 0x1ef   : > { %9540 = vmatprep.mubr.msk.f32.mxu0 %vm280_vm1, %v11629_v4  ;;  %v9454_v59 = vpop.f32.mrf.mxu0  ;;  %9491 = vmatmul.mubr.msk.f32.gmra.mxu1 %vm280_vm1, %v11640_v10  ;;  %v2193_v11 = vadd.f32 %v13582_v50, %v11510_v31  ;;  %v2971_v26 = vadd.f32 %v13584_v58, %v2581_v29  ;;  %v11673_v31 = vld [vmem:[#allocation2 + $0x39] sm:$0xff] }
 0x1f0   : > { %9541 = vmatmul.mubr.msk.f32.gmra.mxu0 %vm280_vm1, %v11631_v46  ;;  %3884 = vst.msk [vmem:[#allocation2 + $0x69] sm:$0xff] %vm280_vm1, %v3851_v28  ;;  %v3850_v41 = vmax.f32 %v3818_v52, 0.0  ;;  %v3821_v61 = vadd.f32 %v11539_v8, %v3782_v13  ;;  %v3781_v44 = vmul.f32 %v11521_v37, %v3742_v0  ;;  %v3745_v19 = vadd.f32 %v9454_v59, %v3356_v51  ;;  %v13585_v51 = vld [vmem:[#allocation40_spill] sm:$0xff]  ;;  %v13590_v59 = vld [vmem:[#allocation45_spill] sm:$0xff] }
 0x1f1   : > { %v3625_v62 = vpop.f32.mrf.mxu0  ;;  %v11660_v30 = vld [vmem:[#allocation2 + $0x31] sm:$0xff]  ;;  %v2583_v35 = vadd.f32 %v13586_v34, %v13585_v51  ;;  %v3357_v28 = vadd.f32 %v13587_v54, %v2968_v2  ;;  %v2582_v2 = vadd.f32 %v13589_v45, %v2193_v11  ;;  %v11716_v34 = vpop.f32.mrf.mxu1 }
 0x1f2   : > { %v11662_v22 = vld [vmem:[#allocation2 + $0x30] sm:$0xff]  ;;  %v11664_v14 = vld [vmem:[#allocation2 + $0x38] sm:$0xff]  ;;  %3883 = vst.msk [vmem:[#allocation2 + $0x61] sm:$0xff] %vm280_vm1, %v3850_v41  ;;  %v3853_v23 = vmax.f32 %v3821_v61, 0.0  ;;  %v3820_v6 = vadd.f32 %v11539_v8, %v3781_v44  ;;  %v3784_v5 = vmul.f32 %v11521_v37, %v3745_v19  ;;  %v3744_v12 = vadd.f32 %v3625_v62, %v3355_v63  ;;  %9493 = vmatprep.mubr.msk.f32.mxu1 %vm280_vm1, %v11660_v30  ;;  %v13591_v44 = vld [vmem:[#allocation85_spill] sm:$0xff] }
 0x1f3   : > { %9543 = vmatprep.mubr.msk.f32.mxu0 %vm280_vm1, %v11662_v22  ;;  %v13588_v52 = vld [vmem:[#allocation84_spill] sm:$0xff]  ;;  %v9457_v0 = vpop.f32.mrf.mxu0  ;;  %9494 = vmatmul.mubr.msk.f32.gmra.mxu1 %vm280_vm1, %v11673_v31  ;;  %v2195_v41 = vadd.f32 %v13590_v59, %v11513_v25  ;;  %v3360_v61 = vadd.f32 %v11439_v18, %v2971_v26  ;;  %v2973_v19 = vadd.f32 %v13591_v44, %v2583_v35  ;;  %v13594_v26 = vld [vmem:[#allocation43_spill] sm:$0xff] }
 0x1f4   : > { %v2970_v13 = vadd.f32 %v13588_v52, %v2580_v21  ;;  %9544 = vmatmul.mubr.msk.f32.gmra.mxu0 %vm280_vm1, %v11664_v14  ;;  %3886 = vst.msk [vmem:[#allocation2 + $0x81] sm:$0xff] %vm280_vm1, %v3853_v23  ;;  %v3852_v57 = vmax.f32 %v3820_v6, 0.0  ;;  %v3823_v29 = vadd.f32 %v11539_v8, %v3784_v5  ;;  %v3783_v27 = vmul.f32 %v11521_v37, %v3744_v12  ;;  %v11706_v18 = vld [vmem:[#allocation2 + $0x51] sm:$0xff] }
 0x1f5   : > { %v3747_v63 = vadd.f32 %v9457_v0, %v3358_v53  ;;  %v3635_v33 = vpop.f32.mrf.mxu0  ;;  %v11693_v21 = vld [vmem:[#allocation2 + $0x49] sm:$0xff]  ;;  %v13593_v25 = vld [vmem:[#allocation44_spill] sm:$0xff]  ;;  %v13597_v0 = vld [vmem:[#allocation49_spill] sm:$0xff] }
 0x1f6   : > { %v11695_v50 = vld [vmem:[#allocation2 + $0x48] sm:$0xff]  ;;  %v11697_v56 = vld [vmem:[#allocation2 + $0x50] sm:$0xff]  ;;  %3885 = vst.msk [vmem:[#allocation2 + $0x79] sm:$0xff] %vm280_vm1, %v3852_v57  ;;  %v3855_v58 = vmax.f32 %v3823_v29, 0.0  ;;  %v3822_v53 = vadd.f32 %v11539_v8, %v3783_v27  ;;  %v3746_v62 = vadd.f32 %v3635_v33, %v3357_v28  ;;  %9496 = vmatprep.mubr.msk.f32.mxu1 %vm280_vm1, %v11693_v21  ;;  %v2585_v23 = vadd.f32 %v13594_v26, %v13593_v25  ;;  %v13598_v27 = vld [vmem:[#allocation88_spill] sm:$0xff] }
 0x1f7   : > { %13592 = vst [vmem:[#allocation29_spill] sm:$0xff] %v11697_v56  ;;  %v3786_v11 = vmul.f32 %v11521_v37, %v3747_v63  ;;  %9546 = vmatprep.mubr.msk.f32.mxu0 %vm280_vm1, %v11695_v50  ;;  %v3359_v6 = vadd.f32 %v11454_v15, %v2970_v13  ;;  %v13595_v5 = vld [vmem:[#allocation87_spill] sm:$0xff]  ;;  %v9460_v51 = vpop.f32.mrf.mxu0  ;;  %9497 = vmatmul.mubr.msk.f32.gmra.mxu1 %vm280_vm1, %v11706_v18  ;;  %v13596_v15 = vld [vmem:[#allocation46_spill] sm:$0xff] }
 0x1f8   : > { %v2972_v12 = vadd.f32 %v13595_v5, %v2582_v2  ;;  %9547 = vmatmul.mubr.msk.f32.gmra.mxu0 %vm280_vm1, %v11697_v56  ;;  %3888 = vst.msk [vmem:[#allocation2 + $0x99] sm:$0xff] %vm280_vm1, %v3855_v58  ;;  %v3854_v35 = vmax.f32 %v3822_v53, 0.0  ;;  %v3785_v28 = vmul.f32 %v11521_v37, %v3746_v62  ;;  %v3749_v52 = vadd.f32 %v9460_v51, %v3360_v61  ;;  %v13603_v62 = vld [vmem:[#allocation90_spill] sm:$0xff] }
 0x1f9   : > { %v3825_v54 = vadd.f32 %v11539_v8, %v3786_v11  ;;  %v2584_v13 = vadd.f32 %v13596_v15, %v2195_v41  ;;  %v2197_v57 = vadd.f32 %v13597_v0, %v11524_v20  ;;  %v3362_v29 = vadd.f32 %v11490_v42, %v2973_v19  ;;  %v3645_v45 = vpop.f32.mrf.mxu0  ;;  %v11726_v2 = vld [vmem:[#allocation2 + $0x61] sm:$0xff]  ;;  %v11739_v42 = vld [vmem:[#allocation2 + $0x69] sm:$0xff]  ;;  %v13601_v20 = vld [vmem:[#allocation48_spill] sm:$0xff] }
 0x1fa   : > { %v2975_v63 = vadd.f32 %v13598_v27, %v2585_v23  ;;  %v11728_v59 = vld [vmem:[#allocation2 + $0x60] sm:$0xff]  ;;  %v11730_v44 = vld [vmem:[#allocation2 + $0x68] sm:$0xff]  ;;  %3887 = vst.msk [vmem:[#allocation2 + $0x91] sm:$0xff] %vm280_vm1, %v3854_v35  ;;  %v3824_v61 = vadd.f32 %v11539_v8, %v3785_v28  ;;  %v3788_v41 = vmul.f32 %v11521_v37, %v3749_v52  ;;  %v3748_v58 = vadd.f32 %v3645_v45, %v3359_v6  ;;  %v13602_v19 = vld [vmem:[#allocation47_spill] sm:$0xff]  ;;  %v11749_v23 = vpop.f32.mrf.mxu1 }
 0x1fb   : > { %13599 = vst [vmem:[#allocation30_spill] sm:$0xff] %v11728_v59  ;;  %13600 = vst [vmem:[#allocation3_spill] sm:$0xff] %v11730_v44  ;;  %v3857_v33 = vmax.f32 %v3825_v54, 0.0  ;;  %9499 = vmatprep.mubr.msk.f32.mxu1 %vm280_vm1, %v11726_v2  ;;  %9549 = vmatprep.mubr.msk.f32.mxu0 %vm280_vm1, %v11728_v59  ;;  %v2587_v53 = vadd.f32 %v13602_v19, %v13601_v20  ;;  %v3361_v11 = vadd.f32 %v11528_v32, %v2972_v12  ;;  %v9463_v26 = vpop.f32.mrf.mxu0  ;;  %v13604_v32 = vld [vmem:[#allocation50_spill] sm:$0xff]  ;;  %v13605_v54 = vld [vmem:[#allocation53_spill] sm:$0xff] }
 0x1fc   : > { %v2974_v25 = vadd.f32 %v13603_v62, %v2584_v13  ;;  %9500 = vmatmul.mubr.msk.f32.gmra.mxu1 %vm280_vm1, %v11739_v42  ;;  %9550 = vmatmul.mubr.msk.f32.gmra.mxu0 %vm280_vm1, %v11730_v44  ;;  %v3856_v6 = vmax.f32 %v3824_v61, 0.0  ;;  %v3827_v5 = vadd.f32 %v11539_v8, %v3788_v41  ;;  %v3787_v51 = vmul.f32 %v11521_v37, %v3748_v58  ;;  %v13606_v15 = vld [vmem:[#allocation91_spill] sm:$0xff]  ;;  %v13611_v19 = vld [vmem:[#allocation93_spill] sm:$0xff] }
 0x1fd   : > { %3890 = vst.msk [vmem:[#allocation2 + $0xb1] sm:$0xff] %vm280_vm1, %v3857_v33  ;;  %v3751_v35 = vadd.f32 %v9463_v26, %v3362_v29  ;;  %v2586_v12 = vadd.f32 %v13604_v32, %v2197_v57  ;;  %v2199_v28 = vadd.f32 %v13605_v54, %v11531_v7  ;;  %v3364_v52 = vadd.f32 %v11554_v17, %v2975_v63  ;;  %v3655_v0 = vpop.f32.mrf.mxu0  ;;  %v11759_v27 = vld [vmem:[#allocation2 + $0x79] sm:$0xff]  ;;  %v11772_v7 = vld [vmem:[#allocation2 + $0x81] sm:$0xff]  ;;  %v13610_v63 = vld [vmem:[#allocation51_spill] sm:$0xff] }
 0x1fe   : > { %v2977_v13 = vadd.f32 %v13606_v15, %v2587_v53  ;;  %v11761_v45 = vld [vmem:[#allocation2 + $0x78] sm:$0xff]  ;;  %v11763_v33 = vld [vmem:[#allocation2 + $0x80] sm:$0xff]  ;;  %3889 = vst.msk [vmem:[#allocation2 + $0xa9] sm:$0xff] %vm280_vm1, %v3856_v6  ;;  %v3859_v61 = vmax.f32 %v3827_v5, 0.0  ;;  %v3826_v29 = vadd.f32 %v11539_v8, %v3787_v51  ;;  %v3750_v41 = vadd.f32 %v3655_v0, %v3361_v11  ;;  %9502 = vmatprep.mubr.msk.f32.mxu1 %vm280_vm1, %v11759_v27  ;;  %v11782_v11 = vpop.f32.mrf.mxu1  ;;  %v13614_v54 = vld [vmem:[#allocation94_spill] sm:$0xff] }
 0x1ff   : > { %13607 = vst [vmem:[#allocation4_spill] sm:$0xff] %v11761_v45  ;;  %13608 = vst [vmem:[#allocation5_spill] sm:$0xff] %v11763_v33  ;;  %v3790_v57 = vmul.f32 %v11521_v37, %v3751_v35  ;;  %9552 = vmatprep.mubr.msk.f32.mxu0 %vm280_vm1, %v11761_v45  ;;  %v13609_v17 = vld [vmem:[#allocation52_spill] sm:$0xff]  ;;  %v3363_v20 = vadd.f32 %v11571_v24, %v2974_v25  ;;  %v2976_v53 = vadd.f32 %v13611_v19, %v2586_v12  ;;  %v9466_v62 = vpop.f32.mrf.mxu0  ;;  %v13612_v24 = vld [vmem:[#allocation54_spill] sm:$0xff] }
 0x200   : > { %v2589_v58 = vadd.f32 %v13610_v63, %v13609_v17  ;;  %9503 = vmatmul.mubr.msk.f32.gmra.mxu1 %vm280_vm1, %v11772_v7  ;;  %9553 = vmatmul.mubr.msk.f32.gmra.mxu0 %vm280_vm1, %v11763_v33  ;;  %3892 = vst.msk [vmem:[#allocation2 + $0xc9] sm:$0xff] %vm280_vm1, %v3859_v61  ;;  %v3858_v26 = vmax.f32 %v3826_v29, 0.0  ;;  %v3789_v5 = vmul.f32 %v11521_v37, %v3750_v41  ;;  %v13613_v35 = vld [vmem:[#allocation57_spill] sm:$0xff]  ;;  %v13620_v19 = vld [vmem:[#allocation96_spill] sm:$0xff] }
 0x201   : > { %v3829_v6 = vadd.f32 %v11539_v8, %v3790_v57  ;;  %v3753_v51 = vadd.f32 %v9466_v62, %v3364_v52  ;;  %v2588_v25 = vadd.f32 %v13612_v24, %v2199_v28  ;;  %v2201_v32 = vadd.f32 %v13613_v35, %v11542_v40  ;;  %v3665_v0 = vpop.f32.mrf.mxu0  ;;  %v11792_v17 = vld [vmem:[#allocation2 + $0x91] sm:$0xff]  ;;  %v11805_v40 = vld [vmem:[#allocation2 + $0x99] sm:$0xff] }
 0x202   : > { %v3366_v12 = vadd.f32 %v11590_v1, %v2977_v13  ;;  %v2979_v15 = vadd.f32 %v13614_v54, %v2589_v58  ;;  %v11794_v63 = vld [vmem:[#allocation2 + $0x90] sm:$0xff]  ;;  %v11796_v61 = vld [vmem:[#allocation2 + $0x98] sm:$0xff]  ;;  %3891 = vst.msk [vmem:[#allocation2 + $0xc1] sm:$0xff] %vm280_vm1, %v3858_v26  ;;  %v3828_v52 = vadd.f32 %v11539_v8, %v3789_v5  ;;  %v3752_v57 = vadd.f32 %v3665_v0, %v3363_v20  ;;  %v11815_v20 = vpop.f32.mrf.mxu1  ;;  %v13623_v0 = vld [vmem:[#allocation97_spill] sm:$0xff] }
 0x203   : > { %13615 = vst [vmem:[#allocation6_spill] sm:$0xff] %v11794_v63  ;;  %13616 = vst [vmem:[#allocation10_spill] sm:$0xff] %v11796_v61  ;;  %v3861_v29 = vmax.f32 %v3829_v6, 0.0  ;;  %v3792_v28 = vmul.f32 %v11521_v37, %v3753_v51  ;;  %9505 = vmatprep.mubr.msk.f32.mxu1 %vm280_vm1, %v11792_v17  ;;  %9555 = vmatprep.mubr.msk.f32.mxu0 %vm280_vm1, %v11794_v63  ;;  %v13618_v1 = vld [vmem:[#allocation56_spill] sm:$0xff]  ;;  %v13619_v13 = vld [vmem:[#allocation55_spill] sm:$0xff]  ;;  %v3365_v58 = vadd.f32 %v11617_v49, %v2976_v53  ;;  %v9469_v26 = vpop.f32.mrf.mxu0 }
 0x204   : > { %13617 = vst [vmem:[#allocation17_spill] sm:$0xff] %v11805_v40  ;;  %v2591_v41 = vadd.f32 %v13619_v13, %v13618_v1  ;;  %v2978_v62 = vadd.f32 %v13620_v19, %v2588_v25  ;;  %9506 = vmatmul.mubr.msk.f32.gmra.mxu1 %vm280_vm1, %v11805_v40  ;;  %9556 = vmatmul.mubr.msk.f32.gmra.mxu0 %vm280_vm1, %v11796_v61  ;;  %v3860_v6 = vmax.f32 %v3828_v52, 0.0  ;;  %v13621_v49 = vld [vmem:[#allocation58_spill] sm:$0xff]  ;;  %v13622_v25 = vld [vmem:[#allocation61_spill] sm:$0xff] }
 0x205   : > { %3894 = vst.msk [vmem:[#allocation2 + $0xe1] sm:$0xff] %vm280_vm1, %v3861_v29  ;;  %v3831_v5 = vadd.f32 %v11539_v8, %v3792_v28  ;;  %v3791_v51 = vmul.f32 %v11521_v37, %v3752_v57  ;;  %v3755_v24 = vadd.f32 %v9469_v26, %v3366_v12  ;;  %v2590_v53 = vadd.f32 %v13621_v49, %v2201_v32  ;;  %v3675_v13 = vpop.f32.mrf.mxu0  ;;  %v11825_v19 = vld [vmem:[#allocation2 + $0xa9] sm:$0xff] }
 0x206   : > { %v2203_v35 = vadd.f32 %v13622_v25, %v11547_v43  ;;  %v3368_v54 = vadd.f32 %v11650_v48, %v2979_v15  ;;  %v2981_v1 = vadd.f32 %v13623_v0, %v2591_v41  ;;  %v11827_v40 = vld [vmem:[#allocation2 + $0xa8] sm:$0xff]  ;;  %v11829_v29 = vld [vmem:[#allocation2 + $0xb0] sm:$0xff]  ;;  %3893 = vst.msk [vmem:[#allocation2 + $0xd9] sm:$0xff] %vm280_vm1, %v3860_v6  ;;  %v3754_v28 = vadd.f32 %v3675_v13, %v3365_v58  ;;  %v13627_v48 = vld [vmem:[#allocation60_spill] sm:$0xff]  ;;  %v11848_v58 = vpop.f32.mrf.mxu1 }
 0x207   : > { %13624 = vst [vmem:[#allocation16_spill] sm:$0xff] %v11827_v40  ;;  %13625 = vst [vmem:[#allocation7_spill] sm:$0xff] %v11829_v29  ;;  %v3863_v52 = vmax.f32 %v3831_v5, 0.0  ;;  %v3830_v12 = vadd.f32 %v11539_v8, %v3791_v51  ;;  %v3794_v32 = vmul.f32 %v11521_v37, %v3755_v24  ;;  %9508 = vmatprep.mubr.msk.f32.mxu1 %vm280_vm1, %v11825_v19  ;;  %9558 = vmatprep.mubr.msk.f32.mxu0 %vm280_vm1, %v11827_v40  ;;  %v11838_v43 = vld [vmem:[#allocation2 + $0xb1] sm:$0xff]  ;;  %v9472_v6 = vpop.f32.mrf.mxu0 }
 0x208   : > { %13626 = vst [vmem:[#allocation8_spill] sm:$0xff] %v11838_v43  ;;  %v13628_v15 = vld [vmem:[#allocation59_spill] sm:$0xff]  ;;  %v3367_v41 = vadd.f32 %v11683_v55, %v2978_v62  ;;  %v2980_v26 = vadd.f32 %v11433_v16, %v2590_v53  ;;  %9509 = vmatmul.mubr.msk.f32.gmra.mxu1 %vm280_vm1, %v11838_v43  ;;  %9559 = vmatmul.mubr.msk.f32.gmra.mxu0 %vm280_vm1, %v11829_v29  ;;  %v13629_v55 = vld [vmem:[#allocation62_spill] sm:$0xff]  ;;  %v13630_v16 = vld [vmem:[#allocation65_spill] sm:$0xff] }
 0x209   : > { %v2593_v57 = vadd.f32 %v13628_v15, %v13627_v48  ;;  %3896 = vst.msk [vmem:[#allocation2 + $0xf9] sm:$0xff] %vm280_vm1, %v3863_v52  ;;  %v3862_v5 = vmax.f32 %v3830_v12, 0.0  ;;  %v3833_v51 = vadd.f32 %v11539_v8, %v3794_v32  ;;  %v3793_v24 = vmul.f32 %v11521_v37, %v3754_v28  ;;  %v13631_v0 = vld [vmem:[#allocation99_spill] sm:$0xff]  ;;  %v3685_v48 = vpop.f32.mrf.mxu0  ;;  %v11858_v15 = vld [vmem:[#allocation2 + $0xc1] sm:$0xff] }
 0x20a   : > { %v3757_v49 = vadd.f32 %v9472_v6, %v3368_v54  ;;  %v2592_v62 = vadd.f32 %v13629_v55, %v2203_v35  ;;  %v2205_v53 = vadd.f32 %v13630_v16, %v11565_v60  ;;  %v3370_v25 = vadd.f32 %v11716_v34, %v2981_v1  ;;  %13632 = vst [vmem:[#allocation18_spill] sm:$0xff] %v11858_v15  ;;  %v11860_v43 = vld [vmem:[#allocation2 + $0xc0] sm:$0xff]  ;;  %v11862_v52 = vld [vmem:[#allocation2 + $0xc8] sm:$0xff]  ;;  %v13636_v34 = vld [vmem:[#allocation64_spill] sm:$0xff] }
 0x20b   : > { %v2983_v13 = vadd.f32 %v13631_v0, %v2593_v57  ;;  %13633 = vst [vmem:[#allocation9_spill] sm:$0xff] %v11860_v43  ;;  %13634 = vst [vmem:[#allocation11_spill] sm:$0xff] %v11862_v52  ;;  %v3865_v12 = vmax.f32 %v3833_v51, 0.0  ;;  %v3832_v54 = vadd.f32 %v11539_v8, %v3793_v24  ;;  %v3756_v32 = vadd.f32 %v3685_v48, %v3367_v41  ;;  %v11871_v60 = vld [vmem:[#allocation2 + $0xc9] sm:$0xff]  ;;  %v13638_v6 = vld [vmem:[#allocation100_spill] sm:$0xff]  ;;  %v9475_v51 = vpop.f32.mrf.mxu0  ;;  %v3326_v41 = vpop.f32.mrf.mxu1 }
 0x20c   : > { %3895 = vst.msk [vmem:[#allocation2 + $0xf1] sm:$0xff] %vm280_vm1, %v3862_v5  ;;  %v3796_v35 = vmul.f32 %v11521_v37, %v3757_v49  ;;  %9511 = vmatprep.mubr.msk.f32.mxu1 %vm280_vm1, %v11858_v15  ;;  %9561 = vmatprep.mubr.msk.f32.mxu0 %vm280_vm1, %v11860_v43  ;;  %13635 = vst [vmem:[#allocation12_spill] sm:$0xff] %v11871_v60  ;;  %v13637_v1 = vld [vmem:[#allocation63_spill] sm:$0xff]  ;;  %v3369_v57 = vadd.f32 %v11749_v23, %v2980_v26  ;;  %v13639_v0 = vld [vmem:[#allocation66_spill] sm:$0xff] }
 0x20d   : > { %v2595_v28 = vadd.f32 %v13637_v1, %v13636_v34  ;;  %v2982_v5 = vadd.f32 %v13638_v6, %v2592_v62  ;;  %9512 = vmatmul.mubr.msk.f32.gmra.mxu1 %vm280_vm1, %v11871_v60  ;;  %9562 = vmatmul.mubr.msk.f32.gmra.mxu0 %vm280_vm1, %v11862_v52  ;;  %3898 = vst.msk [vmem:[#allocation2 + $0x111] sm:$0xff] %vm280_vm1, %v3865_v12  ;;  %v3864_v24 = vmax.f32 %v3832_v54, 0.0  ;;  %v13640_v26 = vld [vmem:[#allocation69_spill] sm:$0xff]  ;;  %v3695_v6 = vpop.f32.mrf.mxu0  ;;  %v11891_v15 = vld [vmem:[#allocation2 + $0xd8] sm:$0xff] }
 0x20e   : > { %v3835_v49 = vadd.f32 %v11539_v8, %v3796_v35  ;;  %v3795_v55 = vmul.f32 %v11521_v37, %v3756_v32  ;;  %v3759_v16 = vadd.f32 %v9475_v51, %v3370_v25  ;;  %v2594_v23 = vadd.f32 %v13639_v0, %v2205_v53  ;;  %v13641_v34 = vld [vmem:[#allocation101_spill] sm:$0xff]  ;;  %13642 = vst [vmem:[#allocation20_spill] sm:$0xff] %v11891_v15 }
 0x20f   : > { %v2207_v62 = vadd.f32 %v13640_v26, %v11611_v36  ;;  %v3372_v48 = vadd.f32 %v11782_v11, %v2983_v13  ;;  %v2985_v1 = vadd.f32 %v13641_v34, %v2595_v28  ;;  %v11889_v60 = vld [vmem:[#allocation2 + $0xd9] sm:$0xff]  ;;  %3897 = vst.msk [vmem:[#allocation2 + $0x109] sm:$0xff] %vm280_vm1, %v3864_v24  ;;  %v3758_v35 = vadd.f32 %v3695_v6, %v3369_v57  ;;  %v11902_v36 = vld [vmem:[#allocation2 + $0xe1] sm:$0xff]  ;;  %v13645_v13 = vld [vmem:[#allocation67_spill] sm:$0xff]  ;;  %v9478_v24 = vpop.f32.mrf.mxu0  ;;  %v9434_v57 = vpop.f32.mrf.mxu1 }
 0x210   : > { %v11893_v12 = vld [vmem:[#allocation2 + $0xe0] sm:$0xff]  ;;  %v3867_v54 = vmax.f32 %v3835_v49, 0.0  ;;  %v3834_v25 = vadd.f32 %v11539_v8, %v3795_v55  ;;  %v3798_v53 = vmul.f32 %v11521_v37, %v3759_v16  ;;  %9514 = vmatprep.mubr.msk.f32.mxu1 %vm280_vm1, %v11889_v60  ;;  %9564 = vmatprep.mubr.msk.f32.mxu0 %vm280_vm1, %v11891_v15  ;;  %v13644_v11 = vld [vmem:[#allocation68_spill] sm:$0xff]  ;;  %v3371_v28 = vadd.f32 %v11815_v20, %v2982_v5  ;;  %v13646_v26 = vld [vmem:[#allocation70_spill] sm:$0xff] }
 0x211   : > { %13643 = vst [vmem:[#allocation19_spill] sm:$0xff] %v11893_v12  ;;  %v2597_v32 = vadd.f32 %v13645_v13, %v13644_v11  ;;  %v2984_v51 = vadd.f32 %v11464_v39, %v2594_v23  ;;  %9515 = vmatmul.mubr.msk.f32.gmra.mxu1 %vm280_vm1, %v11902_v36  ;;  %9565 = vmatmul.mubr.msk.f32.gmra.mxu0 %vm280_vm1, %v11893_v12  ;;  %v3705_v23 = vpop.f32.mrf.mxu0 }
 0x212   : > { %3900 = vst.msk [vmem:[#allocation2 + $0x129] sm:$0xff] %vm280_vm1, %v3867_v54  ;;  %v3866_v49 = vmax.f32 %v3834_v25, 0.0  ;;  %v3837_v55 = vadd.f32 %v11539_v8, %v3798_v53  ;;  %v3797_v16 = vmul.f32 %v11521_v37, %v3758_v35  ;;  %v3761_v0 = vadd.f32 %v9478_v24, %v3372_v48  ;;  %v3336_v35 = vpop.f32.mrf.mxu1 }
 0x213   : > { %v2596_v20 = vadd.f32 %v13646_v26, %v2207_v62  ;;  %v3374_v39 = vadd.f32 %v11848_v58, %v2985_v1  ;;  %v2987_v5 = vadd.f32 %v11480_v3, %v2597_v32  ;;  %v11918_v34 = vld [vmem:[#allocation2 + $0xf1] sm:$0xff]  ;;  %v3760_v53 = vadd.f32 %v3705_v23, %v3371_v28  ;;  %v11931_v3 = vld [vmem:[#allocation2 + $0xf9] sm:$0xff]  ;;  %v9481_v1 = vpop.f32.mrf.mxu0 }
 0x214   : > { %v11920_v6 = vld [vmem:[#allocation2 + $0xf0] sm:$0xff]  ;;  %v11922_v11 = vld [vmem:[#allocation2 + $0xf8] sm:$0xff]  ;;  %3899 = vst.msk [vmem:[#allocation2 + $0x121] sm:$0xff] %vm280_vm1, %v3866_v49  ;;  %v3869_v54 = vmax.f32 %v3837_v55, 0.0  ;;  %v3836_v25 = vadd.f32 %v11539_v8, %v3797_v16  ;;  %v3800_v48 = vmul.f32 %v11521_v37, %v3761_v0  ;;  %9517 = vmatprep.mubr.msk.f32.mxu1 %vm280_vm1, %v11918_v34  ;;  %v3373_v58 = vadd.f32 %v3326_v41, %v2984_v51 }
 0x215   : > { %13647 = vst [vmem:[#allocation21_spill] sm:$0xff] %v11920_v6  ;;  %13648 = vst [vmem:[#allocation71_spill] sm:$0xff] %v11922_v11  ;;  %9567 = vmatprep.mubr.msk.f32.mxu0 %vm280_vm1, %v11920_v6  ;;  %v2986_v62 = vadd.f32 %v11502_v38, %v2596_v20  ;;  %9518 = vmatmul.mubr.msk.f32.gmra.mxu1 %vm280_vm1, %v11931_v3  ;;  %v3799_v28 = vmul.f32 %v11521_v37, %v3760_v53  ;;  %v3715_v41 = vpop.f32.mrf.mxu0 }
 0x216   : > { %9568 = vmatmul.mubr.msk.f32.gmra.mxu0 %vm280_vm1, %v11922_v11  ;;  %3902 = vst.msk [vmem:[#allocation2 + $0x141] sm:$0xff] %vm280_vm1, %v3869_v54  ;;  %v3868_v13 = vmax.f32 %v3836_v25, 0.0  ;;  %v3839_v32 = vadd.f32 %v11539_v8, %v3800_v48  ;;  %v3763_v24 = vadd.f32 %v9481_v1, %v3374_v39  ;;  %v3376_v49 = vadd.f32 %v9434_v57, %v2987_v5  ;;  %v11941_v51 = vld [vmem:[#allocation2 + $0x109] sm:$0xff]  ;;  %v11954_v57 = vld [vmem:[#allocation2 + $0x111] sm:$0xff] }
 0x217   : > { %v11943_v38 = vld [vmem:[#allocation2 + $0x108] sm:$0xff]  ;;  %v11945_v55 = vld [vmem:[#allocation2 + $0x110] sm:$0xff]  ;;  %v3838_v0 = vadd.f32 %v11539_v8, %v3799_v28  ;;  %v3762_v20 = vadd.f32 %v3715_v41, %v3373_v58  ;;  %9520 = vmatprep.mubr.msk.f32.mxu1 %vm280_vm1, %v11941_v51  ;;  %v3375_v39 = vadd.f32 %v3336_v35, %v2986_v62  ;;  %v9484_v5 = vpop.f32.mrf.mxu0 }
 0x218   : > { %13649 = vst [vmem:[#allocation13_spill] sm:$0xff] %v11943_v38  ;;  %13650 = vst [vmem:[#allocation23_spill] sm:$0xff] %v11945_v55  ;;  %v3871_v16 = vmax.f32 %v3839_v32, 0.0  ;;  %v3802_v26 = vmul.f32 %v11521_v37, %v3763_v24  ;;  %9570 = vmatprep.mubr.msk.f32.mxu0 %vm280_vm1, %v11943_v38  ;;  %v3765_v48 = vadd.f32 %v9484_v5, %v3376_v49 }
 0x219   : > { %3901 = vst.msk [vmem:[#allocation2 + $0x139] sm:$0xff] %vm280_vm1, %v3868_v13  ;;  %9521 = vmatmul.mubr.msk.f32.gmra.mxu1 %vm280_vm1, %v11954_v57  ;;  %v3870_v23 = vmax.f32 %v3838_v0, 0.0  ;;  %v3801_v25 = vmul.f32 %v11521_v37, %v3762_v20  ;;  %v3725_v53 = vpop.f32.mrf.mxu0  ;;  %v11976_v24 = vld [vmem:[#allocation2 + $0x129] sm:$0xff] }
 0x21a   : > { %9571 = vmatmul.mubr.msk.f32.gmra.mxu0 %vm280_vm1, %v11945_v55  ;;  %3904 = vst.msk [vmem:[#allocation2 + $0x159] sm:$0xff] %vm280_vm1, %v3871_v16  ;;  %v3841_v54 = vadd.f32 %v11539_v8, %v3802_v26  ;;  %v3804_v32 = vmul.f32 %v11521_v37, %v3765_v48  ;;  %v3764_v28 = vadd.f32 %v3725_v53, %v3375_v39  ;;  %v4623_v53 = vld [vmem:[#allocation2 + $0x2] sm:$0xff] }
 0x21b   : > { %v11963_v58 = vld [vmem:[#allocation2 + $0x121] sm:$0xff]  ;;  %3903 = vst.msk [vmem:[#allocation2 + $0x151] sm:$0xff] %vm280_vm1, %v3870_v23  ;;  %v3840_v13 = vadd.f32 %v11539_v8, %v3801_v25 }
 0x21c   : > { %v11965_v1 = vld [vmem:[#allocation2 + $0x120] sm:$0xff]  ;;  %v11967_v62 = vld [vmem:[#allocation2 + $0x128] sm:$0xff]  ;;  %v3873_v35 = vmax.f32 %v3841_v54, 0.0  ;;  %9523 = vmatprep.mubr.msk.f32.mxu1 %vm280_vm1, %v11963_v58  ;;  %v3843_v41 = vadd.f32 %v11539_v8, %v3804_v32  ;;  %v3803_v16 = vmul.f32 %v11521_v37, %v3764_v28 }
 0x21d   : > { %13651 = vst [vmem:[#allocation22_spill] sm:$0xff] %v11965_v1  ;;  %13652 = vst [vmem:[#allocation74_spill] sm:$0xff] %v11967_v62  ;;  %9573 = vmatprep.mubr.msk.f32.mxu0 %vm280_vm1, %v11965_v1  ;;  %9524 = vmatmul.mubr.msk.f32.gmra.mxu1 %vm280_vm1, %v11976_v24  ;;  %v3872_v49 = vmax.f32 %v3840_v13, 0.0  ;;  %v11997_v23 = vld [vmem:[#allocation2 + $0x141] sm:$0xff] }
 0x21e   : > { %9574 = vmatmul.mubr.msk.f32.gmra.mxu0 %vm280_vm1, %v11967_v62  ;;  %3906 = vst.msk [vmem:[#allocation2 + $0x171] sm:$0xff] %vm280_vm1, %v3873_v35  ;;  %v3875_v39 = vmax.f32 %v3843_v41, 0.0  ;;  %v3842_v5 = vadd.f32 %v11539_v8, %v3803_v16  ;;  %v9539_v16 = vpop.f32.mrf.mxu0 }
 0x21f   : > { %3905 = vst.msk [vmem:[#allocation2 + $0x169] sm:$0xff] %vm280_vm1, %v3872_v49  ;;  %v4624_v49 = vld [vmem:[#allocation2 + $0xa] sm:$0xff] }
 0x220   : > { %v11985_v0 = vld [vmem:[#allocation2 + $0x139] sm:$0xff]  ;;  %3908 = vst.msk [vmem:[#allocation2 + $0x189] sm:$0xff] %vm280_vm1, %v3875_v39  ;;  %v3874_v37 = vmax.f32 %v3842_v5, 0.0 }
 0x221   : > { %v11987_v26 = vld [vmem:[#allocation2 + $0x138] sm:$0xff]  ;;  %v11989_v20 = vld [vmem:[#allocation2 + $0x140] sm:$0xff]  ;;  %9526 = vmatprep.mubr.msk.f32.mxu1 %vm280_vm1, %v11985_v0 }
 0x222   : > { %13653 = vst [vmem:[#allocation72_spill] sm:$0xff] %v11987_v26  ;;  %13654 = vst [vmem:[#allocation24_spill] sm:$0xff] %v11989_v20  ;;  %9576 = vmatprep.mubr.msk.f32.mxu0 %vm280_vm1, %v11987_v26  ;;  %9527 = vmatmul.mubr.msk.f32.gmra.mxu1 %vm280_vm1, %v11997_v23  ;;  %v12004_v54 = vld [vmem:[#allocation2 + $0x151] sm:$0xff]  ;;  %v12015_v48 = vld [vmem:[#allocation2 + $0x159] sm:$0xff] }
 0x223   : > { %9577 = vmatmul.mubr.msk.f32.gmra.mxu0 %vm280_vm1, %v11989_v20  ;;  %v12006_v8 = vld [vmem:[#allocation2 + $0x150] sm:$0xff]  ;;  %v12008_v25 = vld [vmem:[#allocation2 + $0x158] sm:$0xff]  ;;  %3907 = vst.msk [vmem:[#allocation2 + $0x181] sm:$0xff] %vm280_vm1, %v3874_v37  ;;  %9529 = vmatprep.mubr.msk.f32.mxu1 %vm280_vm1, %v12004_v54 }
 0x224   : > { %13655 = vst [vmem:[#allocation27_spill] sm:$0xff] %v12006_v8  ;;  %13656 = vst [vmem:[#allocation77_spill] sm:$0xff] %v12008_v25  ;;  %9579 = vmatprep.mubr.msk.f32.mxu0 %vm280_vm1, %v12006_v8  ;;  %v12043_v39 = vld [vmem:[#allocation2 + $0x1a] sm:$0xff] }
 0x225   : > { %v12031_v28 = vld [vmem:[#allocation2 + $0x171] sm:$0xff] }
 0x226   : > { %9530 = vmatmul.mubr.msk.f32.gmra.mxu1 %vm280_vm1, %v12015_v48  ;;  %v12021_v35 = vld [vmem:[#allocation2 + $0x169] sm:$0xff]  ;;  %v12048_v5 = vld [vmem:[%s13306_s4 + $0x18] sm:$0xf] }
 0x227   : > { %9580 = vmatmul.mubr.msk.f32.gmra.mxu0 %vm280_vm1, %v12008_v25  ;;  %v12023_v13 = vld [vmem:[#allocation2 + $0x168] sm:$0xff]  ;;  %v12025_v32 = vld [vmem:[#allocation2 + $0x170] sm:$0xff]  ;;  %9532 = vmatprep.mubr.msk.f32.mxu1 %vm280_vm1, %v12021_v35 }
 0x228   : > { %13657 = vst [vmem:[#allocation73_spill] sm:$0xff] %v12023_v13  ;;  %9582 = vmatprep.mubr.msk.f32.mxu0 %vm280_vm1, %v12023_v13 }
 0x22a   : > { %9533 = vmatmul.mubr.msk.f32.gmra.mxu1 %vm280_vm1, %v12031_v28 }
 0x22b   : > { %9583 = vmatmul.mubr.msk.f32.gmra.mxu0 %vm280_vm1, %v12025_v32  ;;  %9587 = vmatprep.mubr.msk.f32.mxu1 %vm280_vm1, %v4623_v53  ;;  %v9945_v53 = vld [vmem:[%s13306_s4 + $0x10] sm:$0xf] }
 0x22c   : > { %9637 = vmatprep.mubr.msk.f32.mxu0 %vm280_vm1, %v11629_v4  ;;  %v12053_v4 = vld [vmem:[%s13306_s4 + $0x1c] sm:$0xf] }
 0x22e   : > { %v9489_v41 = vpop.f32.mrf.mxu1  ;;  %9588 = vmatmul.mubr.msk.f32.vlgmr.msra.gmra.mxu1 %vm280_vm1, %v4624_v49  ;;  %v12077_v49 = vld [vmem:[#allocation2 + $0x32] sm:$0xff] }
 0x22f   : > { %9638 = vmatmul.mubr.msk.f32.vlgmr.msra.gmra.mxu0 %vm280_vm1, %v11631_v46  ;;  %v12055_v37 = vadd.f32 %v9539_v16, %v9489_v41  ;;  %9686 = vmatpush3.msk.msra.mxu1 %vm488_vm0, %v9945_v53  ;;  %v12067_v46 = vld [vmem:[#allocation2 + $0x22] sm:$0xff]  ;;  %v12089_v41 = vld [vmem:[#allocation2 + $0x4a] sm:$0xff]  ;;  %v12095_v16 = vld [vmem:[#allocation2 + $0x52] sm:$0xff] }
 0x230   : > { %9590 = vmatprep.mubr.msk.f32.mxu1 %vm280_vm1, %v12043_v39  ;;  %9640 = vmatprep.mubr.msk.f32.mxu0 %vm280_vm1, %v11662_v22  ;;  %v12101_v53 = vld [vmem:[#allocation2 + $0x62] sm:$0xff] }
 0x231   : > { %13658 = vst [vmem:[#allocation14_spill] sm:$0xff] %v12055_v37  ;;  %9736 = vmatpush3.msk.msra.mxu0 %vm488_vm0, %v11598_v9  ;;  %9785 = vmatprep.subr.msk.mxu1 %vm488_vm0, %v12048_v5  ;;  %v12083_v9 = vld [vmem:[#allocation2 + $0x3a] sm:$0xff]  ;;  %v12107_v37 = vld [vmem:[#allocation2 + $0x6a] sm:$0xff] }
 0x232   : > { %9835 = vmatprep.subr.msk.mxu0 %vm488_vm0, %v12053_v4  ;;  %9591 = vmatmul.mubr.msk.f32.gmra.mxu1 %vm280_vm1, %v12067_v46 }
 0x233   : > { %9641 = vmatmul.mubr.msk.f32.gmra.mxu0 %vm280_vm1, %v11664_v14  ;;  %9593 = vmatprep.mubr.msk.f32.mxu1 %vm280_vm1, %v12077_v49 }
 0x234   : > { %9643 = vmatprep.mubr.msk.f32.mxu0 %vm280_vm1, %v11695_v50 }
 0x236   : > { %9594 = vmatmul.mubr.msk.f32.gmra.mxu1 %vm280_vm1, %v12083_v9 }
 0x237   : > { %9644 = vmatmul.mubr.msk.f32.gmra.mxu0 %vm280_vm1, %v11697_v56  ;;  %9596 = vmatprep.mubr.msk.f32.mxu1 %vm280_vm1, %v12089_v41  ;;  %v12235_v56 = vld [vmem:[#allocation2 + $0x180] sm:$0xff] }
 0x238   : > { %9646 = vmatprep.mubr.msk.f32.mxu0 %vm280_vm1, %v11728_v59  ;;  %v12113_v59 = vld [vmem:[#allocation2 + $0x7a] sm:$0xff]  ;;  %13659 = vst [vmem:[#allocation26_spill] sm:$0xff] %v12235_v56 }
 0x23a   : > { %9597 = vmatmul.mubr.msk.f32.gmra.mxu1 %vm280_vm1, %v12095_v16 }
 0x23b   : > { %9647 = vmatmul.mubr.msk.f32.gmra.mxu0 %vm280_vm1, %v11730_v44  ;;  %9599 = vmatprep.mubr.msk.f32.mxu1 %vm280_vm1, %v12101_v53  ;;  %v12119_v44 = vld [vmem:[#allocation2 + $0x82] sm:$0xff] }
 0x23c   : > { %9649 = vmatprep.mubr.msk.f32.mxu0 %vm280_vm1, %v11761_v45  ;;  %v12125_v45 = vld [vmem:[#allocation2 + $0x92] sm:$0xff] }
 0x23e   : > { %9600 = vmatmul.mubr.msk.f32.gmra.mxu1 %vm280_vm1, %v12107_v37 }
 0x23f   : > { %9650 = vmatmul.mubr.msk.f32.gmra.mxu0 %vm280_vm1, %v11763_v33  ;;  %9602 = vmatprep.mubr.msk.f32.mxu1 %vm280_vm1, %v12113_v59  ;;  %v12131_v33 = vld [vmem:[#allocation2 + $0x9a] sm:$0xff] }
 0x240   : > { %9652 = vmatprep.mubr.msk.f32.mxu0 %vm280_vm1, %v11794_v63  ;;  %v12137_v63 = vld [vmem:[#allocation2 + $0xaa] sm:$0xff] }
 0x242   : > { %9603 = vmatmul.mubr.msk.f32.gmra.mxu1 %vm280_vm1, %v12119_v44 }
 0x243   : > { %9653 = vmatmul.mubr.msk.f32.gmra.mxu0 %vm280_vm1, %v11796_v61  ;;  %9605 = vmatprep.mubr.msk.f32.mxu1 %vm280_vm1, %v12125_v45  ;;  %v12143_v61 = vld [vmem:[#allocation2 + $0xb2] sm:$0xff] }
 0x244   : > { %9655 = vmatprep.mubr.msk.f32.mxu0 %vm280_vm1, %v11827_v40  ;;  %v12149_v40 = vld [vmem:[#allocation2 + $0xc2] sm:$0xff] }
 0x246   : > { %9606 = vmatmul.mubr.msk.f32.gmra.mxu1 %vm280_vm1, %v12131_v33 }
 0x247   : > { %9656 = vmatmul.mubr.msk.f32.gmra.mxu0 %vm280_vm1, %v11829_v29  ;;  %9608 = vmatprep.mubr.msk.f32.mxu1 %vm280_vm1, %v12137_v63  ;;  %v12155_v29 = vld [vmem:[#allocation2 + $0xca] sm:$0xff] }
 0x248   : > { %9658 = vmatprep.mubr.msk.f32.mxu0 %vm280_vm1, %v11860_v43  ;;  %v12161_v43 = vld [vmem:[#allocation2 + $0xda] sm:$0xff] }
 0x24a   : > { %9609 = vmatmul.mubr.msk.f32.gmra.mxu1 %vm280_vm1, %v12143_v61 }
 0x24b   : > { %9659 = vmatmul.mubr.msk.f32.gmra.mxu0 %vm280_vm1, %v11862_v52  ;;  %9611 = vmatprep.mubr.msk.f32.mxu1 %vm280_vm1, %v12149_v40  ;;  %v12167_v52 = vld [vmem:[#allocation2 + $0xe2] sm:$0xff] }
 0x24c   : > { %9661 = vmatprep.mubr.msk.f32.mxu0 %vm280_vm1, %v11891_v15  ;;  %v12173_v15 = vld [vmem:[#allocation2 + $0xf2] sm:$0xff] }
 0x24e   : > { %9612 = vmatmul.mubr.msk.f32.gmra.mxu1 %vm280_vm1, %v12155_v29 }
 0x24f   : > { %9662 = vmatmul.mubr.msk.f32.gmra.mxu0 %vm280_vm1, %v11893_v12  ;;  %9614 = vmatprep.mubr.msk.f32.mxu1 %vm280_vm1, %v12161_v43  ;;  %v12179_v12 = vld [vmem:[#allocation2 + $0xfa] sm:$0xff] }
 0x250   : > { %9664 = vmatprep.mubr.msk.f32.mxu0 %vm280_vm1, %v11920_v6  ;;  %v12185_v6 = vld [vmem:[#allocation2 + $0x10a] sm:$0xff] }
 0x252   : > { %9615 = vmatmul.mubr.msk.f32.gmra.mxu1 %vm280_vm1, %v12167_v52 }
 0x253   : > { %9665 = vmatmul.mubr.msk.f32.gmra.mxu0 %vm280_vm1, %v11922_v11  ;;  %9617 = vmatprep.mubr.msk.f32.mxu1 %vm280_vm1, %v12173_v15  ;;  %v12191_v11 = vld [vmem:[#allocation2 + $0x112] sm:$0xff] }
 0x254   : > { %9667 = vmatprep.mubr.msk.f32.mxu0 %vm280_vm1, %v11943_v38  ;;  %v12197_v38 = vld [vmem:[#allocation2 + $0x122] sm:$0xff] }
 0x256   : > { %9618 = vmatmul.mubr.msk.f32.gmra.mxu1 %vm280_vm1, %v12179_v12 }
 0x257   : > { %9668 = vmatmul.mubr.msk.f32.gmra.mxu0 %vm280_vm1, %v11945_v55  ;;  %9620 = vmatprep.mubr.msk.f32.mxu1 %vm280_vm1, %v12185_v6  ;;  %v12203_v55 = vld [vmem:[#allocation2 + $0x12a] sm:$0xff] }
 0x258   : > { %9670 = vmatprep.mubr.msk.f32.mxu0 %vm280_vm1, %v11965_v1  ;;  %v12209_v1 = vld [vmem:[#allocation2 + $0x13a] sm:$0xff] }
 0x25a   : > { %9621 = vmatmul.mubr.msk.f32.gmra.mxu1 %vm280_vm1, %v12191_v11 }
 0x25b   : > { %9671 = vmatmul.mubr.msk.f32.gmra.mxu0 %vm280_vm1, %v11967_v62  ;;  %9623 = vmatprep.mubr.msk.f32.mxu1 %vm280_vm1, %v12197_v38  ;;  %v12215_v62 = vld [vmem:[#allocation2 + $0x142] sm:$0xff] }
 0x25c   : > { %9673 = vmatprep.mubr.msk.f32.mxu0 %vm280_vm1, %v11987_v26  ;;  %v12221_v26 = vld [vmem:[#allocation2 + $0x152] sm:$0xff] }
 0x25e   : > { %9624 = vmatmul.mubr.msk.f32.gmra.mxu1 %vm280_vm1, %v12203_v55 }
 0x25f   : > { %9674 = vmatmul.mubr.msk.f32.gmra.mxu0 %vm280_vm1, %v11989_v20  ;;  %9626 = vmatprep.mubr.msk.f32.mxu1 %vm280_vm1, %v12209_v1  ;;  %v12227_v20 = vld [vmem:[#allocation2 + $0x15a] sm:$0xff] }
 0x260   : > { %9676 = vmatprep.mubr.msk.f32.mxu0 %vm280_vm1, %v12006_v8  ;;  %v12233_v8 = vld [vmem:[#allocation2 + $0x16a] sm:$0xff] }
 0x262   : > { %9627 = vmatmul.mubr.msk.f32.gmra.mxu1 %vm280_vm1, %v12215_v62 }
 0x263   : > { %9677 = vmatmul.mubr.msk.f32.gmra.mxu0 %vm280_vm1, %v12008_v25  ;;  %9629 = vmatprep.mubr.msk.f32.mxu1 %vm280_vm1, %v12221_v26  ;;  %v12241_v25 = vld [vmem:[#allocation2 + $0x172] sm:$0xff] }
 0x264   : > { %9679 = vmatprep.mubr.msk.f32.mxu0 %vm280_vm1, %v12023_v13  ;;  %v12243_v13 = vld [vmem:[#allocation2 + $0x188] sm:$0xff] }
 0x266   : > { %9630 = vmatmul.mubr.msk.f32.gmra.mxu1 %vm280_vm1, %v12227_v20 }
 0x267   : > { %9680 = vmatmul.mubr.msk.f32.gmra.mxu0 %vm280_vm1, %v12025_v32  ;;  %9632 = vmatprep.mubr.msk.f32.mxu1 %vm280_vm1, %v12233_v8 }
 0x268   : > { %9682 = vmatprep.mubr.msk.f32.mxu0 %vm280_vm1, %v12235_v56  ;;  %v12260_v56 = vld [vmem:[%s13306_s4 + $0x20] sm:$0xf] }
 0x26a   : > { %9633 = vmatmul.mubr.msk.f32.gmra.mxu1 %vm280_vm1, %v12241_v25 }
 0x26b   : > { %9683 = vmatmul.mubr.msk.f32.gmra.mxu0 %vm280_vm1, %v12243_v13  ;;  %9687 = vmatprep.mubr.msk.f32.mxu1 %vm280_vm1, %v11627_v47  ;;  %v13660_v47 = vld [vmem:[#allocation17_spill] sm:$0xff] }
 0x26c   : > { %9737 = vmatprep.mubr.msk.f32.mxu0 %vm280_vm1, %v12043_v39  ;;  %v13662_v39 = vld [vmem:[#allocation18_spill] sm:$0xff] }
 0x26e   : > { %9688 = vmatmul.mubr.msk.f32.vlgmr.msra.gmra.mxu1 %vm280_vm1, %v11640_v10  ;;  %v13661_v10 = vld [vmem:[#allocation8_spill] sm:$0xff] }
 0x26f   : > { %9738 = vmatmul.mubr.msk.f32.vlgmr.msra.gmra.mxu0 %vm280_vm1, %v12067_v46  ;;  %9786 = vmatpush3.msk.msra.mxu1 %vm488_vm0, %v12048_v5  ;;  %v13663_v5 = vld [vmem:[#allocation12_spill] sm:$0xff]  ;;  %v13666_v46 = vld [vmem:[#allocation3_spill] sm:$0xff] }
 0x270   : > { %9690 = vmatprep.mubr.msk.f32.mxu1 %vm280_vm1, %v11660_v30  ;;  %9740 = vmatprep.mubr.msk.f32.mxu0 %vm280_vm1, %v12077_v49 }
 0x271   : > { %9836 = vmatpush3.msk.msra.mxu0 %vm488_vm0, %v12053_v4  ;;  %9885 = vmatprep.subr.msk.mxu1 %vm488_vm0, %v12260_v56 }
 0x272   : > { %9691 = vmatmul.mubr.msk.f32.gmra.mxu1 %vm280_vm1, %v11673_v31 }
 0x273   : > { %9741 = vmatmul.mubr.msk.f32.gmra.mxu0 %vm280_vm1, %v12083_v9  ;;  %9693 = vmatprep.mubr.msk.f32.mxu1 %vm280_vm1, %v11693_v21 }
 0x274   : > { %9743 = vmatprep.mubr.msk.f32.mxu0 %vm280_vm1, %v12089_v41 }
 0x276   : > { %9694 = vmatmul.mubr.msk.f32.gmra.mxu1 %vm280_vm1, %v11706_v18 }
 0x277   : > { %9744 = vmatmul.mubr.msk.f32.gmra.mxu0 %vm280_vm1, %v12095_v16  ;;  %9696 = vmatprep.mubr.msk.f32.mxu1 %vm280_vm1, %v11726_v2 }
 0x278   : > { %9746 = vmatprep.mubr.msk.f32.mxu0 %vm280_vm1, %v12101_v53 }
 0x27a   : > { %9697 = vmatmul.mubr.msk.f32.gmra.mxu1 %vm280_vm1, %v11739_v42 }
 0x27b   : > { %9747 = vmatmul.mubr.msk.f32.gmra.mxu0 %vm280_vm1, %v12107_v37  ;;  %9699 = vmatprep.mubr.msk.f32.mxu1 %vm280_vm1, %v11759_v27 }
 0x27c   : > { %9749 = vmatprep.mubr.msk.f32.mxu0 %vm280_vm1, %v12113_v59 }
 0x27e   : > { %9700 = vmatmul.mubr.msk.f32.gmra.mxu1 %vm280_vm1, %v11772_v7 }
 0x27f   : > { %9750 = vmatmul.mubr.msk.f32.gmra.mxu0 %vm280_vm1, %v12119_v44  ;;  %9702 = vmatprep.mubr.msk.f32.mxu1 %vm280_vm1, %v11792_v17 }
 0x280   : > { %9752 = vmatprep.mubr.msk.f32.mxu0 %vm280_vm1, %v12125_v45 }
 0x282   : > { %9703 = vmatmul.mubr.msk.f32.gmra.mxu1 %vm280_vm1, %v13660_v47 }
 0x283   : > { %9753 = vmatmul.mubr.msk.f32.gmra.mxu0 %vm280_vm1, %v12131_v33  ;;  %9705 = vmatprep.mubr.msk.f32.mxu1 %vm280_vm1, %v11825_v19 }
 0x284   : > { %9755 = vmatprep.mubr.msk.f32.mxu0 %vm280_vm1, %v12137_v63 }
 0x286   : > { %9706 = vmatmul.mubr.msk.f32.gmra.mxu1 %vm280_vm1, %v13661_v10 }
 0x287   : > { %9756 = vmatmul.mubr.msk.f32.gmra.mxu0 %vm280_vm1, %v12143_v61  ;;  %9708 = vmatprep.mubr.msk.f32.mxu1 %vm280_vm1, %v13662_v39 }
 0x288   : > { %9758 = vmatprep.mubr.msk.f32.mxu0 %vm280_vm1, %v12149_v40 }
 0x28a   : > { %9709 = vmatmul.mubr.msk.f32.gmra.mxu1 %vm280_vm1, %v13663_v5 }
 0x28b   : > { %9759 = vmatmul.mubr.msk.f32.gmra.mxu0 %vm280_vm1, %v12155_v29  ;;  %9711 = vmatprep.mubr.msk.f32.mxu1 %vm280_vm1, %v11889_v60 }
 0x28c   : > { %9761 = vmatprep.mubr.msk.f32.mxu0 %vm280_vm1, %v12161_v43 }
 0x28e   : > { %9712 = vmatmul.mubr.msk.f32.gmra.mxu1 %vm280_vm1, %v11902_v36 }
 0x28f   : > { %9762 = vmatmul.mubr.msk.f32.gmra.mxu0 %vm280_vm1, %v12167_v52  ;;  %9714 = vmatprep.mubr.msk.f32.mxu1 %vm280_vm1, %v11918_v34 }
 0x290   : > { %9764 = vmatprep.mubr.msk.f32.mxu0 %vm280_vm1, %v12173_v15 }
 0x292   : > { %9715 = vmatmul.mubr.msk.f32.gmra.mxu1 %vm280_vm1, %v11931_v3 }
 0x293   : > { %9765 = vmatmul.mubr.msk.f32.gmra.mxu0 %vm280_vm1, %v12179_v12  ;;  %9717 = vmatprep.mubr.msk.f32.mxu1 %vm280_vm1, %v11941_v51 }
 0x294   : > { %9767 = vmatprep.mubr.msk.f32.mxu0 %vm280_vm1, %v12185_v6 }
 0x296   : > { %9718 = vmatmul.mubr.msk.f32.gmra.mxu1 %vm280_vm1, %v11954_v57 }
 0x297   : > { %9768 = vmatmul.mubr.msk.f32.gmra.mxu0 %vm280_vm1, %v12191_v11  ;;  %9720 = vmatprep.mubr.msk.f32.mxu1 %vm280_vm1, %v11963_v58  ;;  %v12380_v11 = vld [vmem:[#allocation2 + $0x181] sm:$0xff] }
 0x298   : > { %9770 = vmatprep.mubr.msk.f32.mxu0 %vm280_vm1, %v12197_v38 }
 0x29a   : > { %9721 = vmatmul.mubr.msk.f32.gmra.mxu1 %vm280_vm1, %v11976_v24 }
 0x29b   : > { %9771 = vmatmul.mubr.msk.f32.gmra.mxu0 %vm280_vm1, %v12203_v55  ;;  %9723 = vmatprep.mubr.msk.f32.mxu1 %vm280_vm1, %v11985_v0  ;;  %v12382_v55 = vld [vmem:[#allocation2 + $0x182] sm:$0xff] }
 0x29c   : > { %9773 = vmatprep.mubr.msk.f32.mxu0 %vm280_vm1, %v12209_v1  ;;  %v12388_v1 = vld [vmem:[#allocation2 + $0x189] sm:$0xff] }
 0x29e   : > { %9724 = vmatmul.mubr.msk.f32.gmra.mxu1 %vm280_vm1, %v11997_v23 }
 0x29f   : > { %9774 = vmatmul.mubr.msk.f32.gmra.mxu0 %vm280_vm1, %v12215_v62  ;;  %9726 = vmatprep.mubr.msk.f32.mxu1 %vm280_vm1, %v12004_v54  ;;  %v12390_v62 = vld [vmem:[#allocation2 + $0x18a] sm:$0xff] }
 0x2a0   : > { %9776 = vmatprep.mubr.msk.f32.mxu0 %vm280_vm1, %v12221_v26  ;;  %v12408_v26 = vpop.f32.mrf.mxu1 }
 0x2a2   : > { %9727 = vmatmul.mubr.msk.f32.gmra.mxu1 %vm280_vm1, %v12015_v48 }
 0x2a3   : > { %9777 = vmatmul.mubr.msk.f32.gmra.mxu0 %vm280_vm1, %v12227_v20  ;;  %9729 = vmatprep.mubr.msk.f32.mxu1 %vm280_vm1, %v12021_v35  ;;  %v12410_v20 = vpop.f32.mrf.mxu0 }
 0x2a4   : > { %9779 = vmatprep.mubr.msk.f32.mxu0 %vm280_vm1, %v12233_v8  ;;  %v13664_v8 = vld [vmem:[#allocation29_spill] sm:$0xff] }
 0x2a6   : > { %9730 = vmatmul.mubr.msk.f32.gmra.mxu1 %vm280_vm1, %v12031_v28 }
 0x2a7   : > { %9780 = vmatmul.mubr.msk.f32.gmra.mxu0 %vm280_vm1, %v12241_v25  ;;  %9732 = vmatprep.mubr.msk.f32.mxu1 %vm280_vm1, %v12380_v11 }
 0x2a8   : > { %9782 = vmatprep.mubr.msk.f32.mxu0 %vm280_vm1, %v12382_v55 }
 0x2aa   : > { %9733 = vmatmul.mubr.msk.f32.gmra.mxu1 %vm280_vm1, %v12388_v1 }
 0x2ab   : > { %9783 = vmatmul.mubr.msk.f32.gmra.mxu0 %vm280_vm1, %v12390_v62  ;;  %9787 = vmatprep.mubr.msk.f32.mxu1 %vm280_vm1, %v11662_v22 }
 0x2ac   : > { %9837 = vmatprep.mubr.msk.f32.mxu0 %vm280_vm1, %v11660_v30 }
 0x2ae   : > { %9788 = vmatmul.mubr.msk.f32.vlgmr.msra.gmra.mxu1 %vm280_vm1, %v11664_v14 }
 0x2af   : > { %9838 = vmatmul.mubr.msk.f32.vlgmr.msra.gmra.mxu0 %vm280_vm1, %v11673_v31  ;;  %9886 = vmatpush3.msk.msra.mxu1 %vm488_vm0, %v12260_v56  ;;  %v9492_v30 = vpop.f32.mrf.mxu1  ;;  %v13665_v31 = vld [vmem:[#allocation30_spill] sm:$0xff] }
 0x2b0   : > { %9790 = vmatprep.mubr.msk.f32.mxu1 %vm280_vm1, %v11695_v50  ;;  %9840 = vmatprep.mubr.msk.f32.mxu0 %vm280_vm1, %v11693_v21  ;;  %v9542_v22 = vpop.f32.mrf.mxu0 }
 0x2b1   : > { %v12418_v14 = vadd.f32 %v9542_v22, %v9492_v30  ;;  %v4150_v50 = vpop.f32.mrf.mxu1  ;;  %v13667_v30 = vld [vmem:[#allocation4_spill] sm:$0xff] }
 0x2b2   : > { %9791 = vmatmul.mubr.msk.f32.gmra.mxu1 %vm280_vm1, %v13664_v8  ;;  %v4474_v56 = vpop.f32.mrf.mxu0 }
 0x2b3   : > { %9841 = vmatmul.mubr.msk.f32.gmra.mxu0 %vm280_vm1, %v11706_v18  ;;  %9793 = vmatprep.mubr.msk.f32.mxu1 %vm280_vm1, %v13665_v31  ;;  %v12424_v25 = vadd.f32 %v4474_v56, %v4150_v50  ;;  %v9495_v21 = vpop.f32.mrf.mxu1  ;;  %v13668_v56 = vld [vmem:[#allocation5_spill] sm:$0xff] }
 0x2b4   : > { %9843 = vmatprep.mubr.msk.f32.mxu0 %vm280_vm1, %v11726_v2  ;;  %v9545_v4 = vpop.f32.mrf.mxu0 }
 0x2b5   : > { %v12430_v18 = vadd.f32 %v9545_v4, %v9495_v21  ;;  %v4160_v2 = vpop.f32.mrf.mxu1  ;;  %v13669_v21 = vld [vmem:[#allocation6_spill] sm:$0xff] }
 0x2b6   : > { %9794 = vmatmul.mubr.msk.f32.gmra.mxu1 %vm280_vm1, %v13666_v46  ;;  %v4484_v22 = vpop.f32.mrf.mxu0 }
 0x2b7   : > { %9844 = vmatmul.mubr.msk.f32.gmra.mxu0 %vm280_vm1, %v11739_v42  ;;  %9796 = vmatprep.mubr.msk.f32.mxu1 %vm280_vm1, %v13667_v30  ;;  %v12436_v8 = vadd.f32 %v4484_v22, %v4160_v2  ;;  %v9498_v31 = vpop.f32.mrf.mxu1  ;;  %v13670_v22 = vld [vmem:[#allocation10_spill] sm:$0xff] }
 0x2b8   : > { %9846 = vmatprep.mubr.msk.f32.mxu0 %vm280_vm1, %v11759_v27  ;;  %v9548_v50 = vpop.f32.mrf.mxu0 }
 0x2b9   : > { %v12442_v42 = vadd.f32 %v9548_v50, %v9498_v31  ;;  %v4170_v27 = vpop.f32.mrf.mxu1  ;;  %v13671_v31 = vld [vmem:[#allocation16_spill] sm:$0xff] }
 0x2ba   : > { %9797 = vmatmul.mubr.msk.f32.gmra.mxu1 %vm280_vm1, %v13668_v56  ;;  %v4494_v4 = vpop.f32.mrf.mxu0 }
 0x2bb   : > { %9847 = vmatmul.mubr.msk.f32.gmra.mxu0 %vm280_vm1, %v11772_v7  ;;  %9799 = vmatprep.mubr.msk.f32.mxu1 %vm280_vm1, %v13669_v21  ;;  %v12448_v46 = vadd.f32 %v4494_v4, %v4170_v27  ;;  %v13672_v4 = vld [vmem:[#allocation7_spill] sm:$0xff] }
 0x2bc   : > { %9849 = vmatprep.mubr.msk.f32.mxu0 %vm280_vm1, %v11792_v17  ;;  %v9501_v30 = vpop.f32.mrf.mxu1  ;;  %v9551_v2 = vpop.f32.mrf.mxu0 }
 0x2bd   : > { %v12454_v7 = vadd.f32 %v9551_v2, %v9501_v30  ;;  %v13673_v30 = vld [vmem:[#allocation9_spill] sm:$0xff] }
 0x2be   : > { %9800 = vmatmul.mubr.msk.f32.gmra.mxu1 %vm280_vm1, %v13670_v22  ;;  %v4180_v17 = vpop.f32.mrf.mxu1  ;;  %v4504_v50 = vpop.f32.mrf.mxu0 }
 0x2bf   : > { %9850 = vmatmul.mubr.msk.f32.gmra.mxu0 %vm280_vm1, %v13660_v47  ;;  %9802 = vmatprep.mubr.msk.f32.mxu1 %vm280_vm1, %v13671_v31  ;;  %v12460_v56 = vadd.f32 %v4504_v50, %v4180_v17  ;;  %v13674_v50 = vld [vmem:[#allocation11_spill] sm:$0xff] }
 0x2c0   : > { %9852 = vmatprep.mubr.msk.f32.mxu0 %vm280_vm1, %v11825_v19  ;;  %v9504_v21 = vpop.f32.mrf.mxu1  ;;  %v9554_v27 = vpop.f32.mrf.mxu0 }
 0x2c1   : > { %v12466_v47 = vadd.f32 %v9554_v27, %v9504_v21  ;;  %v13675_v21 = vld [vmem:[#allocation20_spill] sm:$0xff] }
 0x2c2   : > { %9803 = vmatmul.mubr.msk.f32.gmra.mxu1 %vm280_vm1, %v13672_v4  ;;  %v4190_v19 = vpop.f32.mrf.mxu1  ;;  %v4514_v2 = vpop.f32.mrf.mxu0 }
 0x2c3   : > { %9853 = vmatmul.mubr.msk.f32.gmra.mxu0 %vm280_vm1, %v13661_v10  ;;  %9805 = vmatprep.mubr.msk.f32.mxu1 %vm280_vm1, %v13673_v30  ;;  %v12472_v22 = vadd.f32 %v4514_v2, %v4190_v19  ;;  %v13676_v2 = vld [vmem:[#allocation19_spill] sm:$0xff] }
 0x2c4   : > { %9855 = vmatprep.mubr.msk.f32.mxu0 %vm280_vm1, %v13662_v39  ;;  %v9507_v31 = vpop.f32.mrf.mxu1  ;;  %v9557_v17 = vpop.f32.mrf.mxu0 }
 0x2c5   : > { %v12478_v10 = vadd.f32 %v9557_v17, %v9507_v31  ;;  %v13677_v31 = vld [vmem:[#allocation21_spill] sm:$0xff] }
 0x2c6   : > { %9806 = vmatmul.mubr.msk.f32.gmra.mxu1 %vm280_vm1, %v13674_v50  ;;  %v4200_v39 = vpop.f32.mrf.mxu1  ;;  %v4524_v27 = vpop.f32.mrf.mxu0 }
 0x2c7   : > { %9856 = vmatmul.mubr.msk.f32.gmra.mxu0 %vm280_vm1, %v13663_v5  ;;  %9808 = vmatprep.mubr.msk.f32.mxu1 %vm280_vm1, %v13675_v21  ;;  %v12484_v4 = vadd.f32 %v4524_v27, %v4200_v39  ;;  %v13678_v27 = vld [vmem:[#allocation71_spill] sm:$0xff] }
 0x2c8   : > { %9858 = vmatprep.mubr.msk.f32.mxu0 %vm280_vm1, %v11889_v60  ;;  %v9510_v30 = vpop.f32.mrf.mxu1  ;;  %v9560_v19 = vpop.f32.mrf.mxu0 }
 0x2c9   : > { %v12490_v5 = vadd.f32 %v9560_v19, %v9510_v30  ;;  %v13679_v30 = vld [vmem:[#allocation13_spill] sm:$0xff] }
 0x2ca   : > { %9809 = vmatmul.mubr.msk.f32.gmra.mxu1 %vm280_vm1, %v13676_v2  ;;  %v4210_v60 = vpop.f32.mrf.mxu1  ;;  %v4534_v17 = vpop.f32.mrf.mxu0 }
 0x2cb   : > { %9859 = vmatmul.mubr.msk.f32.gmra.mxu0 %vm280_vm1, %v11902_v36  ;;  %9811 = vmatprep.mubr.msk.f32.mxu1 %vm280_vm1, %v13677_v31  ;;  %v12496_v50 = vadd.f32 %v4534_v17, %v4210_v60  ;;  %v13680_v17 = vld [vmem:[#allocation23_spill] sm:$0xff] }
 0x2cc   : > { %9861 = vmatprep.mubr.msk.f32.mxu0 %vm280_vm1, %v11918_v34 }
 0x2cd   : > { %v9513_v21 = vpop.f32.mrf.mxu1  ;;  %v9563_v39 = vpop.f32.mrf.mxu0 }
 0x2ce   : > { %9812 = vmatmul.mubr.msk.f32.gmra.mxu1 %vm280_vm1, %v13678_v27  ;;  %v12502_v36 = vadd.f32 %v9563_v39, %v9513_v21  ;;  %v13681_v21 = vld [vmem:[#allocation22_spill] sm:$0xff] }
 0x2cf   : > { %9862 = vmatmul.mubr.msk.f32.gmra.mxu0 %vm280_vm1, %v11931_v3  ;;  %9814 = vmatprep.mubr.msk.f32.mxu1 %vm280_vm1, %v13679_v30  ;;  %v4220_v34 = vpop.f32.mrf.mxu1  ;;  %v4544_v19 = vpop.f32.mrf.mxu0 }
 0x2d0   : > { %9864 = vmatprep.mubr.msk.f32.mxu0 %vm280_vm1, %v11941_v51  ;;  %v12508_v2 = vadd.f32 %v4544_v19, %v4220_v34  ;;  %v13682_v19 = vld [vmem:[#allocation74_spill] sm:$0xff] }
 0x2d1   : > { %v9516_v31 = vpop.f32.mrf.mxu1  ;;  %v9566_v60 = vpop.f32.mrf.mxu0 }
 0x2d2   : > { %9815 = vmatmul.mubr.msk.f32.gmra.mxu1 %vm280_vm1, %v13680_v17  ;;  %v12514_v3 = vadd.f32 %v9566_v60, %v9516_v31  ;;  %v13683_v31 = vld [vmem:[#allocation72_spill] sm:$0xff] }
 0x2d3   : > { %9865 = vmatmul.mubr.msk.f32.gmra.mxu0 %vm280_vm1, %v11954_v57  ;;  %9817 = vmatprep.mubr.msk.f32.mxu1 %vm280_vm1, %v13681_v21  ;;  %v4230_v51 = vpop.f32.mrf.mxu1  ;;  %v4554_v39 = vpop.f32.mrf.mxu0 }
 0x2d4   : > { %9867 = vmatprep.mubr.msk.f32.mxu0 %vm280_vm1, %v11963_v58  ;;  %v12520_v27 = vadd.f32 %v4554_v39, %v4230_v51  ;;  %v13684_v39 = vld [vmem:[#allocation24_spill] sm:$0xff] }
 0x2d5   : > { %v9519_v30 = vpop.f32.mrf.mxu1 }
 0x2d6   : > { %v9569_v34 = vpop.f32.mrf.mxu0  ;;  %9818 = vmatmul.mubr.msk.f32.gmra.mxu1 %vm280_vm1, %v13682_v19 }
 0x2d7   : > { %9868 = vmatmul.mubr.msk.f32.gmra.mxu0 %vm280_vm1, %v11976_v24  ;;  %v12526_v57 = vadd.f32 %v9569_v34, %v9519_v30  ;;  %9820 = vmatprep.mubr.msk.f32.mxu1 %vm280_vm1, %v13683_v31  ;;  %v4240_v58 = vpop.f32.mrf.mxu1  ;;  %v13685_v30 = vld [vmem:[#allocation27_spill] sm:$0xff] }
 0x2d8   : > { %9870 = vmatprep.mubr.msk.f32.mxu0 %vm280_vm1, %v11985_v0  ;;  %v4564_v60 = vpop.f32.mrf.mxu0 }
 0x2d9   : > { %v12532_v17 = vadd.f32 %v4564_v60, %v4240_v58  ;;  %v9522_v21 = vpop.f32.mrf.mxu1  ;;  %v13686_v60 = vld [vmem:[#allocation77_spill] sm:$0xff] }
 0x2da   : > { %v9572_v51 = vpop.f32.mrf.mxu0  ;;  %9821 = vmatmul.mubr.msk.f32.gmra.mxu1 %vm280_vm1, %v13684_v39 }
 0x2db   : > { %9871 = vmatmul.mubr.msk.f32.gmra.mxu0 %vm280_vm1, %v11997_v23  ;;  %v12538_v24 = vadd.f32 %v9572_v51, %v9522_v21  ;;  %9823 = vmatprep.mubr.msk.f32.mxu1 %vm280_vm1, %v13685_v30  ;;  %v4250_v0 = vpop.f32.mrf.mxu1  ;;  %v13687_v21 = vld [vmem:[#allocation73_spill] sm:$0xff] }
 0x2dc   : > { %9873 = vmatprep.mubr.msk.f32.mxu0 %vm280_vm1, %v12004_v54  ;;  %v4574_v34 = vpop.f32.mrf.mxu0 }
 0x2dd   : > { %v12544_v19 = vadd.f32 %v4574_v34, %v4250_v0  ;;  %v9525_v31 = vpop.f32.mrf.mxu1  ;;  %v13688_v34 = vld [vmem:[#allocation26_spill] sm:$0xff] }
 0x2de   : > { %v9575_v58 = vpop.f32.mrf.mxu0  ;;  %9824 = vmatmul.mubr.msk.f32.gmra.mxu1 %vm280_vm1, %v13686_v60  ;;  %v6599_v60 = vld [vmem:[#allocation2 + $0x199] sm:$0xff] }
 0x2df   : > { %9874 = vmatmul.mubr.msk.f32.gmra.mxu0 %vm280_vm1, %v12015_v48  ;;  %v12550_v23 = vadd.f32 %v9575_v58, %v9525_v31  ;;  %9826 = vmatprep.mubr.msk.f32.mxu1 %vm280_vm1, %v13687_v21  ;;  %v4260_v54 = vpop.f32.mrf.mxu1  ;;  %v6210_v58 = vld [vmem:[#allocation2 + $0x198] sm:$0xff] }
 0x2e0   : > { %9876 = vmatprep.mubr.msk.f32.mxu0 %vm280_vm1, %v12021_v35  ;;  %v4584_v51 = vpop.f32.mrf.mxu0 }
 0x2e1   : > { %v12556_v39 = vadd.f32 %v4584_v51, %v4260_v54 }
 0x2e2   : > { %v9528_v30 = vpop.f32.mrf.mxu1  ;;  %9827 = vmatmul.mubr.msk.f32.gmra.mxu1 %vm280_vm1, %v12025_v32 }
 0x2e3   : > { %v9578_v0 = vpop.f32.mrf.mxu0  ;;  %9877 = vmatmul.mubr.msk.f32.gmra.mxu0 %vm280_vm1, %v12031_v28  ;;  %9829 = vmatprep.mubr.msk.f32.mxu1 %vm280_vm1, %v13688_v34  ;;  %v6211_v28 = vld [vmem:[#allocation2 + $0x1a0] sm:$0xff] }
 0x2e4   : > { %v12562_v48 = vadd.f32 %v9578_v0, %v9528_v30  ;;  %9879 = vmatprep.mubr.msk.f32.mxu0 %vm280_vm1, %v12380_v11  ;;  %v4270_v35 = vpop.f32.mrf.mxu1  ;;  %v6600_v11 = vld [vmem:[#allocation2 + $0x1a1] sm:$0xff] }
 0x2e5   : > { %v4594_v31 = vpop.f32.mrf.mxu0 }
 0x2e6   : > { %v12568_v21 = vadd.f32 %v4594_v31, %v4270_v35  ;;  %v9531_v54 = vpop.f32.mrf.mxu1  ;;  %9830 = vmatmul.mubr.msk.f32.gmra.mxu1 %vm280_vm1, %v12243_v13 }
 0x2e7   : > { %v9581_v51 = vpop.f32.mrf.mxu0  ;;  %9880 = vmatmul.mubr.msk.f32.gmra.mxu0 %vm280_vm1, %v12388_v1  ;;  %9832 = vmatprep.mubr.msk.f32.mxu1 %vm280_vm1, %v6210_v58 }
 0x2e8   : > { %v12574_v32 = vadd.f32 %v9581_v51, %v9531_v54  ;;  %9882 = vmatprep.mubr.msk.f32.mxu0 %vm280_vm1, %v6599_v60  ;;  %v4280_v30 = vpop.f32.mrf.mxu1 }
 0x2e9   : > { %v4604_v0 = vpop.f32.mrf.mxu0 }
 0x2ea   : > { %v12578_v34 = vadd.f32 %v4604_v0, %v4280_v30  ;;  %v9534_v35 = vpop.f32.mrf.mxu1  ;;  %9833 = vmatmul.mubr.msk.f32.gmra.mxu1 %vm280_vm1, %v6211_v28  ;;  %v4465_v30 = vadd.f32 %v12410_v20, %v12408_v26  ;;  %v13690_v28 = vld [vmem:[#allocation14_spill] sm:$0xff] }
 0x2eb   : > { %v9584_v31 = vpop.f32.mrf.mxu0  ;;  %9883 = vmatmul.mubr.msk.f32.gmra.mxu0 %vm280_vm1, %v6600_v11  ;;  %9887 = vmatprep.mubr.msk.f32.mxu1 %vm280_vm1, %v12077_v49 }
 0x2ec   : > { %v12582_v13 = vadd.f32 %v9584_v31, %v9534_v35  ;;  %v4290_v1 = vpop.f32.mrf.mxu1 }
 0x2ed   : > { %v4614_v58 = vpop.f32.mrf.mxu0 }
 0x2ee   : > { %v12586_v54 = vadd.f32 %v4614_v58, %v4290_v1  ;;  %v9589_v60 = vpop.f32.mrf.mxu1  ;;  %9888 = vmatmul.mubr.msk.f32.vlgmr.msra.gmra.mxu1 %vm280_vm1, %v12083_v9 }
 0x2ef   : > { %v9639_v51 = vpop.f32.mrf.mxu0  ;;  %v4981_v0 = vadd.f32 %v9589_v60, %v13690_v28  ;;  %9890 = vmatprep.mubr.msk.f32.mxu1 %vm280_vm1, %v12089_v41 }
 0x2f0   : > { %13689 = vst [vmem:[#allocation25_spill] sm:$0xff] %v12586_v54  ;;  %v4821_v11 = vpop.f32.mrf.mxu1 }
 0x2f1   : > { %v5210_v35 = vpop.f32.mrf.mxu0  ;;  %v12595_v49 = vadd.f32 %v9639_v51, %v4981_v0  ;;  %v4980_v31 = vadd.f32 %v4821_v11, %v4465_v30 }
 0x2f2   : > { %v9592_v1 = vpop.f32.mrf.mxu1  ;;  %9891 = vmatmul.mubr.msk.f32.gmra.mxu1 %vm280_vm1, %v12095_v16 }
 0x2f3   : > { %v9642_v58 = vpop.f32.mrf.mxu0  ;;  %v12599_v54 = vadd.f32 %v5210_v35, %v4980_v31  ;;  %v4983_v9 = vadd.f32 %v9592_v1, %v12418_v14  ;;  %9893 = vmatprep.mubr.msk.f32.mxu1 %vm280_vm1, %v12101_v53 }
 0x2f4   : > { %v4831_v26 = vpop.f32.mrf.mxu1 }
 0x2f5   : > { %v5220_v20 = vpop.f32.mrf.mxu0  ;;  %v12604_v41 = vadd.f32 %v9642_v58, %v4983_v9  ;;  %v4982_v60 = vadd.f32 %v4831_v26, %v12424_v25 }
 0x2f6   : > { %v9595_v51 = vpop.f32.mrf.mxu1  ;;  %9894 = vmatmul.mubr.msk.f32.gmra.mxu1 %vm280_vm1, %v12107_v37 }
 0x2f7   : > { %v9645_v30 = vpop.f32.mrf.mxu0  ;;  %v12609_v28 = vadd.f32 %v5220_v20, %v4982_v60  ;;  %v4985_v16 = vadd.f32 %v9595_v51, %v12430_v18  ;;  %9896 = vmatprep.mubr.msk.f32.mxu1 %vm280_vm1, %v12113_v59 }
 0x2f8   : > { %v4841_v14 = vpop.f32.mrf.mxu1 }
 0x2f9   : > { %v5230_v53 = vpop.f32.mrf.mxu0  ;;  %v12614_v0 = vadd.f32 %v9645_v30, %v4985_v16  ;;  %v4984_v11 = vadd.f32 %v4841_v14, %v12436_v8 }
 0x2fa   : > { %v9598_v35 = vpop.f32.mrf.mxu1  ;;  %9897 = vmatmul.mubr.msk.f32.gmra.mxu1 %vm280_vm1, %v12119_v44 }
 0x2fb   : > { %v9648_v25 = vpop.f32.mrf.mxu0  ;;  %v12619_v31 = vadd.f32 %v5230_v53, %v4984_v11  ;;  %v4987_v37 = vadd.f32 %v9598_v35, %v12442_v42  ;;  %9899 = vmatprep.mubr.msk.f32.mxu1 %vm280_vm1, %v12125_v45 }
 0x2fc   : > { %v4851_v18 = vpop.f32.mrf.mxu1 }
 0x2fd   : > { %v5240_v59 = vpop.f32.mrf.mxu0  ;;  %v12624_v1 = vadd.f32 %v9648_v25, %v4987_v37  ;;  %v4986_v58 = vadd.f32 %v4851_v18, %v12448_v46 }
 0x2fe   : > { %v9601_v9 = vpop.f32.mrf.mxu1  ;;  %9900 = vmatmul.mubr.msk.f32.gmra.mxu1 %vm280_vm1, %v12131_v33 }
 0x2ff   : > { %v9651_v8 = vpop.f32.mrf.mxu0  ;;  %v12629_v26 = vadd.f32 %v5240_v59, %v4986_v58  ;;  %v4989_v44 = vadd.f32 %v9601_v9, %v12454_v7  ;;  %9902 = vmatprep.mubr.msk.f32.mxu1 %vm280_vm1, %v12137_v63 }
 0x300   : > { %v4861_v42 = vpop.f32.mrf.mxu1 }
 0x301   : > { %v5250_v45 = vpop.f32.mrf.mxu0  ;;  %v12634_v20 = vadd.f32 %v9651_v8, %v4989_v44  ;;  %v4988_v60 = vadd.f32 %v4861_v42, %v12460_v56 }
 0x302   : > { %v9604_v51 = vpop.f32.mrf.mxu1  ;;  %9903 = vmatmul.mubr.msk.f32.gmra.mxu1 %vm280_vm1, %v12143_v61 }
 0x303   : > { %v9654_v46 = vpop.f32.mrf.mxu0  ;;  %v12639_v30 = vadd.f32 %v5250_v45, %v4988_v60  ;;  %v4991_v33 = vadd.f32 %v9604_v51, %v12466_v47  ;;  %9905 = vmatprep.mubr.msk.f32.mxu1 %vm280_vm1, %v12149_v40  ;;  %v6977_v45 = vld [vmem:[#allocation2 + $0x112] sm:$0xff] }
 0x304   : > { %v4871_v7 = vpop.f32.mrf.mxu1 }
 0x305   : > { %v5260_v63 = vpop.f32.mrf.mxu0  ;;  %v12644_v16 = vadd.f32 %v9654_v46, %v4991_v33  ;;  %v4990_v14 = vadd.f32 %v4871_v7, %v12472_v22  ;;  %v6979_v7 = vld [vmem:[#allocation2 + $0x12a] sm:$0xff] }
 0x306   : > { %v9607_v53 = vpop.f32.mrf.mxu1  ;;  %9906 = vmatmul.mubr.msk.f32.gmra.mxu1 %vm280_vm1, %v12155_v29 }
 0x307   : > { %v9657_v56 = vpop.f32.mrf.mxu0  ;;  %v12649_v11 = vadd.f32 %v5260_v63, %v4990_v14  ;;  %v4993_v61 = vadd.f32 %v9607_v53, %v12478_v10  ;;  %9908 = vmatprep.mubr.msk.f32.mxu1 %vm280_vm1, %v12161_v43  ;;  %v6980_v14 = vld [vmem:[#allocation2 + $0x13a] sm:$0xff] }
 0x308   : > { %v4881_v47 = vpop.f32.mrf.mxu1 }
 0x309   : > { %v5270_v40 = vpop.f32.mrf.mxu0  ;;  %v12654_v35 = vadd.f32 %v9657_v56, %v4993_v61  ;;  %v4992_v25 = vadd.f32 %v4881_v47, %v12484_v4 }
 0x30a   : > { %v9610_v37 = vpop.f32.mrf.mxu1  ;;  %9909 = vmatmul.mubr.msk.f32.gmra.mxu1 %vm280_vm1, %v12167_v52 }
 0x30b   : > { %v9660_v22 = vpop.f32.mrf.mxu0  ;;  %v12659_v18 = vadd.f32 %v5270_v40, %v4992_v25  ;;  %v4995_v29 = vadd.f32 %v9610_v37, %v12490_v5  ;;  %9911 = vmatprep.mubr.msk.f32.mxu1 %vm280_vm1, %v12173_v15  ;;  %v6981_v40 = vld [vmem:[#allocation2 + $0x142] sm:$0xff]  ;;  %v6982_v37 = vld [vmem:[#allocation2 + $0x152] sm:$0xff] }
 0x30c   : > { %v4891_v10 = vpop.f32.mrf.mxu1 }
 0x30d   : > { %v5280_v43 = vpop.f32.mrf.mxu0  ;;  %v12664_v59 = vadd.f32 %v9660_v22, %v4995_v29  ;;  %v4994_v58 = vadd.f32 %v4891_v10, %v12496_v50 }
 0x30e   : > { %v9613_v9 = vpop.f32.mrf.mxu1  ;;  %9912 = vmatmul.mubr.msk.f32.gmra.mxu1 %vm280_vm1, %v12179_v12 }
 0x30f   : > { %v9663_v4 = vpop.f32.mrf.mxu0  ;;  %v12669_v8 = vadd.f32 %v5280_v43, %v4994_v58  ;;  %v4997_v52 = vadd.f32 %v9613_v9, %v12502_v36  ;;  %9914 = vmatprep.mubr.msk.f32.mxu1 %vm280_vm1, %v12185_v6  ;;  %v6983_v9 = vld [vmem:[#allocation2 + $0x15a] sm:$0xff] }
 0x310   : > { %v4901_v5 = vpop.f32.mrf.mxu1 }
 0x311   : > { %v5290_v15 = vpop.f32.mrf.mxu0  ;;  %v12674_v44 = vadd.f32 %v9663_v4, %v4997_v52  ;;  %v4996_v42 = vadd.f32 %v4901_v5, %v12508_v2  ;;  %v6984_v52 = vld [vmem:[#allocation2 + $0x16a] sm:$0xff] }
 0x312   : > { %v9616_v50 = vpop.f32.mrf.mxu1  ;;  %9915 = vmatmul.mubr.msk.f32.gmra.mxu1 %vm280_vm1, %v6977_v45 }
 0x313   : > { %v9666_v60 = vpop.f32.mrf.mxu0  ;;  %v12678_v51 = vadd.f32 %v5290_v15, %v4996_v42  ;;  %v4999_v12 = vadd.f32 %v9616_v50, %v12514_v3  ;;  %9917 = vmatprep.mubr.msk.f32.mxu1 %vm280_vm1, %v12197_v38 }
 0x314   : > { %v4911_v36 = vpop.f32.mrf.mxu1 }
 0x315   : > { %v5300_v6 = vpop.f32.mrf.mxu0  ;;  %v12683_v46 = vadd.f32 %v9666_v60, %v4999_v12  ;;  %v4998_v33 = vadd.f32 %v4911_v36, %v12520_v27  ;;  %v6985_v60 = vld [vmem:[#allocation2 + $0x172] sm:$0xff] }
 0x316   : > { %v9619_v2 = vpop.f32.mrf.mxu1  ;;  %9918 = vmatmul.mubr.msk.f32.gmra.mxu1 %vm280_vm1, %v6979_v7  ;;  %v6988_v7 = vld [vmem:[#allocation2 + $0x19a] sm:$0xff] }
 0x317   : > { %v9669_v63 = vpop.f32.mrf.mxu0  ;;  %v12687_v53 = vadd.f32 %v5300_v6, %v4998_v33  ;;  %v5001_v56 = vadd.f32 %v9619_v2, %v12526_v57  ;;  %9920 = vmatprep.mubr.msk.f32.mxu1 %vm280_vm1, %v6980_v14 }
 0x318   : > { %v4921_v3 = vpop.f32.mrf.mxu1 }
 0x319   : > { %v5310_v38 = vpop.f32.mrf.mxu0  ;;  %v12691_v61 = vadd.f32 %v9669_v63, %v5001_v56  ;;  %v5000_v47 = vadd.f32 %v4921_v3, %v12532_v17 }
 0x31a   : > { %v9622_v27 = vpop.f32.mrf.mxu1  ;;  %9921 = vmatmul.mubr.msk.f32.gmra.mxu1 %vm280_vm1, %v6981_v40 }
 0x31b   : > { %v9672_v25 = vpop.f32.mrf.mxu0  ;;  %v12695_v22 = vadd.f32 %v5310_v38, %v5000_v47  ;;  %v5003_v29 = vadd.f32 %v9622_v27, %v12538_v24  ;;  %9923 = vmatprep.mubr.msk.f32.mxu1 %vm280_vm1, %v6982_v37 }
 0x31c   : > { %v4931_v57 = vpop.f32.mrf.mxu1 }
 0x31d   : > { %v5320_v10 = vpop.f32.mrf.mxu0  ;;  %v12699_v43 = vadd.f32 %v9672_v25, %v5003_v29  ;;  %v5002_v58 = vadd.f32 %v4931_v57, %v12544_v19  ;;  %v13691_v57 = vld [vmem:[#allocation25_spill] sm:$0xff] }
 0x31e   : > { %v9625_v17 = vpop.f32.mrf.mxu1  ;;  %9924 = vmatmul.mubr.msk.f32.gmra.mxu1 %vm280_vm1, %v6983_v9 }
 0x31f   : > { %v9675_v4 = vpop.f32.mrf.mxu0  ;;  %v12703_v5 = vadd.f32 %v5320_v10, %v5002_v58  ;;  %v5005_v15 = vadd.f32 %v9625_v17, %v12550_v23  ;;  %9926 = vmatprep.mubr.msk.f32.mxu1 %vm280_vm1, %v6984_v52 }
 0x320   : > { %v4941_v24 = vpop.f32.mrf.mxu1 }
 0x321   : > { %v5330_v42 = vpop.f32.mrf.mxu0  ;;  %v12707_v45 = vadd.f32 %v9675_v4, %v5005_v15  ;;  %v5004_v50 = vadd.f32 %v4941_v24, %v12556_v39 }
 0x322   : > { %v9628_v19 = vpop.f32.mrf.mxu1  ;;  %9927 = vmatmul.mubr.msk.f32.gmra.mxu1 %vm280_vm1, %v6985_v60 }
 0x323   : > { %v9678_v12 = vpop.f32.mrf.mxu0  ;;  %v12711_v36 = vadd.f32 %v5330_v42, %v5004_v50  ;;  %v5007_v6 = vadd.f32 %v9628_v19, %v12562_v48  ;;  %9929 = vmatprep.mubr.msk.f32.mxu1 %vm280_vm1, %v12382_v55  ;;  %v6989_v48 = vld [vmem:[#allocation2 + $0x1a2] sm:$0xff] }
 0x324   : > { %v4951_v23 = vpop.f32.mrf.mxu1 }
 0x325   : > { %v5340_v33 = vpop.f32.mrf.mxu0  ;;  %v12716_v2 = vadd.f32 %v9678_v12, %v5007_v6  ;;  %v5006_v63 = vadd.f32 %v4951_v23, %v12568_v21 }
 0x326   : > { %v9631_v39 = vpop.f32.mrf.mxu1  ;;  %9930 = vmatmul.mubr.msk.f32.gmra.mxu1 %vm280_vm1, %v12390_v62 }
 0x327   : > { %v9681_v14 = vpop.f32.mrf.mxu0  ;;  %v12721_v56 = vadd.f32 %v5340_v33, %v5006_v63  ;;  %v5009_v3 = vadd.f32 %v9631_v39, %v12574_v32  ;;  %9932 = vmatprep.mubr.msk.f32.mxu1 %vm280_vm1, %v6988_v7 }
 0x328   : > { %v4961_v55 = vpop.f32.mrf.mxu1 }
 0x329   : > { %v5350_v38 = vpop.f32.mrf.mxu0  ;;  %v12725_v47 = vadd.f32 %v9681_v14, %v5009_v3  ;;  %v5008_v40 = vadd.f32 %v4961_v55, %v12578_v34 }
 0x32a   : > { %v9634_v27 = vpop.f32.mrf.mxu1  ;;  %9933 = vmatmul.mubr.msk.f32.gmra.mxu1 %vm280_vm1, %v6989_v48 }
 0x32b   : > { %v9684_v21 = vpop.f32.mrf.mxu0  ;;  %v12729_v25 = vadd.f32 %v5350_v38, %v5008_v40  ;;  %v5011_v62 = vadd.f32 %v9634_v27, %v12582_v13 }
 0x32c   : > { %v4971_v37 = vpop.f32.mrf.mxu1 }
 0x32d   : > { %v5360_v29 = vpop.f32.mrf.mxu0  ;;  %v12732_v32 = vadd.f32 %v9684_v21, %v5011_v62  ;;  %v5010_v10 = vadd.f32 %v4971_v37, %v13691_v57 }
 0x32e   : > { %v9689_v58 = vpop.f32.mrf.mxu1 }
 0x32f   : > { %v12735_v9 = vpop.f32.mrf.mxu0  ;;  %v12737_v17 = vadd.f32 %v5360_v29, %v5010_v10  ;;  %v12740_v34 = vadd.f32 %v9689_v58, %v12595_v49 }
 0x330   : > { %v5599_v4 = vpop.f32.mrf.mxu1 }
 0x331   : > { %v12742_v52 = vpop.f32.mrf.mxu0  ;;  %v12745_v15 = vadd.f32 %v5599_v4, %v12599_v54 }
 0x332   : > { %v9692_v13 = vpop.f32.mrf.mxu1 }
 0x333   : > { %v12747_v24 = vpop.f32.mrf.mxu0  ;;  %v12750_v42 = vadd.f32 %v9692_v13, %v12604_v41 }
 0x334   : > { %v5609_v50 = vpop.f32.mrf.mxu1 }
 0x335   : > { %v12752_v60 = vpop.f32.mrf.mxu0  ;;  %v12755_v19 = vadd.f32 %v5609_v50, %v12609_v28 }
 0x336   : > { %v9695_v49 = vpop.f32.mrf.mxu1 }
 0x337   : > { %v12757_v12 = vpop.f32.mrf.mxu0  ;;  %v12760_v6 = vadd.f32 %v9695_v49, %v12614_v0 }
 0x338   : > { %v5619_v54 = vpop.f32.mrf.mxu1 }
 0x339   : > { %v12762_v23 = vpop.f32.mrf.mxu0  ;;  %v12765_v33 = vadd.f32 %v5619_v54, %v12619_v31 }
 0x33a   : > { %v9698_v41 = vpop.f32.mrf.mxu1 }
 0x33b   : > { %v12767_v7 = vpop.f32.mrf.mxu0  ;;  %v12770_v63 = vadd.f32 %v9698_v41, %v12624_v1 }
 0x33c   : > { %v5629_v28 = vpop.f32.mrf.mxu1 }
 0x33d   : > { %v12772_v39 = vpop.f32.mrf.mxu0  ;;  %v12775_v14 = vadd.f32 %v5629_v28, %v12629_v26 }
 0x33e   : > { %v9701_v0 = vpop.f32.mrf.mxu1 }
 0x33f   : > { %v12777_v3 = vpop.f32.mrf.mxu0  ;;  %v12780_v48 = vadd.f32 %v9701_v0, %v12634_v20 }
 0x340   : > { %v5639_v31 = vpop.f32.mrf.mxu1 }
 0x341   : > { %v12782_v55 = vpop.f32.mrf.mxu0  ;;  %v12785_v38 = vadd.f32 %v5639_v31, %v12639_v30 }
 0x342   : > { %v9704_v1 = vpop.f32.mrf.mxu1 }
 0x343   : > { %v12787_v40 = vpop.f32.mrf.mxu0  ;;  %v12790_v27 = vadd.f32 %v9704_v1, %v12644_v16 }
 0x344   : > { %v5649_v26 = vpop.f32.mrf.mxu1 }
 0x345   : > { %v12792_v21 = vpop.f32.mrf.mxu0  ;;  %v12795_v62 = vadd.f32 %v5649_v26, %v12649_v11 }
 0x346   : > { %v9707_v20 = vpop.f32.mrf.mxu1 }
 0x347   : > { %v12797_v37 = vpop.f32.mrf.mxu0  ;;  %v12800_v29 = vadd.f32 %v9707_v20, %v12654_v35 }
 0x348   : > { %v5659_v30 = vpop.f32.mrf.mxu1 }
 0x349   : > { %v12802_v57 = vpop.f32.mrf.mxu0  ;;  %v12805_v10 = vadd.f32 %v5659_v30, %v12659_v18 }
 0x34a   : > { %v9710_v16 = vpop.f32.mrf.mxu1 }
 0x34b   : > { %v12807_v58 = vpop.f32.mrf.mxu0  ;;  %v12810_v4 = vadd.f32 %v9710_v16, %v12664_v59 }
 0x34c   : > { %13692 = vst [vmem:[#allocation80_spill] sm:$0xff] %v12807_v58  ;;  %v5669_v11 = vpop.f32.mrf.mxu1 }
 0x34d   : > { %v12812_v13 = vpop.f32.mrf.mxu0  ;;  %v12815_v50 = vadd.f32 %v5669_v11, %v12669_v8 }
 0x34e   : > { %13693 = vst [vmem:[#allocation75_spill] sm:$0xff] %v12812_v13  ;;  %v9713_v35 = vpop.f32.mrf.mxu1 }
 0x34f   : > { %13694 = vst [vmem:[#allocation28_spill] sm:$0xff] %v12815_v50  ;;  %v12817_v49 = vpop.f32.mrf.mxu0  ;;  %v12820_v54 = vadd.f32 %v9713_v35, %v12674_v44 }
 0x350   : > { %13695 = vst [vmem:[#allocation33_spill] sm:$0xff] %v12817_v49  ;;  %v5679_v18 = vpop.f32.mrf.mxu1 }
 0x351   : > { %13696 = vst [vmem:[#allocation83_spill] sm:$0xff] %v12820_v54  ;;  %v12822_v41 = vpop.f32.mrf.mxu0  ;;  %v12825_v28 = vadd.f32 %v5679_v18, %v12678_v51 }
 0x352   : > { %13697 = vst [vmem:[#allocation76_spill] sm:$0xff] %v12822_v41  ;;  %v9716_v59 = vpop.f32.mrf.mxu1 }
 0x353   : > { %13698 = vst [vmem:[#allocation15_spill] sm:$0xff] %v12825_v28  ;;  %v12827_v0 = vpop.f32.mrf.mxu0  ;;  %v12830_v31 = vadd.f32 %v9716_v59, %v12683_v46 }
 0x354   : > { %13699 = vst [vmem:[#allocation32_spill] sm:$0xff] %v12827_v0  ;;  %v5689_v8 = vpop.f32.mrf.mxu1 }
 0x355   : > { %13700 = vst [vmem:[#allocation31_spill] sm:$0xff] %v12830_v31  ;;  %v12832_v1 = vpop.f32.mrf.mxu0  ;;  %v12835_v26 = vadd.f32 %v5689_v8, %v12687_v53 }
 0x356   : > { %13701 = vst [vmem:[#allocation86_spill] sm:$0xff] %v12832_v1  ;;  %v9719_v44 = vpop.f32.mrf.mxu1 }
 0x357   : > { %13702 = vst [vmem:[#allocation78_spill] sm:$0xff] %v12835_v26  ;;  %v12837_v20 = vpop.f32.mrf.mxu0  ;;  %v12840_v30 = vadd.f32 %v9719_v44, %v12691_v61 }
 0x358   : > { %13703 = vst [vmem:[#allocation34_spill] sm:$0xff] %v12837_v20  ;;  %v5699_v51 = vpop.f32.mrf.mxu1 }
 0x359   : > { %13704 = vst [vmem:[#allocation37_spill] sm:$0xff] %v12840_v30  ;;  %v12842_v16 = vpop.f32.mrf.mxu0  ;;  %v12845_v11 = vadd.f32 %v5699_v51, %v12695_v22 }
 0x35a   : > { %13705 = vst [vmem:[#allocation89_spill] sm:$0xff] %v12842_v16  ;;  %v9722_v46 = vpop.f32.mrf.mxu1 }
 0x35b   : > { %13706 = vst [vmem:[#allocation79_spill] sm:$0xff] %v12845_v11  ;;  %v12847_v35 = vpop.f32.mrf.mxu0  ;;  %v12850_v18 = vadd.f32 %v9722_v46, %v12699_v43 }
 0x35c   : > { %13707 = vst [vmem:[#allocation36_spill] sm:$0xff] %v12847_v35  ;;  %v5709_v53 = vpop.f32.mrf.mxu1 }
 0x35d   : > { %13708 = vst [vmem:[#allocation35_spill] sm:$0xff] %v12850_v18  ;;  %v12852_v59 = vpop.f32.mrf.mxu0  ;;  %v12855_v8 = vadd.f32 %v5709_v53, %v12703_v5 }
 0x35e   : > { %13709 = vst [vmem:[#allocation92_spill] sm:$0xff] %v12852_v59  ;;  %v9725_v61 = vpop.f32.mrf.mxu1 }
 0x35f   : > { %13710 = vst [vmem:[#allocation81_spill] sm:$0xff] %v12855_v8  ;;  %v12857_v44 = vpop.f32.mrf.mxu0  ;;  %v12860_v16 = vadd.f32 %v9725_v61, %v12707_v45 }
 0x360   : > { %13711 = vst [vmem:[#allocation38_spill] sm:$0xff] %v12857_v44  ;;  %v5719_v22 = vpop.f32.mrf.mxu1 }
 0x361   : > { %13712 = vst [vmem:[#allocation41_spill] sm:$0xff] %v12860_v16  ;;  %v12862_v51 = vpop.f32.mrf.mxu0  ;;  %v12865_v35 = vadd.f32 %v5719_v22, %v12711_v36 }
 0x362   : > { %13713 = vst [vmem:[#allocation95_spill] sm:$0xff] %v12862_v51  ;;  %v9728_v43 = vpop.f32.mrf.mxu1 }
 0x363   : > { %13714 = vst [vmem:[#allocation82_spill] sm:$0xff] %v12865_v35  ;;  %v12867_v46 = vpop.f32.mrf.mxu0  ;;  %v12870_v59 = vadd.f32 %v9728_v43, %v12716_v2 }
 0x364   : > { %13715 = vst [vmem:[#allocation40_spill] sm:$0xff] %v12867_v46  ;;  %v5729_v5 = vpop.f32.mrf.mxu1 }
 0x365   : > { %13716 = vst [vmem:[#allocation39_spill] sm:$0xff] %v12870_v59  ;;  %v12872_v53 = vpop.f32.mrf.mxu0  ;;  %v12875_v44 = vadd.f32 %v5729_v5, %v12721_v56 }
 0x366   : > { %13717 = vst [vmem:[#allocation98_spill] sm:$0xff] %v12872_v53  ;;  %v9731_v45 = vpop.f32.mrf.mxu1 }
 0x367   : > { %13718 = vst [vmem:[#allocation84_spill] sm:$0xff] %v12875_v44  ;;  %v12877_v61 = vpop.f32.mrf.mxu0  ;;  %v12880_v51 = vadd.f32 %v9731_v45, %v12725_v47 }
 0x368   : > { %13719 = vst [vmem:[#allocation42_spill] sm:$0xff] %v12877_v61  ;;  %v5739_v36 = vpop.f32.mrf.mxu1 }
 0x369   : > { %13720 = vst [vmem:[#allocation45_spill] sm:$0xff] %v12880_v51  ;;  %v12882_v22 = vpop.f32.mrf.mxu0  ;;  %v12885_v46 = vadd.f32 %v5739_v36, %v12729_v25 }
 0x36a   : > { %13721 = vst [vmem:[#allocation85_spill] sm:$0xff] %v12882_v22  ;;  %v9734_v2 = vpop.f32.mrf.mxu1 }
 0x36b   : > { %13722 = vst [vmem:[#allocation44_spill] sm:$0xff] %v12885_v46  ;;  %v12887_v43 = vpop.f32.mrf.mxu0  ;;  %v12890_v53 = vadd.f32 %v9734_v2, %v12732_v32 }
 0x36c   : > { %13723 = vst [vmem:[#allocation43_spill] sm:$0xff] %v12887_v43  ;;  %v5749_v56 = vpop.f32.mrf.mxu1 }
 0x36d   : > { %13724 = vst [vmem:[#allocation87_spill] sm:$0xff] %v12890_v53  ;;  %v12892_v5 = vpop.f32.mrf.mxu0  ;;  %v12895_v61 = vadd.f32 %v5749_v56, %v12737_v17 }
 0x36e   : > { %13725 = vst [vmem:[#allocation46_spill] sm:$0xff] %v12892_v5  ;;  %v9789_v47 = vpop.f32.mrf.mxu1 }
 0x36f   : > { %13726 = vst [vmem:[#allocation49_spill] sm:$0xff] %v12895_v61  ;;  %v9839_v45 = vpop.f32.mrf.mxu0 }
 0x370   : > { %v6378_v51 = vpop.f32.mrf.mxu1 }
 0x371   : > { %v6767_v44 = vpop.f32.mrf.mxu0 }
 0x372   : > { %v9792_v22 = vpop.f32.mrf.mxu1 }
 0x373   : > { %v12897_v25 = vpop.f32.mrf.mxu0 }
 0x374   : > { %v6388_v59 = vpop.f32.mrf.mxu1 }
 0x375   : > { %v12903_v32 = vpop.f32.mrf.mxu0 }
 0x376   : > { %v12899_v36 = vpop.f32.mrf.mxu1 }
 0x377   : > { %v12909_v17 = vpop.f32.mrf.mxu0 }
 0x378   : > { %v12901_v43 = vpop.f32.mrf.mxu1 }
 0x379   : > { %v12915_v53 = vpop.f32.mrf.mxu0 }
 0x37a   : > { %v12905_v2 = vpop.f32.mrf.mxu1 }
 0x37b   : > { %v12921_v16 = vpop.f32.mrf.mxu0 }
 0x37c   : > { %v12907_v5 = vpop.f32.mrf.mxu1 }
 0x37d   : > { %v12927_v11 = vpop.f32.mrf.mxu0 }
 0x37e   : > { %v12911_v56 = vpop.f32.mrf.mxu1 }
 0x37f   : > { %v12933_v1 = vpop.f32.mrf.mxu0 }
 0x380   : > { %v12913_v61 = vpop.f32.mrf.mxu1 }
 0x381   : > { %v12939_v31 = vpop.f32.mrf.mxu0 }
 0x382   : > { %v12917_v46 = vpop.f32.mrf.mxu1 }
 0x383   : > { %v12945_v49 = vpop.f32.mrf.mxu0 }
 0x384   : > { %v12919_v35 = vpop.f32.mrf.mxu1 }
 0x386   : > { %v12923_v8 = vpop.f32.mrf.mxu1 }
 0x388   : > { %v12925_v18 = vpop.f32.mrf.mxu1 }
 0x389   : > { %13727 = vst [vmem:[#allocation88_spill] sm:$0xff] %v12925_v18 }
 0x38a   : > { %v12929_v20 = vpop.f32.mrf.mxu1 }
 0x38b   : > { %13728 = vst [vmem:[#allocation48_spill] sm:$0xff] %v12929_v20 }
 0x38c   : > { %v12931_v30 = vpop.f32.mrf.mxu1 }
 0x38d   : > { %13729 = vst [vmem:[#allocation47_spill] sm:$0xff] %v12931_v30  ;;  %v12951_v30 = vpop.f32.mrf.mxu0 }
 0x38e   : > { %v12935_v26 = vpop.f32.mrf.mxu1 }
 0x38f   : > { %13730 = vst [vmem:[#allocation90_spill] sm:$0xff] %v12935_v26 }
 0x390   : > { %v12937_v0 = vpop.f32.mrf.mxu1 }
 0x391   : > { %13731 = vst [vmem:[#allocation50_spill] sm:$0xff] %v12937_v0  ;;  %v12957_v0 = vpop.f32.mrf.mxu0 }
 0x392   : > { %v12941_v41 = vpop.f32.mrf.mxu1  ;;  %13738 = vst [vmem:[#allocation57_spill] sm:$0xff] %v12957_v0 }
 0x393   : > { %13732 = vst [vmem:[#allocation53_spill] sm:$0xff] %v12941_v41 }
 0x394   : > { %v12943_v28 = vpop.f32.mrf.mxu1 }
 0x395   : > { %13733 = vst [vmem:[#allocation91_spill] sm:$0xff] %v12943_v28  ;;  %v12963_v28 = vpop.f32.mrf.mxu0 }
 0x396   : > { %v12947_v54 = vpop.f32.mrf.mxu1  ;;  %13741 = vst [vmem:[#allocation55_spill] sm:$0xff] %v12963_v28 }
 0x397   : > { %13734 = vst [vmem:[#allocation52_spill] sm:$0xff] %v12947_v54  ;;  %v12969_v54 = vpop.f32.mrf.mxu0 }
 0x398   : > { %v12949_v20 = vpop.f32.mrf.mxu1  ;;  %13744 = vst [vmem:[#allocation61_spill] sm:$0xff] %v12969_v54 }
 0x399   : > { %13735 = vst [vmem:[#allocation51_spill] sm:$0xff] %v12949_v20  ;;  %v12980_v0 = vpop.f32.mrf.mxu0 }
 0x39a   : > { %v12953_v13 = vpop.f32.mrf.mxu1 }
 0x39b   : > { %13736 = vst [vmem:[#allocation93_spill] sm:$0xff] %v12953_v13  ;;  %v6148_v13 = vadd.f32 %v12735_v9, %v12740_v34  ;;  %v6149_v9 = vadd.f32 %v12752_v60, %v12755_v19  ;;  %v12990_v54 = vpop.f32.mrf.mxu0  ;;  %v6152_v60 = vadd.f32 %v12757_v12, %v12760_v6  ;;  %v6151_v19 = vadd.f32 %v12762_v23, %v12765_v33  ;;  %v8408_v33 = vld [vmem:[%s10028_s15 + $0x21] sm:$0xff] }
 0x39c   : > { %v12955_v26 = vpop.f32.mrf.mxu1  ;;  %v6154_v12 = vadd.f32 %v12767_v7, %v12770_v63  ;;  %v8407_v63 = vld [vmem:[%s10028_s15 + $0x19] sm:$0xff] }
 0x39d   : > { %13737 = vst [vmem:[#allocation54_spill] sm:$0xff] %v12955_v26  ;;  %v6542_v6 = vadd.f32 %v12899_v36, %v6152_v60  ;;  %v6541_v23 = vadd.f32 %v12901_v43, %v6151_v19 }
 0x39e   : > { %v12959_v50 = vpop.f32.mrf.mxu1  ;;  %v6544_v7 = vadd.f32 %v12905_v2, %v6154_v12  ;;  %v8410_v2 = vld [vmem:[%s10028_s15 + $0x39] sm:$0xff] }
 0x39f   : > { %13739 = vst [vmem:[#allocation94_spill] sm:$0xff] %v12959_v50  ;;  %v6147_v50 = vadd.f32 %v12742_v52, %v12745_v15  ;;  %v12995_v15 = vld [vmem:[%s13307_s5] ss:$0 sm:$0xff] }
 0x3a0   : > { %v12961_v41 = vpop.f32.mrf.mxu1 }
 0x3a1   : > { %13740 = vst [vmem:[#allocation56_spill] sm:$0xff] %v12961_v41  ;;  %v6538_v41 = vadd.f32 %v9789_v47, %v6148_v13 }
 0x3a2   : > { %v12965_v18 = vpop.f32.mrf.mxu1 }
 0x3a3   : > { %13742 = vst [vmem:[#allocation96_spill] sm:$0xff] %v12965_v18  ;;  %v6537_v18 = vadd.f32 %v6378_v51, %v6147_v50  ;;  %v6927_v34 = vadd.f32 %v9839_v45, %v6538_v41 }
 0x3a4   : > { %v12967_v58 = vpop.f32.mrf.mxu1 }
 0x3a5   : > { %13743 = vst [vmem:[#allocation58_spill] sm:$0xff] %v12967_v58  ;;  %v6150_v58 = vadd.f32 %v12747_v24, %v12750_v42  ;;  %v6926_v13 = vadd.f32 %v6767_v44, %v6537_v18  ;;  %v6539_v24 = vadd.f32 %v6388_v59, %v6149_v9  ;;  %v13009_v18 = vpop.f32.mrf.mxu0 }
 0x3a6   : > { %v12971_v20 = vpop.f32.mrf.mxu1 }
 0x3a7   : > { %13745 = vst [vmem:[#allocation97_spill] sm:$0xff] %v12971_v20  ;;  %v13025_v9 = vpop.f32.mrf.mxu0 }
 0x3a8   : > { %v12975_v26 = vpop.f32.mrf.mxu1 }
 0x3a9   : > { %13746 = vst [vmem:[#allocation60_spill] sm:$0xff] %v12975_v26  ;;  %v6540_v26 = vadd.f32 %v9792_v22, %v6150_v58  ;;  %v13006_v58 = vld [vmem:[%s13308_s6] ss:$0 sm:$0xff]  ;;  %v6928_v22 = vadd.f32 %v12903_v32, %v6539_v24  ;;  %v6931_v24 = vadd.f32 %v12909_v17, %v6542_v6  ;;  %v8409_v17 = vld [vmem:[%s10028_s15 + $0x31] sm:$0xff] }
 0x3aa   : > { %v12982_v28 = vpop.f32.mrf.mxu1 }
 0x3ab   : > { %v6929_v41 = vadd.f32 %v12897_v25, %v6540_v26  ;;  %v6153_v25 = vadd.f32 %v12772_v39, %v12775_v14  ;;  %v6930_v39 = vadd.f32 %v12915_v53, %v6541_v23  ;;  %v6933_v53 = vadd.f32 %v12921_v16, %v6544_v7 }
 0x3ac   : > { %v12986_v20 = vpop.f32.mrf.mxu1 }
 0x3ad   : > { %v6543_v14 = vadd.f32 %v12907_v5, %v6153_v25 }
 0x3ae   : > { %v9889_v52 = vpop.f32.mrf.mxu1 }
 0x3af   : > { %v7316_v42 = vadd.f32 %v9889_v52, %v6927_v34  ;;  %v6932_v16 = vadd.f32 %v12927_v11, %v6543_v14 }
 0x3b0   : > { %v7156_v50 = vpop.f32.mrf.mxu1 }
 0x3b1   : > { %v7355_v59 = vmul.f32 %v12995_v15, %v7316_v42  ;;  %v7315_v44 = vadd.f32 %v7156_v50, %v6926_v13  ;;  %v6156_v13 = vadd.f32 %v12777_v3, %v12780_v48  ;;  %v6155_v48 = vadd.f32 %v12782_v55, %v12785_v38 }
 0x3b2   : > { %v9892_v51 = vpop.f32.mrf.mxu1  ;;  %v6158_v55 = vadd.f32 %v12787_v40, %v12790_v27  ;;  %v6157_v38 = vadd.f32 %v12792_v21, %v12795_v62  ;;  %v8411_v62 = vld [vmem:[%s10028_s15 + $0x49] sm:$0xff] }
 0x3b3   : > { %v7394_v26 = vadd.f32 %v13006_v58, %v7355_v59  ;;  %v7354_v47 = vmul.f32 %v12995_v15, %v7315_v44  ;;  %v7318_v45 = vadd.f32 %v9892_v51, %v6929_v41  ;;  %v6546_v5 = vadd.f32 %v12911_v56, %v6156_v13  ;;  %v13047_v44 = vpop.f32.mrf.mxu0  ;;  %v8414_v13 = vld [vmem:[%s10028_s15 + $0x69] sm:$0xff] }
 0x3b4   : > { %v7166_v36 = vpop.f32.mrf.mxu1  ;;  %v6545_v40 = vadd.f32 %v12913_v61, %v6155_v48  ;;  %v6548_v27 = vadd.f32 %v12917_v46, %v6158_v55  ;;  %v6160_v61 = vadd.f32 %v12797_v37, %v12800_v29  ;;  %v6159_v46 = vadd.f32 %v12802_v57, %v12805_v10 }
 0x3b5   : > { %v7458_v43 = vadd.f32 %v8408_v33, %v7394_v26  ;;  %v7393_v34 = vadd.f32 %v13006_v58, %v7354_v47  ;;  %v7357_v32 = vmul.f32 %v12995_v15, %v7318_v45  ;;  %v7317_v52 = vadd.f32 %v7166_v36, %v6928_v22  ;;  %v8412_v47 = vld [vmem:[%s10028_s15 + $0x51] sm:$0xff] }
 0x3b6   : > { %v9895_v42 = vpop.f32.mrf.mxu1  ;;  %v6935_v7 = vadd.f32 %v12933_v1, %v6546_v5  ;;  %v6934_v37 = vadd.f32 %v12939_v31, %v6545_v40  ;;  %v6937_v29 = vadd.f32 %v12945_v49, %v6548_v27  ;;  %v6550_v57 = vadd.f32 %v12923_v8, %v6160_v61  ;;  %v13747_v5 = vld [vmem:[#allocation80_spill] sm:$0xff]  ;;  %v8416_v8 = vld [vmem:[%s10028_s15 + $0x81] sm:$0xff] }
 0x3b7   : > { %v7490_v60 = vmax.f32 %v7458_v43, 0.0  ;;  %v7457_v19 = vadd.f32 %v8407_v63, %v7393_v34  ;;  %v7396_v50 = vadd.f32 %v13006_v58, %v7357_v32  ;;  %v7356_v3 = vmul.f32 %v12995_v15, %v7317_v52  ;;  %v13067_v63 = vpop.f32.mrf.mxu0  ;;  %v13748_v49 = vld [vmem:[#allocation88_spill] sm:$0xff] }
 0x3b8   : > { %v7320_v41 = vadd.f32 %v9895_v42, %v6931_v24  ;;  %v7176_v59 = vpop.f32.mrf.mxu1  ;;  %v6547_v32 = vadd.f32 %v12919_v35, %v6157_v38  ;;  %v8413_v35 = vld [vmem:[%s10028_s15 + $0x61] sm:$0xff]  ;;  %v13749_v38 = vld [vmem:[#allocation28_spill] sm:$0xff] }
 0x3b9   : > { %7522 = vst.msk [vmem:[%s13037_s17 + $0x8] sm:$0xff] %vm280_vm1, %v7490_v60  ;;  %v7489_v12 = vmax.f32 %v7457_v19, 0.0  ;;  %v7460_v6 = vadd.f32 %v8410_v2, %v7396_v50  ;;  %v7395_v23 = vadd.f32 %v13006_v58, %v7356_v3  ;;  %v7319_v33 = vadd.f32 %v7176_v59, %v6930_v39  ;;  %v13087_v19 = vpop.f32.mrf.mxu0  ;;  %v8415_v27 = vld [vmem:[%s10028_s15 + $0x79] sm:$0xff] }
 0x3ba   : > { %v7359_v56 = vmul.f32 %v12995_v15, %v7320_v41  ;;  %v9898_v51 = vpop.f32.mrf.mxu1  ;;  %v6936_v31 = vadd.f32 %v12951_v30, %v6547_v32  ;;  %v6549_v41 = vadd.f32 %v13748_v49, %v6159_v46  ;;  %v13751_v30 = vld [vmem:[#allocation83_spill] sm:$0xff]  ;;  %v8418_v32 = vld [vmem:[%s10028_s15 + $0x99] sm:$0xff] }
 0x3bb   : > { %7521 = vst.msk [vmem:[%s13037_s17] sm:$0xff] %vm280_vm1, %v7489_v12  ;;  %v7492_v22 = vmax.f32 %v7460_v6, 0.0  ;;  %v7459_v26 = vadd.f32 %v8409_v17, %v7395_v23  ;;  %v7358_v45 = vmul.f32 %v12995_v15, %v7319_v33  ;;  %v7322_v25 = vadd.f32 %v9898_v51, %v6933_v53 }
 0x3bc   : > { %v7398_v21 = vadd.f32 %v13006_v58, %v7359_v56  ;;  %v7186_v11 = vpop.f32.mrf.mxu1  ;;  %v6162_v17 = vadd.f32 %v13747_v5, %v12810_v4  ;;  %v13750_v4 = vld [vmem:[#allocation75_spill] sm:$0xff]  ;;  %v13752_v56 = vld [vmem:[#allocation33_spill] sm:$0xff] }
 0x3bd   : > { %7524 = vst.msk [vmem:[%s13037_s17 + $0x18] sm:$0xff] %vm280_vm1, %v7492_v22  ;;  %v7491_v36 = vmax.f32 %v7459_v26, 0.0  ;;  %v7397_v43 = vadd.f32 %v13006_v58, %v7358_v45  ;;  %v7361_v34 = vmul.f32 %v12995_v15, %v7322_v25  ;;  %v7321_v1 = vadd.f32 %v7186_v11, %v6932_v16  ;;  %v13753_v22 = vld [vmem:[#allocation57_spill] sm:$0xff]  ;;  %v13107_v25 = vpop.f32.mrf.mxu0  ;;  %v13754_v11 = vld [vmem:[#allocation55_spill] sm:$0xff] }
 0x3be   : > { %v7462_v52 = vadd.f32 %v8412_v47, %v7398_v21  ;;  %v9901_v24 = vpop.f32.mrf.mxu1  ;;  %v6161_v16 = vadd.f32 %v13750_v4, %v13749_v38  ;;  %v6164_v51 = vadd.f32 %v13752_v56, %v13751_v30  ;;  %v6939_v26 = vadd.f32 %v13753_v22, %v6550_v57  ;;  %v13760_v57 = vld [vmem:[#allocation32_spill] sm:$0xff]  ;;  %v13764_v56 = vld [vmem:[#allocation78_spill] sm:$0xff] }
 0x3bf   : > { %7523 = vst.msk [vmem:[%s13037_s17 + $0x10] sm:$0xff] %vm280_vm1, %v7491_v36  ;;  %v7461_v39 = vadd.f32 %v8411_v62, %v7397_v43  ;;  %v7400_v14 = vadd.f32 %v13006_v58, %v7361_v34  ;;  %v7360_v2 = vmul.f32 %v12995_v15, %v7321_v1  ;;  %v7324_v42 = vadd.f32 %v9901_v24, %v6935_v7  ;;  %v13755_v43 = vld [vmem:[#allocation48_spill] sm:$0xff]  ;;  %v13756_v1 = vld [vmem:[#allocation47_spill] sm:$0xff] }
 0x3c0   : > { %v7494_v10 = vmax.f32 %v7462_v52, 0.0  ;;  %v7196_v60 = vpop.f32.mrf.mxu1  ;;  %v6938_v36 = vadd.f32 %v13754_v11, %v6549_v41  ;;  %v6552_v34 = vadd.f32 %v13755_v43, %v6162_v17  ;;  %v6551_v61 = vadd.f32 %v13756_v1, %v6161_v16  ;;  %v13762_v41 = vld [vmem:[#allocation61_spill] sm:$0xff]  ;;  %v13769_v1 = vld [vmem:[#allocation79_spill] sm:$0xff] }
 0x3c1   : > { %v7493_v50 = vmax.f32 %v7461_v39, 0.0  ;;  %v7464_v3 = vadd.f32 %v8414_v13, %v7400_v14  ;;  %v7399_v48 = vadd.f32 %v13006_v58, %v7360_v2  ;;  %v7363_v53 = vmul.f32 %v12995_v15, %v7324_v42  ;;  %v13757_v2 = vld [vmem:[#allocation15_spill] sm:$0xff]  ;;  %v13758_v42 = vld [vmem:[#allocation76_spill] sm:$0xff]  ;;  %v13767_v43 = vld [vmem:[#allocation37_spill] sm:$0xff] }
 0x3c2   : > { %7526 = vst.msk [vmem:[%s13037_s17 + $0x28] sm:$0xff] %vm280_vm1, %v7494_v10  ;;  %v7323_v59 = vadd.f32 %v7196_v60, %v6934_v37  ;;  %v9904_v12 = vpop.f32.mrf.mxu1  ;;  %v6163_v37 = vadd.f32 %v13758_v42, %v13757_v2 }
 0x3c3   : > { %7525 = vst.msk [vmem:[%s13037_s17 + $0x20] sm:$0xff] %vm280_vm1, %v7493_v50  ;;  %v7496_v6 = vmax.f32 %v7464_v3, 0.0  ;;  %v7463_v23 = vadd.f32 %v8413_v35, %v7399_v48  ;;  %v7402_v33 = vadd.f32 %v13006_v58, %v7363_v53  ;;  %v7326_v55 = vadd.f32 %v9904_v12, %v6937_v29  ;;  %v13759_v29 = vld [vmem:[#allocation31_spill] sm:$0xff]  ;;  %v13761_v35 = vld [vmem:[#allocation90_spill] sm:$0xff]  ;;  %v13128_v53 = vpop.f32.mrf.mxu0 }
 0x3c4   : > { %v7362_v47 = vmul.f32 %v12995_v15, %v7323_v59  ;;  %v7206_v45 = vpop.f32.mrf.mxu1  ;;  %v6166_v10 = vadd.f32 %v13760_v57, %v13759_v29  ;;  %v6554_v60 = vadd.f32 %v13761_v35, %v6164_v51  ;;  %v8417_v3 = vld [vmem:[%s10028_s15 + $0x91] sm:$0xff]  ;;  %v6940_v59 = vadd.f32 %v12980_v0, %v6551_v61  ;;  %v13763_v12 = vld [vmem:[#allocation50_spill] sm:$0xff]  ;;  %v13770_v61 = vld [vmem:[#allocation89_spill] sm:$0xff] }
 0x3c5   : > { %7528 = vst.msk [vmem:[%s13037_s17 + $0x38] sm:$0xff] %vm280_vm1, %v7496_v6  ;;  %v7495_v7 = vmax.f32 %v7463_v23, 0.0  ;;  %v7466_v40 = vadd.f32 %v8416_v8, %v7402_v33  ;;  %v7365_v21 = vmul.f32 %v12995_v15, %v7326_v55  ;;  %v7325_v62 = vadd.f32 %v7206_v45, %v6936_v31  ;;  %v8420_v33 = vld [vmem:[%s10028_s15 + $0xb1] sm:$0xff]  ;;  %v13765_v51 = vld [vmem:[#allocation86_spill] sm:$0xff] }
 0x3c6   : > { %v7401_v46 = vadd.f32 %v13006_v58, %v7362_v47  ;;  %v9907_v52 = vpop.f32.mrf.mxu1  ;;  %v6941_v8 = vadd.f32 %v13762_v41, %v6552_v34  ;;  %v6553_v6 = vadd.f32 %v13763_v12, %v6163_v37  ;;  %v6165_v22 = vadd.f32 %v13765_v51, %v13764_v56  ;;  %v13766_v47 = vld [vmem:[#allocation53_spill] sm:$0xff]  ;;  %v8419_v0 = vld [vmem:[%s10028_s15 + $0xa9] sm:$0xff] }
 0x3c7   : > { %7527 = vst.msk [vmem:[%s13037_s17 + $0x30] sm:$0xff] %vm280_vm1, %v7495_v7  ;;  %v7498_v13 = vmax.f32 %v7466_v40, 0.0  ;;  %v7404_v24 = vadd.f32 %v13006_v58, %v7365_v21  ;;  %v7364_v39 = vmul.f32 %v12995_v15, %v7325_v62  ;;  %v7328_v14 = vadd.f32 %v9907_v52, %v6939_v26  ;;  %v13771_v29 = vld [vmem:[#allocation91_spill] sm:$0xff] }
 0x3c8   : > { %v7465_v50 = vadd.f32 %v8415_v27, %v7401_v46  ;;  %v7216_v48 = vpop.f32.mrf.mxu1  ;;  %v6943_v26 = vadd.f32 %v12990_v54, %v6554_v60  ;;  %v6556_v45 = vadd.f32 %v13766_v47, %v6166_v10  ;;  %v13147_v27 = vpop.f32.mrf.mxu0  ;;  %v13768_v54 = vld [vmem:[#allocation34_spill] sm:$0xff]  ;;  %v6167_v46 = vadd.f32 %v13770_v61, %v13769_v1  ;;  %v13772_v10 = vld [vmem:[#allocation52_spill] sm:$0xff] }
 0x3c9   : > { %7530 = vst.msk [vmem:[%s13037_s17 + $0x48] sm:$0xff] %vm280_vm1, %v7498_v13  ;;  %v7468_v5 = vadd.f32 %v8418_v32, %v7404_v24  ;;  %v7403_v17 = vadd.f32 %v13006_v58, %v7364_v39  ;;  %v7367_v31 = vmul.f32 %v12995_v15, %v7328_v14  ;;  %v7327_v49 = vadd.f32 %v7216_v48, %v6938_v36  ;;  %v8422_v14 = vld [vmem:[%s10028_s15 + $0xc9] sm:$0xff]  ;;  %v8421_v60 = vld [vmem:[%s10028_s15 + $0xc1] sm:$0xff]  ;;  %v8426_v61 = vld [vmem:[%s10028_s15 + $0xf9] sm:$0xff] }
 0x3ca   : > { %v7497_v23 = vmax.f32 %v7465_v50, 0.0  ;;  %v9910_v55 = vpop.f32.mrf.mxu1  ;;  %v6168_v34 = vadd.f32 %v13768_v54, %v13767_v43  ;;  %v6942_v32 = vadd.f32 %v13009_v18, %v6553_v6  ;;  %v6945_v37 = vadd.f32 %v13025_v9, %v6556_v45  ;;  %v13777_v6 = vld [vmem:[#allocation51_spill] sm:$0xff]  ;;  %v13779_v43 = vld [vmem:[#allocation41_spill] sm:$0xff]  ;;  %v13780_v54 = vld [vmem:[#allocation38_spill] sm:$0xff] }
 0x3cb   : > { %v7500_v38 = vmax.f32 %v7468_v5, 0.0  ;;  %v7467_v4 = vadd.f32 %v8417_v3, %v7403_v17  ;;  %v7406_v16 = vadd.f32 %v13006_v58, %v7367_v31  ;;  %v7366_v30 = vmul.f32 %v12995_v15, %v7327_v49  ;;  %v13167_v3 = vpop.f32.mrf.mxu0  ;;  %v13773_v31 = vld [vmem:[#allocation35_spill] sm:$0xff]  ;;  %v13774_v49 = vld [vmem:[#allocation36_spill] sm:$0xff] }
 0x3cc   : > { %7529 = vst.msk [vmem:[%s13037_s17 + $0x40] sm:$0xff] %vm280_vm1, %v7497_v23  ;;  %v7330_v7 = vadd.f32 %v9910_v55, %v6941_v8  ;;  %v7226_v40 = vpop.f32.mrf.mxu1  ;;  %v6555_v57 = vadd.f32 %v13771_v29, %v6165_v22  ;;  %v6558_v35 = vadd.f32 %v13772_v10, %v6168_v34  ;;  %v6170_v41 = vadd.f32 %v13774_v49, %v13773_v31  ;;  %v13775_v8 = vld [vmem:[#allocation81_spill] sm:$0xff]  ;;  %v13786_v31 = vld [vmem:[#allocation94_spill] sm:$0xff] }
 0x3cd   : > { %7532 = vst.msk [vmem:[%s13037_s17 + $0x58] sm:$0xff] %vm280_vm1, %v7500_v38  ;;  %v7499_v21 = vmax.f32 %v7467_v4, 0.0  ;;  %v7470_v62 = vadd.f32 %v8420_v33, %v7406_v16  ;;  %v7405_v11 = vadd.f32 %v13006_v58, %v7366_v30  ;;  %v7329_v36 = vadd.f32 %v7226_v40, %v6940_v59  ;;  %v13776_v59 = vld [vmem:[#allocation92_spill] sm:$0xff]  ;;  %v8424_v55 = vld [vmem:[%s10028_s15 + $0xe1] sm:$0xff]  ;;  %v13187_v40 = vpop.f32.mrf.mxu0 }
 0x3ce   : > { %v7369_v52 = vmul.f32 %v12995_v15, %v7330_v7  ;;  %v9913_v13 = vpop.f32.mrf.mxu1  ;;  %v6169_v12 = vadd.f32 %v13776_v59, %v13775_v8  ;;  %v6557_v23 = vadd.f32 %v13777_v6, %v6167_v46  ;;  %v6944_v51 = vadd.f32 %v13047_v44, %v6555_v57  ;;  %v8428_v59 = vld [vmem:[%s10028_s15 + $0x111] sm:$0xff] }
 0x3cf   : > { %7531 = vst.msk [vmem:[%s13037_s17 + $0x50] sm:$0xff] %vm280_vm1, %v7499_v21  ;;  %v7502_v24 = vmax.f32 %v7470_v62, 0.0  ;;  %v7469_v39 = vadd.f32 %v8419_v0, %v7405_v11  ;;  %v7368_v2 = vmul.f32 %v12995_v15, %v7329_v36  ;;  %v7332_v42 = vadd.f32 %v9913_v13, %v6943_v26  ;;  %v13778_v26 = vld [vmem:[#allocation93_spill] sm:$0xff] }
 0x3d0   : > { %v7408_v18 = vadd.f32 %v13006_v58, %v7369_v52  ;;  %v7236_v50 = vpop.f32.mrf.mxu1  ;;  %v6947_v22 = vadd.f32 %v13067_v63, %v6558_v35  ;;  %v6560_v47 = vadd.f32 %v13778_v26, %v6170_v41  ;;  %v8423_v0 = vld [vmem:[%s10028_s15 + $0xd9] sm:$0xff]  ;;  %v6172_v34 = vadd.f32 %v13780_v54, %v13779_v43  ;;  %v13781_v63 = vld [vmem:[#allocation54_spill] sm:$0xff] }
 0x3d1   : > { %7534 = vst.msk [vmem:[%s13037_s17 + $0x68] sm:$0xff] %vm280_vm1, %v7502_v24  ;;  %v7501_v48 = vmax.f32 %v7469_v39, 0.0  ;;  %v7407_v5 = vadd.f32 %v13006_v58, %v7368_v2  ;;  %v7371_v17 = vmul.f32 %v12995_v15, %v7332_v42  ;;  %v7331_v9 = vadd.f32 %v7236_v50, %v6942_v32  ;;  %v13783_v2 = vld [vmem:[#allocation95_spill] sm:$0xff]  ;;  %v13787_v41 = vld [vmem:[#allocation56_spill] sm:$0xff]  ;;  %v13793_v54 = vld [vmem:[#allocation58_spill] sm:$0xff] }
 0x3d2   : > { %v7472_v33 = vadd.f32 %v8422_v14, %v7408_v18  ;;  %v9916_v38 = vpop.f32.mrf.mxu1  ;;  %v6946_v44 = vadd.f32 %v13087_v19, %v6557_v23  ;;  %v6559_v1 = vadd.f32 %v13781_v63, %v6169_v12  ;;  %v13782_v14 = vld [vmem:[#allocation82_spill] sm:$0xff]  ;;  %v13784_v19 = vld [vmem:[#allocation39_spill] sm:$0xff]  ;;  %v6949_v57 = vadd.f32 %v13107_v25, %v6560_v47  ;;  %v6897_v18 = vpop.f32.mrf.mxu0 }
 0x3d3   : > { %7533 = vst.msk [vmem:[%s13037_s17 + $0x60] sm:$0xff] %vm280_vm1, %v7501_v48  ;;  %v7471_v4 = vadd.f32 %v8421_v60, %v7407_v5  ;;  %v7410_v16 = vadd.f32 %v13006_v58, %v7371_v17  ;;  %v7370_v30 = vmul.f32 %v12995_v15, %v7331_v9  ;;  %v7334_v56 = vadd.f32 %v9916_v38, %v6945_v37  ;;  %v13785_v37 = vld [vmem:[#allocation40_spill] sm:$0xff]  ;;  %v8427_v47 = vld [vmem:[%s10028_s15 + $0x109] sm:$0xff] }
 0x3d4   : > { %v7504_v45 = vmax.f32 %v7472_v33, 0.0  ;;  %v7246_v7 = vpop.f32.mrf.mxu1  ;;  %v6171_v42 = vadd.f32 %v13783_v2, %v13782_v14  ;;  %v6174_v29 = vadd.f32 %v13785_v37, %v13784_v19  ;;  %v8425_v48 = vld [vmem:[%s10028_s15 + $0xf1] sm:$0xff]  ;;  %v6948_v9 = vadd.f32 %v13128_v53, %v6559_v1  ;;  %v8430_v63 = vld [vmem:[%s10028_s15 + $0x129] sm:$0xff] }
 0x3d5   : > { %v7503_v21 = vmax.f32 %v7471_v4, 0.0  ;;  %v7474_v62 = vadd.f32 %v8424_v55, %v7410_v16  ;;  %v7409_v11 = vadd.f32 %v13006_v58, %v7370_v30  ;;  %v7373_v36 = vmul.f32 %v12995_v15, %v7334_v56  ;;  %v13788_v38 = vld [vmem:[#allocation84_spill] sm:$0xff]  ;;  %v13789_v4 = vld [vmem:[#allocation98_spill] sm:$0xff]  ;;  %v13790_v16 = vld [vmem:[#allocation45_spill] sm:$0xff] }
 0x3d6   : > { %7536 = vst.msk [vmem:[%s13037_s17 + $0x78] sm:$0xff] %vm280_vm1, %v7504_v45  ;;  %v7333_v46 = vadd.f32 %v7246_v7, %v6944_v51  ;;  %v9919_v32 = vpop.f32.mrf.mxu1  ;;  %v6562_v49 = vadd.f32 %v13786_v31, %v6172_v34  ;;  %v6561_v25 = vadd.f32 %v13787_v41, %v6171_v42  ;;  %v6173_v53 = vadd.f32 %v13789_v4, %v13788_v38  ;;  %v13791_v30 = vld [vmem:[#allocation42_spill] sm:$0xff]  ;;  %v13792_v51 = vld [vmem:[#allocation96_spill] sm:$0xff] }
 0x3d7   : > { %7535 = vst.msk [vmem:[%s13037_s17 + $0x70] sm:$0xff] %vm280_vm1, %v7503_v21  ;;  %v7506_v52 = vmax.f32 %v7474_v62, 0.0  ;;  %v7473_v13 = vadd.f32 %v8423_v0, %v7409_v11  ;;  %v7412_v24 = vadd.f32 %v13006_v58, %v7373_v36  ;;  %v7336_v39 = vadd.f32 %v9919_v32, %v6947_v22  ;;  %v9881_v0 = vpop.f32.mrf.mxu0  ;;  %v8431_v4 = vld [vmem:[%s10028_s15 + $0x139] sm:$0xff] }
 0x3d8   : > { %v7372_v10 = vmul.f32 %v12995_v15, %v7333_v46  ;;  %v7256_v35 = vpop.f32.mrf.mxu1  ;;  %v6176_v56 = vadd.f32 %v13791_v30, %v13790_v16  ;;  %v6564_v22 = vadd.f32 %v13792_v51, %v6174_v29  ;;  %v6951_v36 = vadd.f32 %v13147_v27, %v6562_v49  ;;  %v13796_v27 = vld [vmem:[#allocation97_spill] sm:$0xff] }
 0x3d9   : > { %7538 = vst.msk [vmem:[%s13037_s17 + $0x88] sm:$0xff] %vm280_vm1, %v7506_v52  ;;  %v7505_v60 = vmax.f32 %v7473_v13, 0.0  ;;  %v7476_v50 = vadd.f32 %v8426_v61, %v7412_v24  ;;  %v7375_v5 = vmul.f32 %v12995_v15, %v7336_v39  ;;  %v7335_v17 = vadd.f32 %v7256_v35, %v6946_v44  ;;  %v13794_v13 = vld [vmem:[#allocation44_spill] sm:$0xff]  ;;  %v13795_v24 = vld [vmem:[#allocation85_spill] sm:$0xff]  ;;  %v6907_v37 = vpop.f32.mrf.mxu0 }
 0x3da   : > { %v7411_v8 = vadd.f32 %v13006_v58, %v7372_v10  ;;  %v9922_v12 = vpop.f32.mrf.mxu1  ;;  %v6950_v43 = vadd.f32 %v13167_v3, %v6561_v25  ;;  %v6563_v34 = vadd.f32 %v13793_v54, %v6173_v53  ;;  %v6175_v39 = vadd.f32 %v13795_v24, %v13794_v13  ;;  %v8429_v3 = vld [vmem:[%s10028_s15 + $0x121] sm:$0xff]  ;;  %v8433_v54 = vld [vmem:[%s10028_s15 + $0x151] sm:$0xff] }
 0x3db   : > { %7537 = vst.msk [vmem:[%s13037_s17 + $0x80] sm:$0xff] %vm280_vm1, %v7505_v60  ;;  %v7508_v6 = vmax.f32 %v7476_v50, 0.0  ;;  %v7414_v23 = vadd.f32 %v13006_v58, %v7375_v5  ;;  %v7374_v33 = vmul.f32 %v12995_v15, %v7335_v17  ;;  %v7338_v55 = vadd.f32 %v9922_v12, %v6949_v57  ;;  %v13797_v60 = vld [vmem:[#allocation87_spill] sm:$0xff]  ;;  %v13800_v5 = vld [vmem:[#allocation46_spill] sm:$0xff]  ;;  %v9884_v41 = vpop.f32.mrf.mxu0 }
 0x3dc   : > { %v7475_v26 = vadd.f32 %v8425_v48, %v7411_v8  ;;  %v7266_v45 = vpop.f32.mrf.mxu1  ;;  %v6953_v14 = vadd.f32 %v13187_v40, %v6564_v22  ;;  %v6566_v2 = vadd.f32 %v13796_v27, %v6176_v56  ;;  %v13798_v50 = vld [vmem:[#allocation43_spill] sm:$0xff]  ;;  %v13799_v48 = vld [vmem:[#allocation49_spill] sm:$0xff] }
 0x3dd   : > { %7540 = vst.msk [vmem:[%s13037_s17 + $0x98] sm:$0xff] %vm280_vm1, %v7508_v6  ;;  %v7478_v7 = vadd.f32 %v8428_v59, %v7414_v23  ;;  %v7413_v21 = vadd.f32 %v13006_v58, %v7374_v33  ;;  %v7377_v62 = vmul.f32 %v12995_v15, %v7338_v55  ;;  %v7337_v11 = vadd.f32 %v7266_v45, %v6948_v9  ;;  %v8432_v59 = vld [vmem:[%s10028_s15 + $0x141] sm:$0xff]  ;;  %v13801_v33 = vld [vmem:[#allocation60_spill] sm:$0xff] }
 0x3de   : > { %v7507_v44 = vmax.f32 %v7475_v26, 0.0  ;;  %v9925_v1 = vpop.f32.mrf.mxu1  ;;  %v6178_v40 = vadd.f32 %v13798_v50, %v13797_v60  ;;  %v6177_v17 = vadd.f32 %v13800_v5, %v13799_v48  ;;  %v6952_v9 = vadd.f32 %v6897_v18, %v6563_v34  ;;  %v8437_v48 = vld [vmem:[%s10028_s15 + $0x181] sm:$0xff] }
 0x3df   : > { %v7510_v61 = vmax.f32 %v7478_v7, 0.0  ;;  %v7477_v46 = vadd.f32 %v8427_v47, %v7413_v21  ;;  %v7416_v32 = vadd.f32 %v13006_v58, %v7377_v62  ;;  %v7376_v52 = vmul.f32 %v12995_v15, %v7337_v11  ;;  %v8434_v47 = vld [vmem:[%s10028_s15 + $0x159] sm:$0xff] }
 0x3e0   : > { %7539 = vst.msk [vmem:[%s13037_s17 + $0x90] sm:$0xff] %vm280_vm1, %v7507_v44  ;;  %v7340_v42 = vadd.f32 %v9925_v1, %v6951_v36  ;;  %v7276_v19 = vpop.f32.mrf.mxu1  ;;  %v6955_v23 = vadd.f32 %v9881_v0, %v6566_v2  ;;  %v6565_v55 = vadd.f32 %v13801_v33, %v6175_v39  ;;  %v6568_v18 = vadd.f32 %v12982_v28, %v6178_v40  ;;  %v6917_v0 = vpop.f32.mrf.mxu0 }
 0x3e1   : > { %7542 = vst.msk [vmem:[%s13037_s17 + $0xa8] sm:$0xff] %vm280_vm1, %v7510_v61  ;;  %v7509_v29 = vmax.f32 %v7477_v46, 0.0  ;;  %v7480_v57 = vadd.f32 %v8430_v63, %v7416_v32  ;;  %v7415_v10 = vadd.f32 %v13006_v58, %v7376_v52  ;;  %v7339_v35 = vadd.f32 %v7276_v19, %v6950_v43  ;;  %v8436_v46 = vld [vmem:[%s10028_s15 + $0x171] sm:$0xff]  ;;  %v8435_v19 = vld [vmem:[%s10028_s15 + $0x169] sm:$0xff] }
 0x3e2   : > { %v7379_v31 = vmul.f32 %v12995_v15, %v7340_v42  ;;  %v9928_v49 = vpop.f32.mrf.mxu1  ;;  %v6567_v22 = vadd.f32 %v12986_v20, %v6177_v17  ;;  %v6954_v11 = vadd.f32 %v6907_v37, %v6565_v55  ;;  %v6957_v36 = vadd.f32 %v9884_v41, %v6568_v18 }
 0x3e3   : > { %7541 = vst.msk [vmem:[%s13037_s17 + $0xa0] sm:$0xff] %vm280_vm1, %v7509_v29  ;;  %v7512_v25 = vmax.f32 %v7480_v57, 0.0  ;;  %v7479_v8 = vadd.f32 %v8429_v3, %v7415_v10  ;;  %v7378_v12 = vmul.f32 %v12995_v15, %v7339_v35  ;;  %v7342_v6 = vadd.f32 %v9928_v49, %v6953_v14  ;;  %v8438_v10 = vld [vmem:[%s10028_s15 + $0x189] sm:$0xff] }
 0x3e4   : > { %v7418_v38 = vadd.f32 %v13006_v58, %v7379_v31  ;;  %v7286_v53 = vpop.f32.mrf.mxu1  ;;  %v6956_v61 = vadd.f32 %v6917_v0, %v6567_v22 }
 0x3e5   : > { %7544 = vst.msk [vmem:[%s13037_s17 + $0xb8] sm:$0xff] %vm280_vm1, %v7512_v25  ;;  %v7511_v16 = vmax.f32 %v7479_v8, 0.0  ;;  %v7417_v30 = vadd.f32 %v13006_v58, %v7378_v12  ;;  %v7381_v56 = vmul.f32 %v12995_v15, %v7342_v6  ;;  %v7341_v51 = vadd.f32 %v7286_v53, %v6952_v9 }
 0x3e6   : > { %v7482_v26 = vadd.f32 %v8432_v59, %v7418_v38  ;;  %v9931_v45 = vpop.f32.mrf.mxu1 }
 0x3e7   : > { %7543 = vst.msk [vmem:[%s13037_s17 + $0xb0] sm:$0xff] %vm280_vm1, %v7511_v16  ;;  %v7481_v28 = vadd.f32 %v8431_v4, %v7417_v30  ;;  %v7420_v7 = vadd.f32 %v13006_v58, %v7381_v56  ;;  %v7380_v21 = vmul.f32 %v12995_v15, %v7341_v51  ;;  %v7344_v62 = vadd.f32 %v9931_v45, %v6955_v23 }
 0x3e8   : > { %v7514_v43 = vmax.f32 %v7482_v26, 0.0  ;;  %v7296_v20 = vpop.f32.mrf.mxu1 }
 0x3e9   : > { %v7513_v34 = vmax.f32 %v7481_v28, 0.0  ;;  %v7484_v44 = vadd.f32 %v8434_v47, %v7420_v7  ;;  %v7419_v63 = vadd.f32 %v13006_v58, %v7380_v21  ;;  %v7383_v1 = vmul.f32 %v12995_v15, %v7344_v62 }
 0x3ea   : > { %7546 = vst.msk [vmem:[%s13037_s17 + $0xc8] sm:$0xff] %vm280_vm1, %v7514_v43  ;;  %v7343_v32 = vadd.f32 %v7296_v20, %v6954_v11  ;;  %v9934_v52 = vpop.f32.mrf.mxu1 }
 0x3eb   : > { %7545 = vst.msk [vmem:[%s13037_s17 + $0xc0] sm:$0xff] %vm280_vm1, %v7513_v34  ;;  %v7516_v13 = vmax.f32 %v7484_v44, 0.0  ;;  %v7483_v24 = vadd.f32 %v8433_v54, %v7419_v63  ;;  %v7422_v39 = vadd.f32 %v13006_v58, %v7383_v1  ;;  %v7346_v14 = vadd.f32 %v9934_v52, %v6957_v36 }
 0x3ec   : > { %v7382_v27 = vmul.f32 %v12995_v15, %v7343_v32  ;;  %v7306_v2 = vpop.f32.mrf.mxu1 }
 0x3ed   : > { %7548 = vst.msk [vmem:[%s13037_s17 + $0xd8] sm:$0xff] %vm280_vm1, %v7516_v13  ;;  %v7515_v3 = vmax.f32 %v7483_v24, 0.0  ;;  %v7486_v42 = vadd.f32 %v8436_v46, %v7422_v39  ;;  %v7385_v37 = vmul.f32 %v12995_v15, %v7346_v14  ;;  %v7345_v29 = vadd.f32 %v7306_v2, %v6956_v61 }
 0x3ee   : > { %v7421_v57 = vadd.f32 %v13006_v58, %v7382_v27 }
 0x3ef   : > { %7547 = vst.msk [vmem:[%s13037_s17 + $0xd0] sm:$0xff] %vm280_vm1, %v7515_v3  ;;  %v7518_v35 = vmax.f32 %v7486_v42, 0.0  ;;  %v7424_v60 = vadd.f32 %v13006_v58, %v7385_v37  ;;  %v7384_v50 = vmul.f32 %v12995_v15, %v7345_v29 }
 0x3f0   : > { %v7485_v40 = vadd.f32 %v8435_v19, %v7421_v57 }
 0x3f1   : > { %7550 = vst.msk [vmem:[%s13037_s17 + $0xe8] sm:$0xff] %vm280_vm1, %v7518_v35  ;;  %v7488_v5 = vadd.f32 %v8438_v10, %v7424_v60  ;;  %v7423_v17 = vadd.f32 %v13006_v58, %v7384_v50 }
 0x3f2   : > { %v7517_v9 = vmax.f32 %v7485_v40, 0.0 }
 0x3f3   : > { %v7520_v31 = vmax.f32 %v7488_v5, 0.0  ;;  %v7487_v49 = vadd.f32 %v8437_v48, %v7423_v17 }
 0x3f4   : > { %7549 = vst.msk [vmem:[%s13037_s17 + $0xe0] sm:$0xff] %vm280_vm1, %v7517_v9 }
 0x3f5   : > { %7552 = vst.msk [vmem:[%s13037_s17 + $0xf8] sm:$0xff] %vm280_vm1, %v7520_v31  ;;  %v7519_v41 = vmax.f32 %v7487_v49, 0.0 }
 0x3f7   : > { %7551 = vst.msk [vmem:[%s13037_s17 + $0xf0] sm:$0xff] %vm280_vm1, %v7519_v41 }
 0x3f8 PF: > { %s17_s24 = sadd.s32 1, %s9952_s24  }
 0x3f9   : > { %p14_p5 = scmp.ge.s32.totalorder %s17_s24, 4  }
 0x3fb   :  { %16 = sbr.rel (!%p14_p5) target bundleno = 1 (0x1), region = 83 }

</bundles_post_ra>
